<compile_context>
chip_gen: v7x
topology: tpu7x:2x2x1
jax: 0.10.0
libtpu: 0.0.40
codegen_flags: <defaults>
</compile_context>

<pallas_src>
import math
from functools import partial

import jax
import jax.numpy as jnp
from jax import lax
from jax.experimental import pallas as pl
from jax.experimental.pallas import tpu as pltpu

# ---------------- small synthetic config (vit_base scaled down) ----------------
IMG = 16            # image spatial size
PATCH = 4           # patch size -> 4x4 = 16 patches
DEPTH = 2           # transformer blocks
NUM_HEADS = 4
BACKBONE_DIM = 64   # timm vit_base uses 768
MLP_DIM = 128       # mlp_ratio-style hidden dim
EMBED_DIM = 32      # FaceViT embedding_dim (512 in the original)
LN_EPS = 1e-6       # timm ViT LayerNorm eps
BN_EPS = 1e-5       # nn.BatchNorm1d eps
SLAB_W = 3 * BACKBONE_DIM   # 192 lanes: widest packed weight (fused QKV)


def _layernorm(x, w, b):
    mu = jnp.mean(x, axis=-1, keepdims=True)
    var = jnp.mean(jnp.square(x - mu), axis=-1, keepdims=True)
    return (x - mu) * lax.rsqrt(var + LN_EPS) * w + b


# ------------------------------ fused kernel ----------------------------------
def _facevit_kernel(tok_ref, add_ref, wmat_ref, wvec_ref, o_ref, *,
                    batch, depth, num_heads, head_dim, mlp_dim, embed_dim,
                    patch_dim, n_pad, n_real, n_patches):
    d = num_heads * head_dim
    N = batch * n_pad                       # batch-stacked token rows
    scale = 1.0 / math.sqrt(head_dim)

    wv = wvec_ref[...]                      # (vec_rows, 192) f32, stays register/VMEM resident

    def vec(row, width):                    # (1, width) bias / LN / BN row (static slice)
        return wv[row:row + 1, 0:width]

    def mat(r0, rows, width):               # (rows, width) bf16 weight view (static ref slice)
        return wmat_ref[r0:r0 + rows, 0:width]

    # ---- patch embed + cls + pos: tok rows are pre-padded/zeroed in the wrapper,
    #      so one matmul + one precomputed additive slab builds the token slab ----
    x = jnp.dot(tok_ref[...], mat(0, patch_dim, d),
                preferred_element_type=jnp.float32) + add_ref[...]     # (N, d) f32

    # ---- additive attention mask: per-sample block-diagonal, pad keys killed,
    #      tiled once over heads (rows = heads-stacked logits layout) ----
    rr = lax.broadcasted_iota(jnp.int32, (N, N), 0)
    cc = lax.broadcasted_iota(jnp.int32, (N, N), 1)
    valid = jnp.zeros((N, N), jnp.bool_)
    for s in range(batch):                                    # static, tiny
        lo = s * n_pad
        valid = valid | ((rr >= lo) & (rr < lo + n_pad)
                         & (cc >= lo) & (cc < lo + n_real))
    mask = jnp.where(valid, jnp.float32(0.0), jnp.float32(-1e30))       # (N, N)
    mask_heads = jnp.concatenate([mask] * num_heads, axis=0)            # (H*N, N)

    mrow = patch_dim
    for b in range(depth):                                    # static unroll over depth
        vrow = b * 8
        # --- multi-head self-attention (pre-LN) ---
        xn = _layernorm(x, vec(vrow + 0, d), vec(vrow + 1, d))
        qkv = jnp.dot(xn.astype(jnp.bfloat16), mat(mrow, d, 3 * d),
                      preferred_element_type=jnp.float32) + vec(vrow + 2, 3 * d)
        q16 = (qkv[:, 0:d] * scale).astype(jnp.bfloat16)
        k16 = qkv[:, d:2 * d].astype(jnp.bfloat16)
        v16 = qkv[:, 2 * d:3 * d].astype(jnp.bfloat16)

        # all-head logits stacked along sublanes -> single softmax chain per block
        logits = jnp.concatenate(
            [lax.dot_general(q16[:, h * head_dim:(h + 1) * head_dim],
                             k16[:, h * head_dim:(h + 1) * head_dim],
                             (((1,), (1,)), ((), ())),
                             preferred_element_type=jnp.float32)
             for h in range(num_heads)], axis=0) + mask_heads           # (H*N, N)
        m = jnp.max(logits, axis=-1, keepdims=True)
        e = jnp.exp(logits - m)
        p16 = (e * pl.reciprocal(jnp.sum(e, axis=-1, keepdims=True),
                                 approx=True)).astype(jnp.bfloat16)
        attn = jnp.concatenate(
            [jnp.dot(p16[h * N:(h + 1) * N, :],
                     v16[:, h * head_dim:(h + 1) * head_dim],
                     preferred_element_type=jnp.float32)
             for h in range(num_heads)], axis=-1)                       # (N, d)
        x = x + jnp.dot(attn.astype(jnp.bfloat16), mat(mrow + d, d, d),
                        preferred_element_type=jnp.float32) + vec(vrow + 3, d)

        # --- MLP ---
        xn2 = _layernorm(x, vec(vrow + 4, d), vec(vrow + 5, d))
        h1 = jnp.dot(xn2.astype(jnp.bfloat16), mat(mrow + 2 * d, d, mlp_dim),
                     preferred_element_type=jnp.float32) + vec(vrow + 6, mlp_dim)
        # TODO(synk): timm uses exact erf-GELU; tanh approximation kept for Mosaic portability.
        h1 = jax.nn.gelu(h1, approximate=True)
        x = x + jnp.dot(h1.astype(jnp.bfloat16), mat(mrow + 3 * d, mlp_dim, d),
                        preferred_element_type=jnp.float32) + vec(vrow + 7, d)
        mrow += 3 * d + mlp_dim

    # ---- backbone final LN on cls tokens + embedding head (eval: BN folded, Dropout id) ----
    vrow = depth * 8
    cls = jnp.concatenate(
        [x[s * n_pad + n_patches: s * n_pad + n_patches + 1, :] for s in range(batch)],
        axis=0)                                                          # (batch, d)
    f = _layernorm(cls, vec(vrow + 0, d), vec(vrow + 1, d))
    h1 = jnp.dot(f.astype(jnp.bfloat16), mat(mrow, d, embed_dim),
                 preferred_element_type=jnp.float32) + vec(vrow + 2, embed_dim)
    h1 = jnp.maximum(h1, 0.0)                    # ReLU; Dropout(0.5) is identity in eval
    o_ref[...] = jnp.dot(h1.astype(jnp.bfloat16), mat(mrow + d, embed_dim, embed_dim),
                         preferred_element_type=jnp.float32) + vec(vrow + 3, embed_dim)


# --------------------------------- wrapper -------------------------------------
def face_vit_forward(x, params):
    """Eval-mode FaceViT.forward(x) -> embeddings (B, EMBED_DIM)."""
    B, C, H, W = x.shape
    P = PATCH
    nh, nw = H // P, W // P
    n_patches = nh * nw
    patch_dim = C * P * P
    n_real = n_patches + 1
    n_pad = ((n_real + 7) // 8) * 8              # 17 -> 24 rows per sample
    D = BACKBONE_DIM
    depth = len(params["blocks"])

    # NCHW -> (B, nP, C*P*P) patch flattening (matches Conv2d(k=P, s=P) weight layout),
    # zero-padded to n_pad rows per sample (row 16 = cls slot, rows 17.. = pad), batch-stacked.
    patches = (x.reshape(B, C, nh, P, nw, P)
                 .transpose(0, 2, 4, 1, 3, 5)
                 .reshape(B, n_patches, patch_dim))
    tok = jnp.pad(patches, ((0, 0), (0, n_pad - n_patches), (0, 0)))
    tok = tok.reshape(B * n_pad, patch_dim).astype(jnp.bfloat16)

    # additive slab: pos+patch_bias on patch rows, pos+cls_token on the cls row, zeros on pad
    pos = params["pos"].reshape(n_real, D)       # index 0 = cls position
    add_one = jnp.concatenate([
        pos[1:] + params["patch_b"].reshape(1, D),
        pos[0:1] + params["cls"].reshape(1, D),
        jnp.zeros((n_pad - n_real, D), jnp.float32),
    ], axis=0)                                   # (n_pad, D)
    add_slab = jnp.tile(add_one, (B, 1))         # (B*n_pad, D)

    # fold eval-mode BatchNorm1d exactly into the first embedding Linear
    s = params["bn_gamma"] * jax.lax.rsqrt(params["bn_var"] + BN_EPS)
    w1_f = params["head_w1"] * s
    b1_f = params["head_b1"] * s + (params["bn_beta"] - params["bn_mean"] * s)

    # ---- pack every matmul weight into ONE bf16 slab (rows x 192 lanes) ----
    def pc(w):
        return jnp.pad(w, ((0, 0), (0, SLAB_W - w.shape[1])))
    mat_parts = [pc(params["patch_w"])]
    for blk in params["blocks"]:
        mat_parts += [pc(blk["qkvw"]), pc(blk["projw"]), pc(blk["fc1w"]), pc(blk["fc2w"])]
    mat_parts += [pc(w1_f), pc(params["head_w2"])]
    w_mat = jnp.concatenate(mat_parts, axis=0).astype(jnp.bfloat16)

    # ---- pack every bias / LN / folded-BN vector into ONE f32 slab ----
    def pr(v):
        v = v.reshape(1, -1)
        return jnp.pad(v, ((0, 0), (0, SLAB_W - v.shape[1])))
    vec_parts = []
    for blk in params["blocks"]:
        vec_parts += [pr(blk[n]) for n in
                      ("ln1w", "ln1b", "qkvb", "projb", "ln2w", "ln2b", "fc1b", "fc2b")]
    vec_parts += [pr(params["final_lnw"]), pr(params["final_lnb"]), pr(b1_f),
                  pr(params["head_b2"])]
    pad_rows = (-len(vec_parts)) % 8
    if pad_rows:
        vec_parts.append(jnp.zeros((pad_rows, SLAB_W), jnp.float32))
    w_vec = jnp.concatenate(vec_parts, axis=0)

    kernel = partial(_facevit_kernel, batch=B, depth=depth,
                     num_heads=NUM_HEADS, head_dim=D // NUM_HEADS,
                     mlp_dim=MLP_DIM, embed_dim=EMBED_DIM, patch_dim=patch_dim,
                     n_pad=n_pad, n_real=n_real, n_patches=n_patches)

    return pl.pallas_call(
        kernel,
        out_shape=jax.ShapeDtypeStruct((B, EMBED_DIM), jnp.float32),
        grid=(1,),                                   # whole batch in one invocation
        in_specs=[
            pl.BlockSpec(tok.shape, lambda i: (0, 0)),
            pl.BlockSpec(add_slab.shape, lambda i: (0, 0)),
            pl.BlockSpec(w_mat.shape, lambda i: (0, 0)),
            pl.BlockSpec(w_vec.shape, lambda i: (0, 0)),
        ],
        out_specs=pl.BlockSpec((B, EMBED_DIM), lambda i: (0, 0)),
        compiler_params=pltpu.CompilerParams(dimension_semantics=("arbitrary",)),
    )(tok, add_slab, w_mat, w_vec)


# ---------------------------- deterministic params ----------------------------
def _dense(key, fan_in, fan_out):
    return jax.random.normal(key, (fan_in, fan_out), jnp.float32) / math.sqrt(fan_in)


def init_params(key):
    D, Dm, E, P, C = BACKBONE_DIM, MLP_DIM, EMBED_DIM, PATCH, 3
    n_tokens = (IMG // P) * (IMG // P) + 1
    patch_dim = C * P * P
    keys = iter(jax.random.split(key, 32))
    params = {
        "patch_w": _dense(next(keys), patch_dim, D),
        "patch_b": jnp.zeros((1, D), jnp.float32),
        "cls": jax.random.normal(next(keys), (1, 1, D), jnp.float32) * 0.02,
        "pos": jax.random.normal(next(keys), (1, n_tokens, D), jnp.float32) * 0.02,
        "blocks": [],
        "final_lnw": jnp.ones((1, D), jnp.float32),
        "final_lnb": jnp.zeros((1, D), jnp.float32),
        "head_w1": _dense(next(keys), D, E),
        "head_b1": jnp.zeros((1, E), jnp.float32),
        "bn_gamma": jnp.ones((1, E), jnp.float32),
        "bn_beta": jnp.zeros((1, E), jnp.float32),
        "bn_mean": jnp.zeros((1, E), jnp.float32),
        "bn_var": jnp.ones((1, E), jnp.float32),
        "head_w2": _dense(next(keys), E, E),
        "head_b2": jnp.zeros((1, E), jnp.float32),
    }
    for _ in range(DEPTH):
        params["blocks"].append({
            "ln1w": jnp.ones((1, D), jnp.float32), "ln1b": jnp.zeros((1, D), jnp.float32),
            "qkvw": _dense(next(keys), D, 3 * D), "qkvb": jnp.zeros((1, 3 * D), jnp.float32),
            "projw": _dense(next(keys), D, D), "projb": jnp.zeros((1, D), jnp.float32),
            "ln2w": jnp.ones((1, D), jnp.float32), "ln2b": jnp.zeros((1, D), jnp.float32),
            "fc1w": _dense(next(keys), D, Dm), "fc1b": jnp.zeros((1, Dm), jnp.float32),
            "fc2w": _dense(next(keys), Dm, D), "fc2b": jnp.zeros((1, D), jnp.float32),
        })
    return params


if __name__ == "__main__":
    key = jax.random.PRNGKey(0)
    pkey, xkey = jax.random.split(key)
    params = init_params(pkey)
    x = jax.random.normal(xkey, (2, 3, IMG, IMG), jnp.float32)   # NCHW like PyTorch

    emb = jax.jit(face_vit_forward)(x, params)
    emb = jax.block_until_ready(emb)

    assert emb.shape == (2, EMBED_DIM), emb.shape
    assert bool(jnp.all(jnp.isfinite(emb)))
    print("KERNEL_OK")
</pallas_src>

<mosaic_0001>
module attributes {stable_mosaic.version = 11 : i64} {
  func.func @_facevit_kernel(%arg0: i32, %arg1: memref<48x48xbf16, #tpu.memory_space<vmem>>, %arg2: memref<48x64xf32, #tpu.memory_space<vmem>>, %arg3: memref<784x192xbf16, #tpu.memory_space<vmem>>, %arg4: memref<24x192xf32, #tpu.memory_space<vmem>>, %arg5: memref<2x32xf32, #tpu.memory_space<vmem>>) attributes {dimension_semantics = [#tpu.dimension_semantics<arbitrary>], iteration_bounds = array<i64: 1>, scalar_prefetch = 0 : i64, scratch_operands = 0 : i64, tpu.core_type = #tpu.core_type<tc>, window_params = [{pipeline_mode = #tpu.pipeline_mode<synchronous>, transform_indices = @transform_0, window_bounds = array<i64: 48, 48>}, {pipeline_mode = #tpu.pipeline_mode<synchronous>, transform_indices = @transform_1, window_bounds = array<i64: 48, 64>}, {pipeline_mode = #tpu.pipeline_mode<synchronous>, transform_indices = @transform_2, window_bounds = array<i64: 784, 192>}, {pipeline_mode = #tpu.pipeline_mode<synchronous>, transform_indices = @transform_3, window_bounds = array<i64: 24, 192>}, {pipeline_mode = #tpu.pipeline_mode<synchronous>, transform_indices = @transform_4, window_bounds = array<i64: 2, 32>}]} {
    %c0 = arith.constant 0 : index
    %c0_0 = arith.constant 0 : index
    %0 = vector.load %arg4[%c0, %c0_0] : memref<24x192xf32, #tpu.memory_space<vmem>>, vector<24x192xf32>
    %c0_1 = arith.constant 0 : index
    %c0_2 = arith.constant 0 : index
    %1 = vector.load %arg1[%c0_1, %c0_2] : memref<48x48xbf16, #tpu.memory_space<vmem>>, vector<48x48xbf16>
    %c0_3 = arith.constant 0 : index
    %c0_4 = arith.constant 0 : index
    %2 = vector.load %arg3[%c0_3, %c0_4] : memref<784x192xbf16, #tpu.memory_space<vmem>>, vector<48x64xbf16>
    %cst = arith.constant dense<0.000000e+00> : vector<48x64xf32>
    %3 = tpu.matmul %1, %2, %cst {dimension_numbers = #tpu.dot_dimension_numbers<[1], [0], [0], [1], [0, 0, 1, 1], [], []>} : vector<48x48xbf16>, vector<48x64xbf16>, vector<48x64xf32> -> vector<48x64xf32>
    %c0_5 = arith.constant 0 : index
    %c0_6 = arith.constant 0 : index
    %4 = vector.load %arg2[%c0_5, %c0_6] : memref<48x64xf32, #tpu.memory_space<vmem>>, vector<48x64xf32>
    %5 = arith.addf %3, %4 : vector<48x64xf32>
    %6 = tpu.iota {dimensions = array<i32: 0>} : vector<48x48xi32>
    %7 = tpu.iota {dimensions = array<i32: 1>} : vector<48x48xi32>
    %false = arith.constant false
    %8 = vector.broadcast %false : i1 to vector<48x48xi1>
    %c0_i32 = arith.constant 0 : i32
    %9 = vector.broadcast %c0_i32 : i32 to vector<48x48xi32>
    %10 = arith.cmpi sge, %6, %9 : vector<48x48xi32>
    %c24_i32 = arith.constant 24 : i32
    %11 = vector.broadcast %c24_i32 : i32 to vector<48x48xi32>
    %12 = arith.cmpi slt, %6, %11 : vector<48x48xi32>
    %13 = arith.andi %10, %12 : vector<48x48xi1>
    %c0_i32_7 = arith.constant 0 : i32
    %14 = vector.broadcast %c0_i32_7 : i32 to vector<48x48xi32>
    %15 = arith.cmpi sge, %7, %14 : vector<48x48xi32>
    %16 = arith.andi %13, %15 : vector<48x48xi1>
    %c17_i32 = arith.constant 17 : i32
    %17 = vector.broadcast %c17_i32 : i32 to vector<48x48xi32>
    %18 = arith.cmpi slt, %7, %17 : vector<48x48xi32>
    %19 = arith.andi %16, %18 : vector<48x48xi1>
    %20 = arith.ori %8, %19 : vector<48x48xi1>
    %c24_i32_8 = arith.constant 24 : i32
    %21 = vector.broadcast %c24_i32_8 : i32 to vector<48x48xi32>
    %22 = arith.cmpi sge, %6, %21 : vector<48x48xi32>
    %c48_i32 = arith.constant 48 : i32
    %23 = vector.broadcast %c48_i32 : i32 to vector<48x48xi32>
    %24 = arith.cmpi slt, %6, %23 : vector<48x48xi32>
    %25 = arith.andi %22, %24 : vector<48x48xi1>
    %c24_i32_9 = arith.constant 24 : i32
    %26 = vector.broadcast %c24_i32_9 : i32 to vector<48x48xi32>
    %27 = arith.cmpi sge, %7, %26 : vector<48x48xi32>
    %28 = arith.andi %25, %27 : vector<48x48xi1>
    %c41_i32 = arith.constant 41 : i32
    %29 = vector.broadcast %c41_i32 : i32 to vector<48x48xi32>
    %30 = arith.cmpi slt, %7, %29 : vector<48x48xi32>
    %31 = arith.andi %28, %30 : vector<48x48xi1>
    %32 = arith.ori %20, %31 : vector<48x48xi1>
    %cst_10 = arith.constant 0.000000e+00 : f32
    %cst_11 = arith.constant -1.000000e+30 : f32
    %33 = vector.broadcast %cst_10 : f32 to vector<48x48xf32>
    %34 = vector.broadcast %cst_11 : f32 to vector<48x48xf32>
    %35 = arith.select %32, %33, %34 : vector<48x48xi1>, vector<48x48xf32>
    %36 = tpu.concatenate %35, %35, %35, %35 in 0 : vector<48x48xf32>, vector<48x48xf32>, vector<48x48xf32>, vector<48x48xf32> -> vector<192x48xf32>
    %37 = vector.extract_strided_slice %0 {offsets = [0, 0], sizes = [1, 64], strides = [1, 1]} : vector<24x192xf32> to vector<1x64xf32>
    %38 = vector.extract_strided_slice %0 {offsets = [1, 0], sizes = [1, 64], strides = [1, 1]} : vector<24x192xf32> to vector<1x64xf32>
    %cst_12 = arith.constant dense<0.000000e+00> : vector<48xf32>
    %39 = vector.multi_reduction <add>, %5, %cst_12 [1] : vector<48x64xf32> to vector<48xf32>
    %40 = vector.shape_cast %39 : vector<48xf32> to vector<48x1xf32>
    %cst_13 = arith.constant 6.400000e+01 : f32
    %41 = vector.broadcast %cst_13 : f32 to vector<48x1xf32>
    %42 = arith.divf %40, %41 : vector<48x1xf32>
    %43 = vector.broadcast %42 : vector<48x1xf32> to vector<48x64xf32>
    %44 = arith.subf %5, %43 : vector<48x64xf32>
    %45 = arith.mulf %44, %44 : vector<48x64xf32>
    %cst_14 = arith.constant dense<0.000000e+00> : vector<48xf32>
    %46 = vector.multi_reduction <add>, %45, %cst_14 [1] : vector<48x64xf32> to vector<48xf32>
    %47 = vector.shape_cast %46 : vector<48xf32> to vector<48x1xf32>
    %cst_15 = arith.constant 6.400000e+01 : f32
    %48 = vector.broadcast %cst_15 : f32 to vector<48x1xf32>
    %49 = arith.divf %47, %48 : vector<48x1xf32>
    %50 = vector.broadcast %42 : vector<48x1xf32> to vector<48x64xf32>
    %51 = arith.subf %5, %50 : vector<48x64xf32>
    %cst_16 = arith.constant 9.99999997E-7 : f32
    %52 = vector.broadcast %cst_16 : f32 to vector<48x1xf32>
    %53 = arith.addf %49, %52 : vector<48x1xf32>
    %54 = math.rsqrt %53 : vector<48x1xf32>
    %55 = vector.broadcast %54 : vector<48x1xf32> to vector<48x64xf32>
    %56 = arith.mulf %51, %55 : vector<48x64xf32>
    %57 = vector.broadcast %37 : vector<1x64xf32> to vector<48x64xf32>
    %58 = arith.mulf %56, %57 : vector<48x64xf32>
    %59 = vector.broadcast %38 : vector<1x64xf32> to vector<48x64xf32>
    %60 = arith.addf %58, %59 : vector<48x64xf32>
    %61 = arith.truncf %60 : vector<48x64xf32> to vector<48x64xbf16>
    %c48 = arith.constant 48 : index
    %c0_17 = arith.constant 0 : index
    %62 = vector.load %arg3[%c48, %c0_17] : memref<784x192xbf16, #tpu.memory_space<vmem>>, vector<64x192xbf16>
    %cst_18 = arith.constant dense<0.000000e+00> : vector<48x192xf32>
    %63 = tpu.matmul %61, %62, %cst_18 {dimension_numbers = #tpu.dot_dimension_numbers<[1], [0], [0], [1], [0, 0, 1, 1], [], []>} : vector<48x64xbf16>, vector<64x192xbf16>, vector<48x192xf32> -> vector<48x192xf32>
    %64 = vector.extract_strided_slice %0 {offsets = [2, 0], sizes = [1, 192], strides = [1, 1]} : vector<24x192xf32> to vector<1x192xf32>
    %65 = vector.broadcast %64 : vector<1x192xf32> to vector<48x192xf32>
    %66 = arith.addf %63, %65 : vector<48x192xf32>
    %67 = vector.extract_strided_slice %66 {offsets = [0, 0], sizes = [48, 64], strides = [1, 1]} : vector<48x192xf32> to vector<48x64xf32>
    %cst_19 = arith.constant 2.500000e-01 : f32
    %68 = vector.broadcast %cst_19 : f32 to vector<48x64xf32>
    %69 = arith.mulf %67, %68 : vector<48x64xf32>
    %70 = arith.truncf %69 : vector<48x64xf32> to vector<48x64xbf16>
    %71 = vector.extract_strided_slice %66 {offsets = [0, 64], sizes = [48, 64], strides = [1, 1]} : vector<48x192xf32> to vector<48x64xf32>
    %72 = arith.truncf %71 : vector<48x64xf32> to vector<48x64xbf16>
    %73 = vector.extract_strided_slice %66 {offsets = [0, 128], sizes = [48, 64], strides = [1, 1]} : vector<48x192xf32> to vector<48x64xf32>
    %74 = arith.truncf %73 : vector<48x64xf32> to vector<48x64xbf16>
    %75 = vector.extract_strided_slice %70 {offsets = [0, 0], sizes = [48, 16], strides = [1, 1]} : vector<48x64xbf16> to vector<48x16xbf16>
    %76 = vector.extract_strided_slice %72 {offsets = [0, 0], sizes = [48, 16], strides = [1, 1]} : vector<48x64xbf16> to vector<48x16xbf16>
    %cst_20 = arith.constant dense<0.000000e+00> : vector<48x48xf32>
    %77 = tpu.matmul %75, %76, %cst_20 {dimension_numbers = #tpu.dot_dimension_numbers<[1], [1], [0], [0], [0, 0, 1, 0], [], []>} : vector<48x16xbf16>, vector<48x16xbf16>, vector<48x48xf32> -> vector<48x48xf32>
    %78 = vector.extract_strided_slice %70 {offsets = [0, 16], sizes = [48, 16], strides = [1, 1]} : vector<48x64xbf16> to vector<48x16xbf16>
    %79 = vector.extract_strided_slice %72 {offsets = [0, 16], sizes = [48, 16], strides = [1, 1]} : vector<48x64xbf16> to vector<48x16xbf16>
    %cst_21 = arith.constant dense<0.000000e+00> : vector<48x48xf32>
    %80 = tpu.matmul %78, %79, %cst_21 {dimension_numbers = #tpu.dot_dimension_numbers<[1], [1], [0], [0], [0, 0, 1, 0], [], []>} : vector<48x16xbf16>, vector<48x16xbf16>, vector<48x48xf32> -> vector<48x48xf32>
    %81 = vector.extract_strided_slice %70 {offsets = [0, 32], sizes = [48, 16], strides = [1, 1]} : vector<48x64xbf16> to vector<48x16xbf16>
    %82 = vector.extract_strided_slice %72 {offsets = [0, 32], sizes = [48, 16], strides = [1, 1]} : vector<48x64xbf16> to vector<48x16xbf16>
    %cst_22 = arith.constant dense<0.000000e+00> : vector<48x48xf32>
    %83 = tpu.matmul %81, %82, %cst_22 {dimension_numbers = #tpu.dot_dimension_numbers<[1], [1], [0], [0], [0, 0, 1, 0], [], []>} : vector<48x16xbf16>, vector<48x16xbf16>, vector<48x48xf32> -> vector<48x48xf32>
    %84 = vector.extract_strided_slice %70 {offsets = [0, 48], sizes = [48, 16], strides = [1, 1]} : vector<48x64xbf16> to vector<48x16xbf16>
    %85 = vector.extract_strided_slice %72 {offsets = [0, 48], sizes = [48, 16], strides = [1, 1]} : vector<48x64xbf16> to vector<48x16xbf16>
    %cst_23 = arith.constant dense<0.000000e+00> : vector<48x48xf32>
    %86 = tpu.matmul %84, %85, %cst_23 {dimension_numbers = #tpu.dot_dimension_numbers<[1], [1], [0], [0], [0, 0, 1, 0], [], []>} : vector<48x16xbf16>, vector<48x16xbf16>, vector<48x48xf32> -> vector<48x48xf32>
    %87 = tpu.concatenate %77, %80, %83, %86 in 0 : vector<48x48xf32>, vector<48x48xf32>, vector<48x48xf32>, vector<48x48xf32> -> vector<192x48xf32>
    %88 = arith.addf %87, %36 : vector<192x48xf32>
    %cst_24 = arith.constant dense<0xFF800000> : vector<192xf32>
    %89 = vector.multi_reduction <maximumf>, %88, %cst_24 [1] : vector<192x48xf32> to vector<192xf32>
    %90 = vector.shape_cast %89 : vector<192xf32> to vector<192x1xf32>
    %91 = vector.broadcast %90 : vector<192x1xf32> to vector<192x48xf32>
    %92 = arith.subf %88, %91 : vector<192x48xf32>
    %93 = math.exp %92 : vector<192x48xf32>
    %cst_25 = arith.constant dense<0.000000e+00> : vector<192xf32>
    %94 = vector.multi_reduction <add>, %93, %cst_25 [1] : vector<192x48xf32> to vector<192xf32>
    %95 = vector.shape_cast %94 : vector<192xf32> to vector<192x1xf32>
    %96 = tpu.reciprocal %95 {approx = true} : vector<192x1xf32> -> vector<192x1xf32>
    %97 = vector.broadcast %96 : vector<192x1xf32> to vector<192x48xf32>
    %98 = arith.mulf %93, %97 : vector<192x48xf32>
    %99 = arith.truncf %98 : vector<192x48xf32> to vector<192x48xbf16>
    %100 = vector.extract_strided_slice %99 {offsets = [0, 0], sizes = [48, 48], strides = [1, 1]} : vector<192x48xbf16> to vector<48x48xbf16>
    %101 = vector.extract_strided_slice %74 {offsets = [0, 0], sizes = [48, 16], strides = [1, 1]} : vector<48x64xbf16> to vector<48x16xbf16>
    %cst_26 = arith.constant dense<0.000000e+00> : vector<48x16xf32>
    %102 = tpu.matmul %100, %101, %cst_26 {dimension_numbers = #tpu.dot_dimension_numbers<[1], [0], [0], [1], [0, 0, 1, 1], [], []>} : vector<48x48xbf16>, vector<48x16xbf16>, vector<48x16xf32> -> vector<48x16xf32>
    %103 = vector.extract_strided_slice %99 {offsets = [48, 0], sizes = [48, 48], strides = [1, 1]} : vector<192x48xbf16> to vector<48x48xbf16>
    %104 = vector.extract_strided_slice %74 {offsets = [0, 16], sizes = [48, 16], strides = [1, 1]} : vector<48x64xbf16> to vector<48x16xbf16>
    %cst_27 = arith.constant dense<0.000000e+00> : vector<48x16xf32>
    %105 = tpu.matmul %103, %104, %cst_27 {dimension_numbers = #tpu.dot_dimension_numbers<[1], [0], [0], [1], [0, 0, 1, 1], [], []>} : vector<48x48xbf16>, vector<48x16xbf16>, vector<48x16xf32> -> vector<48x16xf32>
    %106 = vector.extract_strided_slice %99 {offsets = [96, 0], sizes = [48, 48], strides = [1, 1]} : vector<192x48xbf16> to vector<48x48xbf16>
    %107 = vector.extract_strided_slice %74 {offsets = [0, 32], sizes = [48, 16], strides = [1, 1]} : vector<48x64xbf16> to vector<48x16xbf16>
    %cst_28 = arith.constant dense<0.000000e+00> : vector<48x16xf32>
    %108 = tpu.matmul %106, %107, %cst_28 {dimension_numbers = #tpu.dot_dimension_numbers<[1], [0], [0], [1], [0, 0, 1, 1], [], []>} : vector<48x48xbf16>, vector<48x16xbf16>, vector<48x16xf32> -> vector<48x16xf32>
    %109 = vector.extract_strided_slice %99 {offsets = [144, 0], sizes = [48, 48], strides = [1, 1]} : vector<192x48xbf16> to vector<48x48xbf16>
    %110 = vector.extract_strided_slice %74 {offsets = [0, 48], sizes = [48, 16], strides = [1, 1]} : vector<48x64xbf16> to vector<48x16xbf16>
    %cst_29 = arith.constant dense<0.000000e+00> : vector<48x16xf32>
    %111 = tpu.matmul %109, %110, %cst_29 {dimension_numbers = #tpu.dot_dimension_numbers<[1], [0], [0], [1], [0, 0, 1, 1], [], []>} : vector<48x48xbf16>, vector<48x16xbf16>, vector<48x16xf32> -> vector<48x16xf32>
    %112 = tpu.concatenate %102, %105, %108, %111 in 1 : vector<48x16xf32>, vector<48x16xf32>, vector<48x16xf32>, vector<48x16xf32> -> vector<48x64xf32>
    %113 = arith.truncf %112 : vector<48x64xf32> to vector<48x64xbf16>
    %c112 = arith.constant 112 : index
    %c0_30 = arith.constant 0 : index
    %114 = vector.load %arg3[%c112, %c0_30] : memref<784x192xbf16, #tpu.memory_space<vmem>>, vector<64x64xbf16>
    %cst_31 = arith.constant dense<0.000000e+00> : vector<48x64xf32>
    %115 = tpu.matmul %113, %114, %cst_31 {dimension_numbers = #tpu.dot_dimension_numbers<[1], [0], [0], [1], [0, 0, 1, 1], [], []>} : vector<48x64xbf16>, vector<64x64xbf16>, vector<48x64xf32> -> vector<48x64xf32>
    %116 = arith.addf %5, %115 : vector<48x64xf32>
    %117 = vector.extract_strided_slice %0 {offsets = [3, 0], sizes = [1, 64], strides = [1, 1]} : vector<24x192xf32> to vector<1x64xf32>
    %118 = vector.broadcast %117 : vector<1x64xf32> to vector<48x64xf32>
    %119 = arith.addf %116, %118 : vector<48x64xf32>
    %120 = vector.extract_strided_slice %0 {offsets = [4, 0], sizes = [1, 64], strides = [1, 1]} : vector<24x192xf32> to vector<1x64xf32>
    %121 = vector.extract_strided_slice %0 {offsets = [5, 0], sizes = [1, 64], strides = [1, 1]} : vector<24x192xf32> to vector<1x64xf32>
    %cst_32 = arith.constant dense<0.000000e+00> : vector<48xf32>
    %122 = vector.multi_reduction <add>, %119, %cst_32 [1] : vector<48x64xf32> to vector<48xf32>
    %123 = vector.shape_cast %122 : vector<48xf32> to vector<48x1xf32>
    %cst_33 = arith.constant 6.400000e+01 : f32
    %124 = vector.broadcast %cst_33 : f32 to vector<48x1xf32>
    %125 = arith.divf %123, %124 : vector<48x1xf32>
    %126 = vector.broadcast %125 : vector<48x1xf32> to vector<48x64xf32>
    %127 = arith.subf %119, %126 : vector<48x64xf32>
    %128 = arith.mulf %127, %127 : vector<48x64xf32>
    %cst_34 = arith.constant dense<0.000000e+00> : vector<48xf32>
    %129 = vector.multi_reduction <add>, %128, %cst_34 [1] : vector<48x64xf32> to vector<48xf32>
    %130 = vector.shape_cast %129 : vector<48xf32> to vector<48x1xf32>
    %cst_35 = arith.constant 6.400000e+01 : f32
    %131 = vector.broadcast %cst_35 : f32 to vector<48x1xf32>
    %132 = arith.divf %130, %131 : vector<48x1xf32>
    %133 = vector.broadcast %125 : vector<48x1xf32> to vector<48x64xf32>
    %134 = arith.subf %119, %133 : vector<48x64xf32>
    %cst_36 = arith.constant 9.99999997E-7 : f32
    %135 = vector.broadcast %cst_36 : f32 to vector<48x1xf32>
    %136 = arith.addf %132, %135 : vector<48x1xf32>
    %137 = math.rsqrt %136 : vector<48x1xf32>
    %138 = vector.broadcast %137 : vector<48x1xf32> to vector<48x64xf32>
    %139 = arith.mulf %134, %138 : vector<48x64xf32>
    %140 = vector.broadcast %120 : vector<1x64xf32> to vector<48x64xf32>
    %141 = arith.mulf %139, %140 : vector<48x64xf32>
    %142 = vector.broadcast %121 : vector<1x64xf32> to vector<48x64xf32>
    %143 = arith.addf %141, %142 : vector<48x64xf32>
    %144 = arith.truncf %143 : vector<48x64xf32> to vector<48x64xbf16>
    %c176 = arith.constant 176 : index
    %c0_37 = arith.constant 0 : index
    %145 = vector.load %arg3[%c176, %c0_37] : memref<784x192xbf16, #tpu.memory_space<vmem>>, vector<64x128xbf16>
    %cst_38 = arith.constant dense<0.000000e+00> : vector<48x128xf32>
    %146 = tpu.matmul %144, %145, %cst_38 {dimension_numbers = #tpu.dot_dimension_numbers<[1], [0], [0], [1], [0, 0, 1, 1], [], []>} : vector<48x64xbf16>, vector<64x128xbf16>, vector<48x128xf32> -> vector<48x128xf32>
    %147 = vector.extract_strided_slice %0 {offsets = [6, 0], sizes = [1, 128], strides = [1, 1]} : vector<24x192xf32> to vector<1x128xf32>
    %148 = vector.broadcast %147 : vector<1x128xf32> to vector<48x128xf32>
    %149 = arith.addf %146, %148 : vector<48x128xf32>
    %150 = arith.mulf %149, %149 : vector<48x128xf32>
    %151 = arith.mulf %149, %150 : vector<48x128xf32>
    %cst_39 = arith.constant 4.471500e-02 : f32
    %152 = vector.broadcast %cst_39 : f32 to vector<48x128xf32>
    %153 = arith.mulf %152, %151 : vector<48x128xf32>
    %154 = arith.addf %149, %153 : vector<48x128xf32>
    %cst_40 = arith.constant 0.797884583 : f32
    %155 = vector.broadcast %cst_40 : f32 to vector<48x128xf32>
    %156 = arith.mulf %155, %154 : vector<48x128xf32>
    %157 = math.tanh %156 : vector<48x128xf32>
    %cst_41 = arith.constant 1.000000e+00 : f32
    %158 = vector.broadcast %cst_41 : f32 to vector<48x128xf32>
    %159 = arith.addf %158, %157 : vector<48x128xf32>
    %cst_42 = arith.constant 5.000000e-01 : f32
    %160 = vector.broadcast %cst_42 : f32 to vector<48x128xf32>
    %161 = arith.mulf %160, %159 : vector<48x128xf32>
    %162 = arith.mulf %149, %161 : vector<48x128xf32>
    %163 = arith.truncf %162 : vector<48x128xf32> to vector<48x128xbf16>
    %c240 = arith.constant 240 : index
    %c0_43 = arith.constant 0 : index
    %164 = vector.load %arg3[%c240, %c0_43] : memref<784x192xbf16, #tpu.memory_space<vmem>>, vector<128x64xbf16>
    %cst_44 = arith.constant dense<0.000000e+00> : vector<48x64xf32>
    %165 = tpu.matmul %163, %164, %cst_44 {dimension_numbers = #tpu.dot_dimension_numbers<[1], [0], [0], [1], [0, 0, 1, 1], [], []>} : vector<48x128xbf16>, vector<128x64xbf16>, vector<48x64xf32> -> vector<48x64xf32>
    %166 = arith.addf %119, %165 : vector<48x64xf32>
    %167 = vector.extract_strided_slice %0 {offsets = [7, 0], sizes = [1, 64], strides = [1, 1]} : vector<24x192xf32> to vector<1x64xf32>
    %168 = vector.broadcast %167 : vector<1x64xf32> to vector<48x64xf32>
    %169 = arith.addf %166, %168 : vector<48x64xf32>
    %170 = vector.extract_strided_slice %0 {offsets = [8, 0], sizes = [1, 64], strides = [1, 1]} : vector<24x192xf32> to vector<1x64xf32>
    %171 = vector.extract_strided_slice %0 {offsets = [9, 0], sizes = [1, 64], strides = [1, 1]} : vector<24x192xf32> to vector<1x64xf32>
    %cst_45 = arith.constant dense<0.000000e+00> : vector<48xf32>
    %172 = vector.multi_reduction <add>, %169, %cst_45 [1] : vector<48x64xf32> to vector<48xf32>
    %173 = vector.shape_cast %172 : vector<48xf32> to vector<48x1xf32>
    %cst_46 = arith.constant 6.400000e+01 : f32
    %174 = vector.broadcast %cst_46 : f32 to vector<48x1xf32>
    %175 = arith.divf %173, %174 : vector<48x1xf32>
    %176 = vector.broadcast %175 : vector<48x1xf32> to vector<48x64xf32>
    %177 = arith.subf %169, %176 : vector<48x64xf32>
    %178 = arith.mulf %177, %177 : vector<48x64xf32>
    %cst_47 = arith.constant dense<0.000000e+00> : vector<48xf32>
    %179 = vector.multi_reduction <add>, %178, %cst_47 [1] : vector<48x64xf32> to vector<48xf32>
    %180 = vector.shape_cast %179 : vector<48xf32> to vector<48x1xf32>
    %cst_48 = arith.constant 6.400000e+01 : f32
    %181 = vector.broadcast %cst_48 : f32 to vector<48x1xf32>
    %182 = arith.divf %180, %181 : vector<48x1xf32>
    %183 = vector.broadcast %175 : vector<48x1xf32> to vector<48x64xf32>
    %184 = arith.subf %169, %183 : vector<48x64xf32>
    %cst_49 = arith.constant 9.99999997E-7 : f32
    %185 = vector.broadcast %cst_49 : f32 to vector<48x1xf32>
    %186 = arith.addf %182, %185 : vector<48x1xf32>
    %187 = math.rsqrt %186 : vector<48x1xf32>
    %188 = vector.broadcast %187 : vector<48x1xf32> to vector<48x64xf32>
    %189 = arith.mulf %184, %188 : vector<48x64xf32>
    %190 = vector.broadcast %170 : vector<1x64xf32> to vector<48x64xf32>
    %191 = arith.mulf %189, %190 : vector<48x64xf32>
    %192 = vector.broadcast %171 : vector<1x64xf32> to vector<48x64xf32>
    %193 = arith.addf %191, %192 : vector<48x64xf32>
    %194 = arith.truncf %193 : vector<48x64xf32> to vector<48x64xbf16>
    %c368 = arith.constant 368 : index
    %c0_50 = arith.constant 0 : index
    %195 = vector.load %arg3[%c368, %c0_50] : memref<784x192xbf16, #tpu.memory_space<vmem>>, vector<64x192xbf16>
    %cst_51 = arith.constant dense<0.000000e+00> : vector<48x192xf32>
    %196 = tpu.matmul %194, %195, %cst_51 {dimension_numbers = #tpu.dot_dimension_numbers<[1], [0], [0], [1], [0, 0, 1, 1], [], []>} : vector<48x64xbf16>, vector<64x192xbf16>, vector<48x192xf32> -> vector<48x192xf32>
    %197 = vector.extract_strided_slice %0 {offsets = [10, 0], sizes = [1, 192], strides = [1, 1]} : vector<24x192xf32> to vector<1x192xf32>
    %198 = vector.broadcast %197 : vector<1x192xf32> to vector<48x192xf32>
    %199 = arith.addf %196, %198 : vector<48x192xf32>
    %200 = vector.extract_strided_slice %199 {offsets = [0, 0], sizes = [48, 64], strides = [1, 1]} : vector<48x192xf32> to vector<48x64xf32>
    %cst_52 = arith.constant 2.500000e-01 : f32
    %201 = vector.broadcast %cst_52 : f32 to vector<48x64xf32>
    %202 = arith.mulf %200, %201 : vector<48x64xf32>
    %203 = arith.truncf %202 : vector<48x64xf32> to vector<48x64xbf16>
    %204 = vector.extract_strided_slice %199 {offsets = [0, 64], sizes = [48, 64], strides = [1, 1]} : vector<48x192xf32> to vector<48x64xf32>
    %205 = arith.truncf %204 : vector<48x64xf32> to vector<48x64xbf16>
    %206 = vector.extract_strided_slice %199 {offsets = [0, 128], sizes = [48, 64], strides = [1, 1]} : vector<48x192xf32> to vector<48x64xf32>
    %207 = arith.truncf %206 : vector<48x64xf32> to vector<48x64xbf16>
    %208 = vector.extract_strided_slice %203 {offsets = [0, 0], sizes = [48, 16], strides = [1, 1]} : vector<48x64xbf16> to vector<48x16xbf16>
    %209 = vector.extract_strided_slice %205 {offsets = [0, 0], sizes = [48, 16], strides = [1, 1]} : vector<48x64xbf16> to vector<48x16xbf16>
    %cst_53 = arith.constant dense<0.000000e+00> : vector<48x48xf32>
    %210 = tpu.matmul %208, %209, %cst_53 {dimension_numbers = #tpu.dot_dimension_numbers<[1], [1], [0], [0], [0, 0, 1, 0], [], []>} : vector<48x16xbf16>, vector<48x16xbf16>, vector<48x48xf32> -> vector<48x48xf32>
    %211 = vector.extract_strided_slice %203 {offsets = [0, 16], sizes = [48, 16], strides = [1, 1]} : vector<48x64xbf16> to vector<48x16xbf16>
    %212 = vector.extract_strided_slice %205 {offsets = [0, 16], sizes = [48, 16], strides = [1, 1]} : vector<48x64xbf16> to vector<48x16xbf16>
    %cst_54 = arith.constant dense<0.000000e+00> : vector<48x48xf32>
    %213 = tpu.matmul %211, %212, %cst_54 {dimension_numbers = #tpu.dot_dimension_numbers<[1], [1], [0], [0], [0, 0, 1, 0], [], []>} : vector<48x16xbf16>, vector<48x16xbf16>, vector<48x48xf32> -> vector<48x48xf32>
    %214 = vector.extract_strided_slice %203 {offsets = [0, 32], sizes = [48, 16], strides = [1, 1]} : vector<48x64xbf16> to vector<48x16xbf16>
    %215 = vector.extract_strided_slice %205 {offsets = [0, 32], sizes = [48, 16], strides = [1, 1]} : vector<48x64xbf16> to vector<48x16xbf16>
    %cst_55 = arith.constant dense<0.000000e+00> : vector<48x48xf32>
    %216 = tpu.matmul %214, %215, %cst_55 {dimension_numbers = #tpu.dot_dimension_numbers<[1], [1], [0], [0], [0, 0, 1, 0], [], []>} : vector<48x16xbf16>, vector<48x16xbf16>, vector<48x48xf32> -> vector<48x48xf32>
    %217 = vector.extract_strided_slice %203 {offsets = [0, 48], sizes = [48, 16], strides = [1, 1]} : vector<48x64xbf16> to vector<48x16xbf16>
    %218 = vector.extract_strided_slice %205 {offsets = [0, 48], sizes = [48, 16], strides = [1, 1]} : vector<48x64xbf16> to vector<48x16xbf16>
    %cst_56 = arith.constant dense<0.000000e+00> : vector<48x48xf32>
    %219 = tpu.matmul %217, %218, %cst_56 {dimension_numbers = #tpu.dot_dimension_numbers<[1], [1], [0], [0], [0, 0, 1, 0], [], []>} : vector<48x16xbf16>, vector<48x16xbf16>, vector<48x48xf32> -> vector<48x48xf32>
    %220 = tpu.concatenate %210, %213, %216, %219 in 0 : vector<48x48xf32>, vector<48x48xf32>, vector<48x48xf32>, vector<48x48xf32> -> vector<192x48xf32>
    %221 = arith.addf %220, %36 : vector<192x48xf32>
    %cst_57 = arith.constant dense<0xFF800000> : vector<192xf32>
    %222 = vector.multi_reduction <maximumf>, %221, %cst_57 [1] : vector<192x48xf32> to vector<192xf32>
    %223 = vector.shape_cast %222 : vector<192xf32> to vector<192x1xf32>
    %224 = vector.broadcast %223 : vector<192x1xf32> to vector<192x48xf32>
    %225 = arith.subf %221, %224 : vector<192x48xf32>
    %226 = math.exp %225 : vector<192x48xf32>
    %cst_58 = arith.constant dense<0.000000e+00> : vector<192xf32>
    %227 = vector.multi_reduction <add>, %226, %cst_58 [1] : vector<192x48xf32> to vector<192xf32>
    %228 = vector.shape_cast %227 : vector<192xf32> to vector<192x1xf32>
    %229 = tpu.reciprocal %228 {approx = true} : vector<192x1xf32> -> vector<192x1xf32>
    %230 = vector.broadcast %229 : vector<192x1xf32> to vector<192x48xf32>
    %231 = arith.mulf %226, %230 : vector<192x48xf32>
    %232 = arith.truncf %231 : vector<192x48xf32> to vector<192x48xbf16>
    %233 = vector.extract_strided_slice %232 {offsets = [0, 0], sizes = [48, 48], strides = [1, 1]} : vector<192x48xbf16> to vector<48x48xbf16>
    %234 = vector.extract_strided_slice %207 {offsets = [0, 0], sizes = [48, 16], strides = [1, 1]} : vector<48x64xbf16> to vector<48x16xbf16>
    %cst_59 = arith.constant dense<0.000000e+00> : vector<48x16xf32>
    %235 = tpu.matmul %233, %234, %cst_59 {dimension_numbers = #tpu.dot_dimension_numbers<[1], [0], [0], [1], [0, 0, 1, 1], [], []>} : vector<48x48xbf16>, vector<48x16xbf16>, vector<48x16xf32> -> vector<48x16xf32>
    %236 = vector.extract_strided_slice %232 {offsets = [48, 0], sizes = [48, 48], strides = [1, 1]} : vector<192x48xbf16> to vector<48x48xbf16>
    %237 = vector.extract_strided_slice %207 {offsets = [0, 16], sizes = [48, 16], strides = [1, 1]} : vector<48x64xbf16> to vector<48x16xbf16>
    %cst_60 = arith.constant dense<0.000000e+00> : vector<48x16xf32>
    %238 = tpu.matmul %236, %237, %cst_60 {dimension_numbers = #tpu.dot_dimension_numbers<[1], [0], [0], [1], [0, 0, 1, 1], [], []>} : vector<48x48xbf16>, vector<48x16xbf16>, vector<48x16xf32> -> vector<48x16xf32>
    %239 = vector.extract_strided_slice %232 {offsets = [96, 0], sizes = [48, 48], strides = [1, 1]} : vector<192x48xbf16> to vector<48x48xbf16>
    %240 = vector.extract_strided_slice %207 {offsets = [0, 32], sizes = [48, 16], strides = [1, 1]} : vector<48x64xbf16> to vector<48x16xbf16>
    %cst_61 = arith.constant dense<0.000000e+00> : vector<48x16xf32>
    %241 = tpu.matmul %239, %240, %cst_61 {dimension_numbers = #tpu.dot_dimension_numbers<[1], [0], [0], [1], [0, 0, 1, 1], [], []>} : vector<48x48xbf16>, vector<48x16xbf16>, vector<48x16xf32> -> vector<48x16xf32>
    %242 = vector.extract_strided_slice %232 {offsets = [144, 0], sizes = [48, 48], strides = [1, 1]} : vector<192x48xbf16> to vector<48x48xbf16>
    %243 = vector.extract_strided_slice %207 {offsets = [0, 48], sizes = [48, 16], strides = [1, 1]} : vector<48x64xbf16> to vector<48x16xbf16>
    %cst_62 = arith.constant dense<0.000000e+00> : vector<48x16xf32>
    %244 = tpu.matmul %242, %243, %cst_62 {dimension_numbers = #tpu.dot_dimension_numbers<[1], [0], [0], [1], [0, 0, 1, 1], [], []>} : vector<48x48xbf16>, vector<48x16xbf16>, vector<48x16xf32> -> vector<48x16xf32>
    %245 = tpu.concatenate %235, %238, %241, %244 in 1 : vector<48x16xf32>, vector<48x16xf32>, vector<48x16xf32>, vector<48x16xf32> -> vector<48x64xf32>
    %246 = arith.truncf %245 : vector<48x64xf32> to vector<48x64xbf16>
    %c432 = arith.constant 432 : index
    %c0_63 = arith.constant 0 : index
    %247 = vector.load %arg3[%c432, %c0_63] : memref<784x192xbf16, #tpu.memory_space<vmem>>, vector<64x64xbf16>
    %cst_64 = arith.constant dense<0.000000e+00> : vector<48x64xf32>
    %248 = tpu.matmul %246, %247, %cst_64 {dimension_numbers = #tpu.dot_dimension_numbers<[1], [0], [0], [1], [0, 0, 1, 1], [], []>} : vector<48x64xbf16>, vector<64x64xbf16>, vector<48x64xf32> -> vector<48x64xf32>
    %249 = arith.addf %169, %248 : vector<48x64xf32>
    %250 = vector.extract_strided_slice %0 {offsets = [11, 0], sizes = [1, 64], strides = [1, 1]} : vector<24x192xf32> to vector<1x64xf32>
    %251 = vector.broadcast %250 : vector<1x64xf32> to vector<48x64xf32>
    %252 = arith.addf %249, %251 : vector<48x64xf32>
    %253 = vector.extract_strided_slice %0 {offsets = [12, 0], sizes = [1, 64], strides = [1, 1]} : vector<24x192xf32> to vector<1x64xf32>
    %254 = vector.extract_strided_slice %0 {offsets = [13, 0], sizes = [1, 64], strides = [1, 1]} : vector<24x192xf32> to vector<1x64xf32>
    %cst_65 = arith.constant dense<0.000000e+00> : vector<48xf32>
    %255 = vector.multi_reduction <add>, %252, %cst_65 [1] : vector<48x64xf32> to vector<48xf32>
    %256 = vector.shape_cast %255 : vector<48xf32> to vector<48x1xf32>
    %cst_66 = arith.constant 6.400000e+01 : f32
    %257 = vector.broadcast %cst_66 : f32 to vector<48x1xf32>
    %258 = arith.divf %256, %257 : vector<48x1xf32>
    %259 = vector.broadcast %258 : vector<48x1xf32> to vector<48x64xf32>
    %260 = arith.subf %252, %259 : vector<48x64xf32>
    %261 = arith.mulf %260, %260 : vector<48x64xf32>
    %cst_67 = arith.constant dense<0.000000e+00> : vector<48xf32>
    %262 = vector.multi_reduction <add>, %261, %cst_67 [1] : vector<48x64xf32> to vector<48xf32>
    %263 = vector.shape_cast %262 : vector<48xf32> to vector<48x1xf32>
    %cst_68 = arith.constant 6.400000e+01 : f32
    %264 = vector.broadcast %cst_68 : f32 to vector<48x1xf32>
    %265 = arith.divf %263, %264 : vector<48x1xf32>
    %266 = vector.broadcast %258 : vector<48x1xf32> to vector<48x64xf32>
    %267 = arith.subf %252, %266 : vector<48x64xf32>
    %cst_69 = arith.constant 9.99999997E-7 : f32
    %268 = vector.broadcast %cst_69 : f32 to vector<48x1xf32>
    %269 = arith.addf %265, %268 : vector<48x1xf32>
    %270 = math.rsqrt %269 : vector<48x1xf32>
    %271 = vector.broadcast %270 : vector<48x1xf32> to vector<48x64xf32>
    %272 = arith.mulf %267, %271 : vector<48x64xf32>
    %273 = vector.broadcast %253 : vector<1x64xf32> to vector<48x64xf32>
    %274 = arith.mulf %272, %273 : vector<48x64xf32>
    %275 = vector.broadcast %254 : vector<1x64xf32> to vector<48x64xf32>
    %276 = arith.addf %274, %275 : vector<48x64xf32>
    %277 = arith.truncf %276 : vector<48x64xf32> to vector<48x64xbf16>
    %c496 = arith.constant 496 : index
    %c0_70 = arith.constant 0 : index
    %278 = vector.load %arg3[%c496, %c0_70] : memref<784x192xbf16, #tpu.memory_space<vmem>>, vector<64x128xbf16>
    %cst_71 = arith.constant dense<0.000000e+00> : vector<48x128xf32>
    %279 = tpu.matmul %277, %278, %cst_71 {dimension_numbers = #tpu.dot_dimension_numbers<[1], [0], [0], [1], [0, 0, 1, 1], [], []>} : vector<48x64xbf16>, vector<64x128xbf16>, vector<48x128xf32> -> vector<48x128xf32>
    %280 = vector.extract_strided_slice %0 {offsets = [14, 0], sizes = [1, 128], strides = [1, 1]} : vector<24x192xf32> to vector<1x128xf32>
    %281 = vector.broadcast %280 : vector<1x128xf32> to vector<48x128xf32>
    %282 = arith.addf %279, %281 : vector<48x128xf32>
    %283 = arith.mulf %282, %282 : vector<48x128xf32>
    %284 = arith.mulf %282, %283 : vector<48x128xf32>
    %cst_72 = arith.constant 4.471500e-02 : f32
    %285 = vector.broadcast %cst_72 : f32 to vector<48x128xf32>
    %286 = arith.mulf %285, %284 : vector<48x128xf32>
    %287 = arith.addf %282, %286 : vector<48x128xf32>
    %cst_73 = arith.constant 0.797884583 : f32
    %288 = vector.broadcast %cst_73 : f32 to vector<48x128xf32>
    %289 = arith.mulf %288, %287 : vector<48x128xf32>
    %290 = math.tanh %289 : vector<48x128xf32>
    %cst_74 = arith.constant 1.000000e+00 : f32
    %291 = vector.broadcast %cst_74 : f32 to vector<48x128xf32>
    %292 = arith.addf %291, %290 : vector<48x128xf32>
    %cst_75 = arith.constant 5.000000e-01 : f32
    %293 = vector.broadcast %cst_75 : f32 to vector<48x128xf32>
    %294 = arith.mulf %293, %292 : vector<48x128xf32>
    %295 = arith.mulf %282, %294 : vector<48x128xf32>
    %296 = arith.truncf %295 : vector<48x128xf32> to vector<48x128xbf16>
    %c560 = arith.constant 560 : index
    %c0_76 = arith.constant 0 : index
    %297 = vector.load %arg3[%c560, %c0_76] : memref<784x192xbf16, #tpu.memory_space<vmem>>, vector<128x64xbf16>
    %cst_77 = arith.constant dense<0.000000e+00> : vector<48x64xf32>
    %298 = tpu.matmul %296, %297, %cst_77 {dimension_numbers = #tpu.dot_dimension_numbers<[1], [0], [0], [1], [0, 0, 1, 1], [], []>} : vector<48x128xbf16>, vector<128x64xbf16>, vector<48x64xf32> -> vector<48x64xf32>
    %299 = arith.addf %252, %298 : vector<48x64xf32>
    %300 = vector.extract_strided_slice %0 {offsets = [15, 0], sizes = [1, 64], strides = [1, 1]} : vector<24x192xf32> to vector<1x64xf32>
    %301 = vector.broadcast %300 : vector<1x64xf32> to vector<48x64xf32>
    %302 = arith.addf %299, %301 : vector<48x64xf32>
    %303 = vector.extract_strided_slice %302 {offsets = [16, 0], sizes = [1, 64], strides = [1, 1]} : vector<48x64xf32> to vector<1x64xf32>
    %304 = vector.extract_strided_slice %302 {offsets = [40, 0], sizes = [1, 64], strides = [1, 1]} : vector<48x64xf32> to vector<1x64xf32>
    %305 = tpu.concatenate %303, %304 in 0 : vector<1x64xf32>, vector<1x64xf32> -> vector<2x64xf32>
    %306 = vector.extract_strided_slice %0 {offsets = [16, 0], sizes = [1, 64], strides = [1, 1]} : vector<24x192xf32> to vector<1x64xf32>
    %307 = vector.extract_strided_slice %0 {offsets = [17, 0], sizes = [1, 64], strides = [1, 1]} : vector<24x192xf32> to vector<1x64xf32>
    %cst_78 = arith.constant dense<0.000000e+00> : vector<2xf32>
    %308 = vector.multi_reduction <add>, %305, %cst_78 [1] : vector<2x64xf32> to vector<2xf32>
    %309 = vector.shape_cast %308 : vector<2xf32> to vector<2x1xf32>
    %cst_79 = arith.constant 6.400000e+01 : f32
    %310 = vector.broadcast %cst_79 : f32 to vector<2x1xf32>
    %311 = arith.divf %309, %310 : vector<2x1xf32>
    %312 = vector.broadcast %311 : vector<2x1xf32> to vector<2x64xf32>
    %313 = arith.subf %305, %312 : vector<2x64xf32>
    %314 = arith.mulf %313, %313 : vector<2x64xf32>
    %cst_80 = arith.constant dense<0.000000e+00> : vector<2xf32>
    %315 = vector.multi_reduction <add>, %314, %cst_80 [1] : vector<2x64xf32> to vector<2xf32>
    %316 = vector.shape_cast %315 : vector<2xf32> to vector<2x1xf32>
    %cst_81 = arith.constant 6.400000e+01 : f32
    %317 = vector.broadcast %cst_81 : f32 to vector<2x1xf32>
    %318 = arith.divf %316, %317 : vector<2x1xf32>
    %319 = vector.broadcast %311 : vector<2x1xf32> to vector<2x64xf32>
    %320 = arith.subf %305, %319 : vector<2x64xf32>
    %cst_82 = arith.constant 9.99999997E-7 : f32
    %321 = vector.broadcast %cst_82 : f32 to vector<2x1xf32>
    %322 = arith.addf %318, %321 : vector<2x1xf32>
    %323 = math.rsqrt %322 : vector<2x1xf32>
    %324 = vector.broadcast %323 : vector<2x1xf32> to vector<2x64xf32>
    %325 = arith.mulf %320, %324 : vector<2x64xf32>
    %326 = vector.broadcast %306 : vector<1x64xf32> to vector<2x64xf32>
    %327 = arith.mulf %325, %326 : vector<2x64xf32>
    %328 = vector.broadcast %307 : vector<1x64xf32> to vector<2x64xf32>
    %329 = arith.addf %327, %328 : vector<2x64xf32>
    %330 = arith.truncf %329 : vector<2x64xf32> to vector<2x64xbf16>
    %c688 = arith.constant 688 : index
    %c0_83 = arith.constant 0 : index
    %331 = vector.load %arg3[%c688, %c0_83] : memref<784x192xbf16, #tpu.memory_space<vmem>>, vector<64x32xbf16>
    %cst_84 = arith.constant dense<0.000000e+00> : vector<2x32xf32>
    %332 = tpu.matmul %330, %331, %cst_84 {dimension_numbers = #tpu.dot_dimension_numbers<[1], [0], [0], [1], [0, 0, 1, 1], [], []>} : vector<2x64xbf16>, vector<64x32xbf16>, vector<2x32xf32> -> vector<2x32xf32>
    %333 = vector.extract_strided_slice %0 {offsets = [18, 0], sizes = [1, 32], strides = [1, 1]} : vector<24x192xf32> to vector<1x32xf32>
    %334 = vector.broadcast %333 : vector<1x32xf32> to vector<2x32xf32>
    %335 = arith.addf %332, %334 : vector<2x32xf32>
    %cst_85 = arith.constant 0.000000e+00 : f32
    %336 = vector.broadcast %cst_85 : f32 to vector<2x32xf32>
    %337 = arith.maximumf %335, %336 : vector<2x32xf32>
    %338 = arith.truncf %337 : vector<2x32xf32> to vector<2x32xbf16>
    %c752 = arith.constant 752 : index
    %c0_86 = arith.constant 0 : index
    %339 = vector.load %arg3[%c752, %c0_86] : memref<784x192xbf16, #tpu.memory_space<vmem>>, vector<32x32xbf16>
    %cst_87 = arith.constant dense<0.000000e+00> : vector<2x32xf32>
    %340 = tpu.matmul %338, %339, %cst_87 {dimension_numbers = #tpu.dot_dimension_numbers<[1], [0], [0], [1], [0, 0, 1, 1], [], []>} : vector<2x32xbf16>, vector<32x32xbf16>, vector<2x32xf32> -> vector<2x32xf32>
    %341 = vector.extract_strided_slice %0 {offsets = [19, 0], sizes = [1, 32], strides = [1, 1]} : vector<24x192xf32> to vector<1x32xf32>
    %342 = vector.broadcast %341 : vector<1x32xf32> to vector<2x32xf32>
    %343 = arith.addf %340, %342 : vector<2x32xf32>
    %c0_88 = arith.constant 0 : index
    %c0_89 = arith.constant 0 : index
    %344 = vector.load %arg5[%c0_88, %c0_89] : memref<2x32xf32, #tpu.memory_space<vmem>>, vector<2x32xf32>
    tpu.vector_store %arg5[%c0_88, %c0_89], %343 {strides = array<i32>} : memref<2x32xf32, #tpu.memory_space<vmem>>, vector<2x32xf32>,
    return
  }
  func.func @transform_0(%arg0: i32) -> (i32, i32) {
    %c0_i32 = arith.constant 0 : i32
    %c0_i32_0 = arith.constant 0 : i32
    %c0_i32_1 = arith.constant 0 : i32
    return %c0_i32, %c0_i32_0 : i32, i32
  }
  func.func @transform_1(%arg0: i32) -> (i32, i32) {
    %c0_i32 = arith.constant 0 : i32
    %c0_i32_0 = arith.constant 0 : i32
    %c0_i32_1 = arith.constant 0 : i32
    return %c0_i32, %c0_i32_0 : i32, i32
  }
  func.func @transform_2(%arg0: i32) -> (i32, i32) {
    %c0_i32 = arith.constant 0 : i32
    %c0_i32_0 = arith.constant 0 : i32
    %c0_i32_1 = arith.constant 0 : i32
    return %c0_i32, %c0_i32_0 : i32, i32
  }
  func.func @transform_3(%arg0: i32) -> (i32, i32) {
    %c0_i32 = arith.constant 0 : i32
    %c0_i32_0 = arith.constant 0 : i32
    %c0_i32_1 = arith.constant 0 : i32
    return %c0_i32, %c0_i32_0 : i32, i32
  }
  func.func @transform_4(%arg0: i32) -> (i32, i32) {
    %c0_i32 = arith.constant 0 : i32
    %c0_i32_0 = arith.constant 0 : i32
    %c0_i32_1 = arith.constant 0 : i32
    return %c0_i32, %c0_i32_0 : i32, i32
  }
}

</mosaic_0001>

<bundles_post_ra>
// kernel: face_vit_forward.1
= control target key start
LH: loop header
LB: loop body
LE: loop exit
PB: predicated region body
PF: predicated region fallthrough
CT: control target
= control target key end

     0   :  { %v5204_v0 = vmov 0.0   ;;  %vm5205_vm0 = vmmov 0   ;;  %vm75_vm1 = vcmask 392192   ;;  %s6890_s0 = inlined_call_operand.vmem [shape: bf16[48,48], index: 0, kind: input, shape index: {}]   ;;  %s6891_s1 = inlined_call_operand.vmem [shape: f32[48,64], index: 1, kind: input, shape index: {}]   ;;  %s6892_s2 = inlined_call_operand.vmem [shape: bf16[784,192], index: 2, kind: input, shape index: {}]   ;;  %s6893_s3 = inlined_call_operand.vmem [shape: f32[24,192], index: 3, kind: input, shape index: {}]   ;;  %s6894_s4 = inlined_call_operand.hbm [shape: f32[2,32], index: 4, kind: output, shape index: {}]  }
   0x1   :  { %4280 = vmatprep.subr.bf16.mxu0 %v5204_v0  ;;  %v4844_v1 = vld [vmem:[%s6892_s2] ss:$8 sps:$4 sm:$0xff]   ;;  %4286 = vmatprep.mubr.msk.bf16.mxu0 %vm5205_vm0, %v5204_v0  ;;  %v4845_v2 = vld [vmem:[%s6892_s2 + $0x10] ss:$8 sps:$4 sm:$0xff]  }
   0x2   :  { %4281 = vmatpush3.bf16.msra.mxu0 %v4844_v1  ;;  %v4846_v3 = vld [vmem:[%s6892_s2 + $0x20] ss:$8 sps:$4 sm:$0xff]   ;;  %v4849_v6 = vld [vmem:[%s6890_s0 + $0x10] sm:$0xff]  }
   0x3   :  { %4282 = vmatprep.subr.bf16.mxu0 %v5204_v0  ;;  %v4847_v4 = vld [vmem:[%s6890_s0] sm:$0xff]   ;;  %v4848_v5 = vld [vmem:[%s6890_s0 + $0x8] sm:$0xff]  }
   0x6   :  { %4283 = vmatpush3.bf16.msra.mxu0 %v4845_v2 }
   0x7   :  { %4284 = vmatprep.subr.bf16.mxu0 %v5204_v0 }
   0xa   :  { %4285 = vmatpush3.bf16.msra.mxu0 %v4846_v3 }
   0xb   :  { %4298 = vmatprep.subr.bf16.mxu0 %v5204_v0 }
   0xd   :  { %4287 = vmatmul.mubr.msk.bf16.vlgmr.msra.gmra.mrb[0].mxu0 %vm75_vm1, %v4847_v4 }
   0xe   :  { %4290 = vmatprep.mubr.msk.bf16.mxu0 %vm5205_vm0, %v5204_v0 }
  0x15   :  { %4291 = vmatmul.mubr.msk.bf16.gmra.mrb[4].mxu0 %vm75_vm1, %v4848_v5 }
  0x16   :  { %4294 = vmatprep.mubr.msk.bf16.mxu0 %vm5205_vm0, %v5204_v0 }
  0x1d   :  { %4295 = vmatmul.mubr.msk.bf16.gmra.mrb[8].mxu0 %vm75_vm1, %v4849_v6 }
  0x1e   :  { %4304 = vmatprep.mubr.msk.bf16.mxu0 %vm5205_vm0, %v5204_v0 }
  0x1f   :  { %9 = vsyncpa [#allocation3], 0  ;;  %v36_v7 = vld [vmem:[%s6891_s1] sm:$0xff]  ;;  %v37_v9 = vld [vmem:[%s6891_s1 + $0x8] sm:$0xff]  ;;  %vm227_vm2 = vcmask 523264   ;;  %s5207_s0 = smov 48  }
  0x20   :  { %v38_v16 = vld [vmem:[%s6891_s1 + $0x10] sm:$0xff]  ;;  %v39_v19 = vld [vmem:[%s6891_s1 + $0x18] sm:$0xff]  ;;  %v40_v26 = vld [vmem:[%s6891_s1 + $0x20] sm:$0xff]  ;;  %s5208_s5 = smov 64   ;;  %s5209_s6 = smov 32   ;;  %vm482_vm3 = vcmask 130048  }
  0x21   :  { %v41_v29 = vld [vmem:[%s6891_s1 + $0x28] sm:$0xff]  ;;  %v4850_v4 = vld [vmem:[%s6892_s2 + $0x34] ss:$8 sps:$4 sm:$0xff]   ;;  %v4852_v5 = vld [vmem:[%s6892_s2 + $0x30] ss:$8 sps:$4 sm:$0xff]   ;;  %s5210_s7 = smov 112  }
  0x22   :  { %395 = vmatprep.subr.bf16.mxu1 %v4850_v4  ;;  %v4853_v6 = vld [vmem:[%s6892_s2 + $0x44] ss:$8 sps:$4 sm:$0xff]   ;;  %s5211_s8 = smov 16   ;;  %s5212_s9 = smov 96   ;;  %vm1494_vm8 = vcmask 261120   ;;  %vm3802_vm9 = vcmask 1040384  }
  0x23   :  { %396 = vmatpush1.bf16.msra.mxu1 %v4852_v5  ;;  %s5213_s10 = smov 80   ;;  %vm3804_vm10 = vcmask 517120   ;;  %s5215_s13 = smov [#allocation2]   ;;  %vm3973_vm11 = vcmask 254976  }
  0x24   :  { %397 = vmatprep.subr.bf16.mxu1 %v4853_v6  ;;  %s3981_s14 = sshll.u32 %s5215_s13, 4  ;;  %s3982_s14 = int_to_ptr.vmem [resolvable:$true] %s3981_s14 }
  0x25   :  { %p5185_p1 = scmp.lt.s32.totalorder %s3982_s14, %s3982_s14 }
  0xe0   :  { %v119_v8 = vpop.f32.mrb[0].mxu0 }
  0xe1   :  { %v5280_v10 = vadd.f32 %v119_v8, %v36_v7  ;;  %v4288_v11 = vpop.f32.mrb[1].mxu0  ;;  %v4855_v7 = vld [vmem:[%s6892_s2 + $0x40] ss:$8 sps:$4 sm:$0xff]   ;;  %v4856_v8 = vld [vmem:[%s6892_s2 + $0x54] ss:$8 sps:$4 sm:$0xff]  }
  0xe2   :  { %v122_v12 = vpop.f32.mrb[2].mxu0  ;;  %398 = vmatpush1.bf16.msra.mxu1 %v4855_v7  ;;  %v4859_v11 = vld [vmem:[%s6892_s2 + $0x64] ss:$8 sps:$4 sm:$0xff]  }
  0xe3   :  { %v5282_v13 = vadd.f32 %v122_v12, %v37_v9  ;;  %v4289_v14 = vpop.f32.mrb[3].mxu0  ;;  %v228_v15 = vsel %vm227_vm2, %v5280_v10, 0.0  ;;  %v4858_v9 = vld [vmem:[%s6892_s2 + $0x50] ss:$8 sps:$4 sm:$0xff]   ;;  %399 = vmatprep.subr.bf16.mxu1 %v4856_v8  ;;  %v4861_v12 = vld [vmem:[%s6892_s2 + $0x60] ss:$8 sps:$4 sm:$0xff]  }
  0xe4   :  { %229 = vadd.xlane.f32.xlu0 %v228_v15  ;;  %v5206_v14 = vmov 0  }
  0xe5   :  { %v231_v17 = vsel %vm227_vm2, %v5282_v13, 0.0  ;;  %427 = vmatprep.mubr.bf16.mxu1 %v5206_v14 }
  0xe6   :  { %400 = vmatpush1.bf16.msra.mxu1 %v4858_v9 }
  0xe7   :  { %401 = vmatprep.subr.bf16.mxu1 %v4859_v11 }
  0xe8   :  { %232 = vadd.xlane.f32.xlu0 %v231_v17  ;;  %v127_v18 = vpop.f32.mrb[4].mxu0 }
  0xe9   :  { %v5294_v20 = vadd.f32 %v127_v18, %v38_v16  ;;  %v4292_v21 = vpop.f32.mrb[5].mxu0 }
  0xea   :  { %v130_v22 = vpop.f32.mrb[6].mxu0  ;;  %402 = vmatpush1.bf16.msra.mxu1 %v4861_v12 }
  0xeb   :  { %v5296_v23 = vadd.f32 %v130_v22, %v39_v19  ;;  %v4293_v24 = vpop.f32.mrb[7].mxu0  ;;  %v234_v25 = vsel %vm227_vm2, %v5294_v20, 0.0  ;;  %4316 = vmatprep.subr.bf16.mxu1 %v5204_v0  ;;  %v149_v19 = vlaneseq }
  0xec   :  { %235 = vadd.xlane.f32.xlu1 %v234_v25 }
  0xed   :  { %v237_v27 = vsel %vm227_vm2, %v5296_v23, 0.0  ;;  %v5379_v25 = vshrl.u32 %v149_v19, 7 }
  0xf0   :  { %238 = vadd.xlane.f32.xlu1 %v237_v27  ;;  %v135_v28 = vpop.f32.mrb[8].mxu0 }
  0xf1   :  { %v5308_v30 = vadd.f32 %v135_v28, %v40_v26  ;;  %v4296_v31 = vpop.f32.mrb[9].mxu0 }
  0xf2   :  { %v138_v32 = vpop.f32.mrb[10].mxu0 }
  0xf3   :  { %v5310_v33 = vadd.f32 %v138_v32, %v41_v29  ;;  %v240_v34 = vsel %vm227_vm2, %v5308_v30, 0.0  ;;  %v4297_v35 = vpop.f32.mrb[11].mxu0  ;;  %v5382_v29 = vsub.s32 0, %v5379_v25  ;;  %v19_v32 = vld [vmem:[%s6893_s3] sm:$0xff] }
  0xf4   :  { %241 = vadd.xlane.f32.xlu0 %v240_v34 }
  0xf5   :  { %v243_v36 = vsel %vm227_vm2, %v5310_v33, 0.0 }
  0xf6   :  { %244 = vadd.xlane.f32.xlu1 %v243_v36 }
 0x171   :  { %v230_v37 = vpop.xlane.xlu0 %229 }
 0x172   :  { %v247_v38 = vmul.f32 0.015625, %v230_v37 }
 0x174   :  { %v5317_v39 = vsub.f32 %v5280_v10, %v247_v38  ;;  %v310_v38 = vrot.slane %v19_v32, %v5382_v29 }
 0x175   :  { %v233_v40 = vpop.xlane.xlu0 %232 }
 0x176   :  { %v248_v41 = vmul.f32 0.015625, %v233_v40  ;;  %v259_v42 = vmul.f32 %v5317_v39, %v5317_v39  ;;  %v5390_v40 = vsub.s32 1, %v5379_v25 }
 0x178   :  { %v5322_v43 = vsub.f32 %v5282_v13, %v248_v41  ;;  %v265_v44 = vsel %vm227_vm2, %v259_v42, 0.0 }
 0x179   :  { %v236_v45 = vpop.xlane.xlu1 %235  ;;  %266 = vadd.xlane.f32.xlu0 %v265_v44 }
 0x17a   :  { %v249_v46 = vmul.f32 0.015625, %v236_v45  ;;  %v260_v47 = vmul.f32 %v5322_v43, %v5322_v43 }
 0x17c   :  { %v5328_v48 = vsub.f32 %v5294_v20, %v249_v46  ;;  %v268_v49 = vsel %vm227_vm2, %v260_v47, 0.0 }
 0x17d   :  { %v239_v50 = vpop.xlane.xlu1 %238  ;;  %269 = vadd.xlane.f32.xlu1 %v268_v49 }
 0x17e   :  { %v250_v51 = vmul.f32 0.015625, %v239_v50  ;;  %v261_v52 = vmul.f32 %v5328_v48, %v5328_v48  ;;  %v320_v50 = vrot.slane %v19_v32, %v5390_v40 }
 0x180   :  { %v5334_v53 = vsub.f32 %v5296_v23, %v250_v51  ;;  %v271_v54 = vsel %vm227_vm2, %v261_v52, 0.0 }
 0x181   :  { %272 = vadd.xlane.f32.xlu0 %v271_v54  ;;  %v242_v55 = vpop.xlane.xlu0 %241 }
 0x182   :  { %v251_v56 = vmul.f32 0.015625, %v242_v55  ;;  %v262_v57 = vmul.f32 %v5334_v53, %v5334_v53 }
 0x183   :  { %v245_v58 = vpop.xlane.xlu1 %244 }
 0x184   :  { %v5340_v59 = vsub.f32 %v5308_v30, %v251_v56  ;;  %v252_v60 = vmul.f32 0.015625, %v245_v58  ;;  %v274_v61 = vsel %vm227_vm2, %v262_v57, 0.0 }
 0x185   :  { %275 = vadd.xlane.f32.xlu1 %v274_v61 }
 0x186   :  { %v5344_v62 = vsub.f32 %v5310_v33, %v252_v60  ;;  %v263_v63 = vmul.f32 %v5340_v59, %v5340_v59 }
 0x188   :  { %v277_v1 = vsel %vm227_vm2, %v263_v63, 0.0  ;;  %v264_v2 = vmul.f32 %v5344_v62, %v5344_v62 }
 0x189   :  { %278 = vadd.xlane.f32.xlu0 %v277_v1 }
 0x18a   :  { %v280_v3 = vsel %vm227_vm2, %v264_v2, 0.0 }
 0x18b   :  { %281 = vadd.xlane.f32.xlu1 %v280_v3 }
 0x206   :  { %v267_v15 = vpop.xlane.xlu0 %266 }
 0x207   :  { %v283_v16 = vmul.f32 0.015625, %v267_v15 }
 0x209   :  { %v289_v17 = vadd.f32 1e-06, %v283_v16 }
 0x20a   :  { %v270_v18 = vpop.xlane.xlu1 %269 }
 0x20b   :  { %4912 = vrsqrt.f32 %v289_v17  ;;  %v284_v21 = vmul.f32 0.015625, %v270_v18 }
 0x20d   :  { %v290_v22 = vadd.f32 1e-06, %v284_v21 }
 0x20e   :  { %v273_v24 = vpop.xlane.xlu0 %272 }
 0x20f   :  { %4914 = vrsqrt.f32 %v290_v22  ;;  %v285_v26 = vmul.f32 0.015625, %v273_v24 }
 0x211   :  { %v291_v27 = vadd.f32 1e-06, %v285_v26 }
 0x212   :  { %v276_v28 = vpop.xlane.xlu1 %275 }
 0x213   :  { %4916 = vrsqrt.f32 %v291_v27  ;;  %v286_v31 = vmul.f32 0.015625, %v276_v28 }
 0x215   :  { %v4913_v34 = vpop.eup %4912  ;;  %v292_v35 = vadd.f32 1e-06, %v286_v31 }
 0x216   :  { %v279_v36 = vpop.xlane.xlu0 %278  ;;  %v301_v37 = vmul.f32 %v4913_v34, %v5317_v39 }
 0x217   :  { %4918 = vrsqrt.f32 %v292_v35  ;;  %v287_v41 = vmul.f32 0.015625, %v279_v36 }
 0x218   :  { %v282_v42 = vpop.xlane.xlu1 %281  ;;  %v311_v49 = vmul.f32 %v310_v38, %v301_v37 }
 0x219   :  { %v4915_v44 = vpop.eup %4914  ;;  %v293_v45 = vadd.f32 1e-06, %v287_v41  ;;  %v288_v46 = vmul.f32 0.015625, %v282_v42 }
 0x21a   :  { %v302_v47 = vmul.f32 %v4915_v44, %v5322_v43  ;;  %v321_v54 = vadd.f32 %v320_v50, %v311_v49 }
 0x21b   :  { %4920 = vrsqrt.f32 %v293_v45  ;;  %v294_v51 = vadd.f32 1e-06, %v288_v46 }
 0x21c   :  { %v312_v52 = vmul.f32 %v310_v38, %v302_v47 }
 0x21d   :  { %v4917_v39 = vpop.eup %4916  ;;  %4922 = vrsqrt.f32 %v294_v51 }
 0x21e   :  { %v322_v55 = vadd.f32 %v320_v50, %v312_v52  ;;  %v303_v56 = vmul.f32 %v4917_v39, %v5328_v48 }
 0x220   :  { %v327_v57 = vpack.c.bf16 %v322_v55, %v321_v54  ;;  %v313_v61 = vmul.f32 %v310_v38, %v303_v56 }
 0x221   :  { %v4919_v58 = vpop.eup %4918 }
 0x222   :  { %4006 = vmatmul.mubr.msk.bf16.vlgmr.msra.gmra.mrb[0].mxu1 %vm227_vm2, %v327_v57  ;;  %v304_v60 = vmul.f32 %v4919_v58, %v5334_v53  ;;  %v323_v1 = vadd.f32 %v320_v50, %v313_v61 }
 0x223   :  { %437 = vmatprep.mubr.bf16.mxu1 %v5206_v14 }
 0x224   :  { %v314_v43 = vmul.f32 %v310_v38, %v304_v60 }
 0x225   :  { %v4921_v63 = vpop.eup %4920 }
 0x226   :  { %v324_v2 = vadd.f32 %v320_v50, %v314_v43  ;;  %v305_v3 = vmul.f32 %v4921_v63, %v5340_v59  ;;  %v5406_v59 = vsub.s32 2, %v5379_v25 }
 0x227   :  { %v4923_v4 = vpop.eup %4922 }
 0x228   :  { %v328_v5 = vpack.c.bf16 %v324_v2, %v323_v1  ;;  %v306_v6 = vmul.f32 %v4923_v4, %v5344_v62  ;;  %v315_v48 = vmul.f32 %v310_v38, %v305_v3  ;;  %v341_v11 = vrot.slane %v19_v32, %v5406_v59  ;;  %v20_v62 = vld [vmem:[%s6893_s3 + $0x8] sm:$0xff] }
 0x229   :  { %v345_v15 = vrot.slane %v20_v62, %v5406_v59 }
 0x22a   :  { %4007 = vmatmul.mubr.msk.bf16.gmra.mrb[4].mxu1 %vm227_vm2, %v328_v5  ;;  %v316_v7 = vmul.f32 %v310_v38, %v306_v6  ;;  %v325_v8 = vadd.f32 %v320_v50, %v315_v48 }
 0x22b   :  { %447 = vmatprep.mubr.bf16.mxu1 %v5206_v14 }
 0x22c   :  { %v326_v53 = vadd.f32 %v320_v50, %v316_v7 }
 0x22e   :  { %v329_v9 = vpack.c.bf16 %v326_v53, %v325_v8 }
 0x232   :  { %4008 = vmatmul.mubr.msk.bf16.gmra.mrb[8].mxu1 %vm227_vm2, %v329_v9 }
 0x233   :  { %4322 = vmatprep.mubr.msk.bf16.mxu1 %vm5205_vm0, %v5204_v0 }
 0x2f5   :  { %v429_v12 = vpop.f32.mrb[0].mxu1 }
 0x2f6   :  { %v430_v16 = vadd.f32 %v429_v12, %v341_v11  ;;  %v431_v17 = vpop.f32.mrb[1].mxu1 }
 0x2f7   :  { %v433_v18 = vpop.f32.mrb[2].mxu1  ;;  %v432_v24 = vadd.f32 %v431_v17, %v345_v15 }
 0x2f8   :  { %v434_v21 = vadd.f32 %v433_v18, %v341_v11  ;;  %v435_v22 = vpop.f32.mrb[3].mxu1  ;;  %v458_v27 = vmul.f32 0.25, %v430_v16 }
 0x2f9   :  { %v436_v26 = vadd.f32 %v435_v22, %v345_v15 }
 0x2fa   :  { %v459_v28 = vmul.f32 0.25, %v434_v21  ;;  %v467_v31 = vpack.c.bf16 %v434_v21, %v430_v16 }
 0x2fb   :  { %v5413_v34 = vpack.c.bf16 %v436_v26, %v432_v24 }
 0x2fc   :  { %v5415_v32 = vpack.c.bf16 %v459_v28, %v458_v27  ;;  %567 = vrot.lane.b32.xlu1 %v467_v31, %s5207_s0  ;;  %476 = vrot.lane.b32.xlu0 %v467_v31, %s5208_s5 }
 0x2fd   :  { %v439_v35 = vpop.f32.mrb[4].mxu1 }
 0x2fe   :  { %v440_v36 = vadd.f32 %v439_v35, %v341_v11  ;;  %v441_v37 = vpop.f32.mrb[5].mxu1 }
 0x2ff   :  { %v443_v38 = vpop.f32.mrb[6].mxu1  ;;  %v442_v44 = vadd.f32 %v441_v37, %v345_v15 }
 0x300   :  { %v444_v41 = vadd.f32 %v443_v38, %v341_v11  ;;  %v445_v42 = vpop.f32.mrb[7].mxu1  ;;  %v460_v46 = vmul.f32 0.25, %v440_v36 }
 0x301   :  { %v446_v45 = vadd.f32 %v445_v42, %v345_v15 }
 0x302   :  { %v461_v47 = vmul.f32 0.25, %v444_v41  ;;  %v468_v49 = vpack.c.bf16 %v444_v41, %v440_v36 }
 0x303   :  { %v5419_v50 = vpack.c.bf16 %v446_v45, %v442_v44 }
 0x304   :  { %v5421_v51 = vpack.c.bf16 %v461_v47, %v460_v46  ;;  %478 = vrot.lane.b32.xlu1 %v468_v49, %s5208_s5 }
 0x305   :  { %v449_v52 = vpop.f32.mrb[8].mxu1 }
 0x306   :  { %v450_v39 = vadd.f32 %v449_v52, %v341_v11  ;;  %v451_v54 = vpop.f32.mrb[9].mxu1  ;;  %v5214_v52 = vmov -1e+30  }
 0x307   :  { %v452_v55 = vadd.f32 %v451_v54, %v345_v15  ;;  %v453_v56 = vpop.f32.mrb[10].mxu1 }
 0x308   :  { %v454_v57 = vadd.f32 %v453_v56, %v341_v11  ;;  %v455_v58 = vpop.f32.mrb[11].mxu1  ;;  %569 = vrot.lane.b32.xlu1 %v468_v49, %s5207_s0  ;;  %v462_v61 = vmul.f32 0.25, %v450_v39 }
 0x309   :  { %v456_v60 = vadd.f32 %v455_v58, %v345_v15 }
 0x30a   :  { %v463_v43 = vmul.f32 0.25, %v454_v57  ;;  %v469_v63 = vpack.c.bf16 %v454_v57, %v450_v39 }
 0x30b   :  { %v5425_v1 = vpack.c.bf16 %v456_v60, %v452_v55 }
 0x30c   :  { %v5427_v2 = vpack.c.bf16 %v463_v43, %v462_v61  ;;  %571 = vrot.lane.b32.xlu1 %v469_v63, %s5207_s0  ;;  %480 = vrot.lane.b32.xlu0 %v469_v63, %s5208_s5 }
 0x310   :  { %654 = vrot.lane.b32.xlu0 %v467_v31, %s5209_s6  ;;  %561 = vrot.lane.b32.xlu1 %v5415_v32, %s5210_s7 }
 0x314   :  { %741 = vrot.lane.b32.xlu0 %v467_v31, %s5211_s8  ;;  %656 = vrot.lane.b32.xlu1 %v468_v49, %s5209_s6 }
 0x318   :  { %563 = vrot.lane.b32.xlu0 %v5421_v51, %s5210_s7  ;;  %743 = vrot.lane.b32.xlu1 %v468_v49, %s5211_s8 }
 0x31c   :  { %658 = vrot.lane.b32.xlu0 %v469_v63, %s5209_s6  ;;  %565 = vrot.lane.b32.xlu1 %v5427_v2, %s5210_s7 }
 0x320   :  { %745 = vrot.lane.b32.xlu0 %v469_v63, %s5211_s8  ;;  %648 = vrot.lane.b32.xlu1 %v5415_v32, %s5212_s9 }
 0x324   :  { %735 = vrot.lane.b32.xlu0 %v5415_v32, %s5213_s10  ;;  %650 = vrot.lane.b32.xlu1 %v5421_v51, %s5212_s9 }
 0x328   :  { %737 = vrot.lane.b32.xlu0 %v5421_v51, %s5213_s10  ;;  %652 = vrot.lane.b32.xlu1 %v5427_v2, %s5212_s9 }
 0x32c   :  { %739 = vrot.lane.b32.xlu0 %v5427_v2, %s5213_s10  ;;  %1191 = vrot.lane.b32.xlu1 %v5413_v34, %s5210_s7 }
 0x330   :  { %1193 = vrot.lane.b32.xlu0 %v5419_v50, %s5210_s7 }
 0x36e   :  { %v568_v3 = vpop.permute.xlu1 %567  ;;  %v477_v4 = vpop.permute.xlu0 %476 }
 0x36f   :  { %v583_v5 = vsel %vm482_vm3, %v568_v3, 0  ;;  %v493_v6 = vsel %vm482_vm3, %v477_v4, 0 }
 0x370   :  { %4299 = vmatpush3.bf16.xpose.msra.mxu0 %v493_v6  ;;  %4317 = vmatpush3.bf16.xpose.msra.mxu1 %v583_v5 }
 0x371   :  { %4300 = vmatprep.subr.bf16.mxu0 %v5204_v0  ;;  %4318 = vmatprep.subr.bf16.mxu1 %v5204_v0 }
 0x376   :  { %v479_v48 = vpop.permute.xlu1 %478 }
 0x377   :  { %v496_v7 = vsel %vm482_vm3, %v479_v48, 0 }
 0x378   :  { %4301 = vmatpush3.bf16.xpose.msra.mxu0 %v496_v7 }
 0x379   :  { %4302 = vmatprep.subr.bf16.mxu0 %v5204_v0 }
 0x37a   :  { %v570_v53 = vpop.permute.xlu1 %569 }
 0x37b   :  { %v586_v8 = vsel %vm482_vm3, %v570_v53, 0 }
 0x37c   :  { %4319 = vmatpush3.bf16.xpose.msra.mxu1 %v586_v8 }
 0x37d   :  { %4320 = vmatprep.subr.bf16.mxu1 %v5204_v0 }
 0x37e   :  { %v572_v9 = vpop.permute.xlu1 %571  ;;  %v481_v11 = vpop.permute.xlu0 %480 }
 0x37f   :  { %v499_v62 = vsel %vm482_vm3, %v481_v11, 0  ;;  %v589_v16 = vsel %vm482_vm3, %v572_v9, 0 }
 0x380   :  { %4303 = vmatpush3.bf16.xpose.msra.mxu0 %v499_v62 }
 0x381   :  { %4334 = vmatprep.subr.bf16.mxu0 %v5204_v0 }
 0x382   :  { %v655_v12 = vpop.permute.xlu0 %654  ;;  %v562_v15 = vpop.permute.xlu1 %561 }
 0x383   :  { %v670_v21 = vsel %vm482_vm3, %v655_v12, 0 }
 0x384   :  { %4321 = vmatpush3.bf16.xpose.msra.mxu1 %v589_v16 }
 0x385   :  { %4352 = vmatprep.subr.bf16.mxu1 %v5204_v0 }
 0x386   :  { %v742_v17 = vpop.permute.xlu0 %741  ;;  %v657_v18 = vpop.permute.xlu1 %656 }
 0x387   :  { %4305 = vmatmul.mubr.msk.bf16.vlgmr.msra.gmra.mrb[12].mxu0 %vm482_vm3, %v5415_v32  ;;  %v757_v26 = vsel %vm482_vm3, %v742_v17, 0  ;;  %v673_v31 = vsel %vm482_vm3, %v657_v18, 0 }
 0x388   :  { %4335 = vmatpush3.bf16.xpose.msra.mxu0 %v670_v21  ;;  %4308 = vmatprep.mubr.msk.bf16.mxu0 %vm5205_vm0, %v5204_v0 }
 0x389   :  { %4336 = vmatprep.subr.bf16.mxu0 %v5204_v0 }
 0x38a   :  { %v564_v22 = vpop.permute.xlu0 %563  ;;  %v744_v24 = vpop.permute.xlu1 %743 }
 0x38b   :  { %4323 = vmatmul.mubr.msk.bf16.vlgmr.msra.gmra.mrb[12].mxu1 %vm482_vm3, %v562_v15  ;;  %v760_v36 = vsel %vm482_vm3, %v744_v24, 0 }
 0x38c   :  { %4353 = vmatpush3.bf16.xpose.msra.mxu1 %v757_v26  ;;  %4326 = vmatprep.mubr.msk.bf16.mxu1 %vm5205_vm0, %v5204_v0 }
 0x38d   :  { %4354 = vmatprep.subr.bf16.mxu1 %v5204_v0 }
 0x38e   :  { %v659_v27 = vpop.permute.xlu0 %658  ;;  %v566_v28 = vpop.permute.xlu1 %565 }
 0x38f   :  { %4309 = vmatmul.mubr.msk.bf16.gmra.mrb[16].mxu0 %vm482_vm3, %v5421_v51  ;;  %v676_v38 = vsel %vm482_vm3, %v659_v27, 0  ;;  %v150_v51 = vand.u32 127, %v149_v19 }
 0x390   :  { %4337 = vmatpush3.bf16.xpose.msra.mxu0 %v673_v31  ;;  %4312 = vmatprep.mubr.msk.bf16.mxu0 %vm5205_vm0, %v5204_v0 }
 0x391   :  { %4338 = vmatprep.subr.bf16.mxu0 %v5204_v0  ;;  %vm176_vm4 = vcmp.lt.s32.totalorder %v150_v51, 17  ;;  %vm201_vm5 = vcmp.ge.s32.totalorder %v150_v51, 24  ;;  %vm208_vm6 = vcmp.lt.s32.totalorder %v150_v51, 41 }
 0x392   :  { %v746_v32 = vpop.permute.xlu0 %745  ;;  %v649_v35 = vpop.permute.xlu1 %648  ;;  %v5531_v39 = vsel %vm176_vm4, 0.0, %v5214_v52  ;;  %vm212_vm7 = vmand %vm201_vm5, %vm208_vm6 }
 0x393   :  { %4327 = vmatmul.mubr.msk.bf16.gmra.mrb[16].mxu1 %vm482_vm3, %v564_v22  ;;  %v763_v42 = vsel %vm482_vm3, %v746_v32, 0  ;;  %v5556_v62 = vsel %vm212_vm7, 0.0, %v5214_v52 }
 0x394   :  { %4355 = vmatpush3.bf16.xpose.msra.mxu1 %v760_v36  ;;  %4330 = vmatprep.mubr.msk.bf16.mxu1 %vm5205_vm0, %v5204_v0 }
 0x395   :  { %4356 = vmatprep.subr.bf16.mxu1 %v5204_v0 }
 0x396   :  { %v736_v37 = vpop.permute.xlu0 %735  ;;  %v651_v41 = vpop.permute.xlu1 %650 }
 0x397   :  { %4313 = vmatmul.mubr.msk.bf16.gmra.mrb[20].mxu0 %vm482_vm3, %v5427_v2 }
 0x398   :  { %4339 = vmatpush3.bf16.xpose.msra.mxu0 %v676_v38  ;;  %4340 = vmatprep.mubr.msk.bf16.mxu0 %vm5205_vm0, %v5204_v0 }
 0x399   :  { %4370 = vmatprep.subr.bf16.mxu0 %v5204_v0 }
 0x39a   :  { %v738_v44 = vpop.permute.xlu0 %737  ;;  %v653_v45 = vpop.permute.xlu1 %652 }
 0x39b   :  { %4331 = vmatmul.mubr.msk.bf16.gmra.mrb[20].mxu1 %vm482_vm3, %v566_v28 }
 0x39c   :  { %4357 = vmatpush3.bf16.xpose.msra.mxu1 %v763_v42  ;;  %4358 = vmatprep.mubr.msk.bf16.mxu1 %vm5205_vm0, %v5204_v0 }
 0x39d   :  { %4388 = vmatprep.subr.bf16.mxu1 %v5204_v0 }
 0x39e   :  { %v740_v46 = vpop.permute.xlu0 %739  ;;  %v1192_v47 = vpop.permute.xlu1 %1191 }
 0x39f   :  { %4341 = vmatmul.mubr.msk.bf16.vlgmr.msra.gmra.mrb[24].mxu0 %vm482_vm3, %v649_v35 }
 0x3a0   :  { %4371 = vmatpush3.bf16.msra.mxu0 %v5413_v34  ;;  %4344 = vmatprep.mubr.msk.bf16.mxu0 %vm5205_vm0, %v5204_v0 }
 0x3a1   :  { %4372 = vmatprep.subr.bf16.mxu0 %v5204_v0 }
 0x3a2   :  { %v1194_v49 = vpop.permute.xlu0 %1193 }
 0x3a3   :  { %4359 = vmatmul.mubr.msk.bf16.vlgmr.msra.gmra.mrb[24].mxu1 %vm482_vm3, %v736_v37 }
 0x3a4   :  { %4373 = vmatpush3.bf16.msra.mxu0 %v5419_v50  ;;  %4389 = vmatpush3.bf16.msra.mxu1 %v1192_v47 }
 0x3a5   :  { %4374 = vmatprep.subr.bf16.mxu0 %v5204_v0  ;;  %4390 = vmatprep.subr.bf16.mxu1 %v5204_v0 }
 0x3a6   :  { %4362 = vmatprep.mubr.msk.bf16.mxu1 %vm5205_vm0, %v5204_v0 }
 0x3a7   :  { %4345 = vmatmul.mubr.msk.bf16.gmra.mrb[28].mxu0 %vm482_vm3, %v651_v41 }
 0x3a8   :  { %4375 = vmatpush3.bf16.msra.mxu0 %v5425_v1  ;;  %4391 = vmatpush3.bf16.msra.mxu1 %v1194_v49 }
 0x3a9   :  { %4348 = vmatprep.mubr.msk.bf16.mxu0 %vm5205_vm0, %v5204_v0  ;;  %4392 = vmatprep.subr.bf16.mxu1 %v5204_v0 }
 0x3aa   :  { %4406 = vmatprep.subr.bf16.mxu0 %v5204_v0 }
 0x3ab   :  { %4363 = vmatmul.mubr.msk.bf16.gmra.mrb[28].mxu1 %vm482_vm3, %v738_v44 }
 0x3ac   :  { %4366 = vmatprep.mubr.msk.bf16.mxu1 %vm5205_vm0, %v5204_v0 }
 0x3af   :  { %4349 = vmatmul.mubr.msk.bf16.gmra.mrb[32].mxu0 %vm482_vm3, %v653_v45 }
 0x3b0   :  { %4376 = vmatprep.mubr.msk.bf16.mxu0 %vm5205_vm0, %v5204_v0 }
 0x3b3   :  { %4367 = vmatmul.mubr.msk.bf16.gmra.mrb[32].mxu1 %vm482_vm3, %v740_v46 }
 0x3b4   :  { %4394 = vmatprep.mubr.msk.bf16.mxu1 %vm5205_vm0, %v5204_v0 }
 0x45a   :  { %v535_v54 = vpop.f32.mrb[12].mxu0 }
 0x45b   :  { %v5534_v55 = vadd.f32 %v535_v54, %v5531_v39  ;;  %v4306_v56 = vpop.f32.mrb[13].mxu0 }
 0x45c   :  { %v538_v57 = vpop.f32.mrb[14].mxu0 }
 0x45d   :  { %v4307_v58 = vpop.f32.mrb[15].mxu0  ;;  %v846_v60 = vsel %vm75_vm1, %v5534_v55, -inf  ;;  %v5542_v2 = vadd.f32 %v538_v57, %v5531_v39 }
 0x45e   :  { %v625_v61 = vpop.f32.mrb[12].mxu1  ;;  %847 = vmax.xlane.f32.xlu1 %v846_v60 }
 0x45f   :  { %v5539_v43 = vadd.f32 %v625_v61, %v5531_v39  ;;  %v4324_v19 = vpop.f32.mrb[13].mxu1  ;;  %v849_v9 = vsel %vm75_vm1, %v5542_v2, -inf }
 0x460   :  { %v628_v63 = vpop.f32.mrb[14].mxu1 }
 0x461   :  { %v4325_v3 = vpop.f32.mrb[15].mxu1  ;;  %v864_v4 = vsel %vm75_vm1, %v5539_v43, -inf  ;;  %v5550_v53 = vadd.f32 %v628_v63, %v5531_v39 }
 0x462   :  { %865 = vmax.xlane.f32.xlu0 %v864_v4  ;;  %v543_v5 = vpop.f32.mrb[16].mxu0 }
 0x463   :  { %v5547_v6 = vadd.f32 %v543_v5, %v5531_v39  ;;  %v4310_v48 = vpop.f32.mrb[17].mxu0  ;;  %v867_v22 = vsel %vm75_vm1, %v5550_v53, -inf }
 0x464   :  { %v546_v7 = vpop.f32.mrb[18].mxu0 }
 0x465   :  { %v4311_v8 = vpop.f32.mrb[19].mxu0  ;;  %v852_v11 = vsel %vm75_vm1, %v5547_v6, -inf  ;;  %v5562_v18 = vadd.f32 %v546_v7, %v5556_v62 }
 0x466   :  { %v633_v12 = vpop.f32.mrb[16].mxu1  ;;  %850 = vmax.xlane.f32.xlu0 %v849_v9  ;;  %853 = vmax.xlane.f32.xlu1 %v852_v11 }
 0x467   :  { %v5559_v15 = vadd.f32 %v633_v12, %v5531_v39  ;;  %v4328_v16 = vpop.f32.mrb[17].mxu1  ;;  %v855_v36 = vsel %vm75_vm1, %v5562_v18, -inf }
 0x468   :  { %v636_v17 = vpop.f32.mrb[18].mxu1 }
 0x469   :  { %v4329_v21 = vpop.f32.mrb[19].mxu1  ;;  %v870_v24 = vsel %vm75_vm1, %v5559_v15, -inf  ;;  %v5572_v32 = vadd.f32 %v636_v17, %v5556_v62 }
 0x46a   :  { %868 = vmax.xlane.f32.xlu0 %v867_v22  ;;  %871 = vmax.xlane.f32.xlu1 %v870_v24  ;;  %v551_v26 = vpop.f32.mrb[20].mxu0 }
 0x46b   :  { %v5569_v27 = vadd.f32 %v551_v26, %v5556_v62  ;;  %v4314_v28 = vpop.f32.mrb[21].mxu0  ;;  %v873_v47 = vsel %vm75_vm1, %v5572_v32, -inf }
 0x46c   :  { %v554_v31 = vpop.f32.mrb[22].mxu0 }
 0x46d   :  { %v4315_v35 = vpop.f32.mrb[23].mxu0  ;;  %v858_v37 = vsel %vm75_vm1, %v5569_v27, -inf  ;;  %v5582_v45 = vadd.f32 %v554_v31, %v5556_v62 }
 0x46e   :  { %v641_v38 = vpop.f32.mrb[20].mxu1  ;;  %856 = vmax.xlane.f32.xlu0 %v855_v36  ;;  %859 = vmax.xlane.f32.xlu1 %v858_v37 }
 0x46f   :  { %v5579_v41 = vadd.f32 %v641_v38, %v5556_v62  ;;  %v4332_v42 = vpop.f32.mrb[21].mxu1  ;;  %v861_v60 = vsel %vm75_vm1, %v5582_v45, -inf }
 0x470   :  { %v644_v44 = vpop.f32.mrb[22].mxu1 }
 0x471   :  { %v4333_v46 = vpop.f32.mrb[23].mxu1  ;;  %v876_v49 = vsel %vm75_vm1, %v5579_v41, -inf  ;;  %v5592_v57 = vadd.f32 %v644_v44, %v5556_v62 }
 0x472   :  { %874 = vmax.xlane.f32.xlu0 %v873_v47  ;;  %877 = vmax.xlane.f32.xlu1 %v876_v49  ;;  %v712_v51 = vpop.f32.mrb[24].mxu0 }
 0x473   :  { %v5589_v52 = vadd.f32 %v712_v51, %v5531_v39  ;;  %v4342_v54 = vpop.f32.mrb[25].mxu0  ;;  %v879_v7 = vsel %vm75_vm1, %v5592_v57, -inf }
 0x474   :  { %v715_v56 = vpop.f32.mrb[26].mxu0 }
 0x475   :  { %v4343_v58 = vpop.f32.mrb[27].mxu0  ;;  %v882_v61 = vsel %vm75_vm1, %v5589_v52, -inf  ;;  %v5602_v5 = vadd.f32 %v715_v56, %v5531_v39 }
 0x476   :  { %v799_v19 = vpop.f32.mrb[24].mxu1  ;;  %862 = vmax.xlane.f32.xlu0 %v861_v60  ;;  %883 = vmax.xlane.f32.xlu1 %v882_v61 }
 0x477   :  { %v5599_v63 = vadd.f32 %v799_v19, %v5531_v39  ;;  %v4360_v3 = vpop.f32.mrb[25].mxu1  ;;  %v885_v22 = vsel %vm75_vm1, %v5602_v5, -inf }
 0x478   :  { %v802_v4 = vpop.f32.mrb[26].mxu1 }
 0x479   :  { %v4361_v48 = vpop.f32.mrb[27].mxu1  ;;  %v900_v8 = vsel %vm75_vm1, %v5599_v63, -inf  ;;  %v5612_v17 = vadd.f32 %v802_v4, %v5531_v39 }
 0x47a   :  { %880 = vmax.xlane.f32.xlu0 %v879_v7  ;;  %901 = vmax.xlane.f32.xlu1 %v900_v8  ;;  %v720_v9 = vpop.f32.mrb[28].mxu0 }
 0x47b   :  { %v5609_v11 = vadd.f32 %v720_v9, %v5531_v39  ;;  %v4346_v12 = vpop.f32.mrb[29].mxu0  ;;  %v903_v38 = vsel %vm75_vm1, %v5612_v17, -inf }
 0x47c   :  { %v723_v16 = vpop.f32.mrb[30].mxu0 }
 0x47d   :  { %v4347_v21 = vpop.f32.mrb[31].mxu0  ;;  %v888_v24 = vsel %vm75_vm1, %v5609_v11, -inf  ;;  %v5622_v36 = vadd.f32 %v723_v16, %v5556_v62 }
 0x47e   :  { %v807_v26 = vpop.f32.mrb[28].mxu1  ;;  %886 = vmax.xlane.f32.xlu0 %v885_v22  ;;  %889 = vmax.xlane.f32.xlu1 %v888_v24 }
 0x47f   :  { %v5619_v28 = vadd.f32 %v807_v26, %v5531_v39  ;;  %v4364_v31 = vpop.f32.mrb[29].mxu1  ;;  %v891_v56 = vsel %vm75_vm1, %v5622_v36, -inf }
 0x480   :  { %v810_v35 = vpop.f32.mrb[30].mxu1 }
 0x481   :  { %v4365_v37 = vpop.f32.mrb[31].mxu1  ;;  %v906_v42 = vsel %vm75_vm1, %v5619_v28, -inf  ;;  %v5632_v51 = vadd.f32 %v810_v35, %v5556_v62 }
 0x482   :  { %904 = vmax.xlane.f32.xlu0 %v903_v38  ;;  %907 = vmax.xlane.f32.xlu1 %v906_v42  ;;  %v728_v44 = vpop.f32.mrb[32].mxu0 }
 0x483   :  { %v5629_v46 = vadd.f32 %v728_v44, %v5556_v62  ;;  %v4350_v47 = vpop.f32.mrb[33].mxu0  ;;  %v909_v48 = vsel %vm75_vm1, %v5632_v51, -inf }
 0x484   :  { %v731_v49 = vpop.f32.mrb[34].mxu0 }
 0x485   :  { %v4351_v54 = vpop.f32.mrb[35].mxu0  ;;  %v894_v58 = vsel %vm75_vm1, %v5629_v46, -inf  ;;  %v5650_v8 = vadd.f32 %v731_v49, %v5556_v62 }
 0x486   :  { %v815_v60 = vpop.f32.mrb[32].mxu1  ;;  %892 = vmax.xlane.f32.xlu0 %v891_v56  ;;  %895 = vmax.xlane.f32.xlu1 %v894_v58 }
 0x487   :  { %v5639_v61 = vadd.f32 %v815_v60, %v5556_v62  ;;  %v4368_v19 = vpop.f32.mrb[33].mxu1  ;;  %v897_v12 = vsel %vm75_vm1, %v5650_v8, -inf }
 0x488   :  { %v818_v3 = vpop.f32.mrb[34].mxu1 }
 0x489   :  { %v4369_v4 = vpop.f32.mrb[35].mxu1  ;;  %v912_v7 = vsel %vm75_vm1, %v5639_v61, -inf  ;;  %v5653_v9 = vadd.f32 %v818_v3, %v5556_v62 }
 0x48a   :  { %910 = vmax.xlane.f32.xlu0 %v909_v48  ;;  %913 = vmax.xlane.f32.xlu1 %v912_v7 }
 0x48b   :  { %v915_v16 = vsel %vm75_vm1, %v5653_v9, -inf }
 0x49b   :  { %1195 = vrot.lane.b32.xlu1 %v5425_v1, %s5210_s7 }
 0x4a0   :  { %1266 = vrot.lane.b32.xlu0 %v5413_v34, %s5212_s9 }
 0x4bf   :  { %898 = vmax.xlane.f32.xlu0 %v897_v12 }
 0x4c3   :  { %916 = vmax.xlane.f32.xlu0 %v915_v16 }
 0x4eb   :  { %v848_v21 = vpop.xlane.xlu1 %847 }
 0x4ec   :  { %v918_v22 = vsub.f32 %v5534_v55, %v848_v21 }
 0x4ee   :  { %v942_v24 = vmul.f32 1.442695, %v918_v22 }
 0x4ef   :  { %v866_v26 = vpop.xlane.xlu0 %865 }
 0x4f0   :  { %4924 = vpow2.f32 %v942_v24  ;;  %v924_v31 = vsub.f32 %v5539_v43, %v866_v26 }
 0x4f2   :  { %v954_v35 = vmul.f32 1.442695, %v924_v31 }
 0x4f3   :  { %v851_v37 = vpop.xlane.xlu0 %850  ;;  %v854_v38 = vpop.xlane.xlu1 %853 }
 0x4f4   :  { %4926 = vpow2.f32 %v954_v35  ;;  %v919_v42 = vsub.f32 %v5542_v2, %v851_v37  ;;  %v920_v44 = vsub.f32 %v5547_v6, %v854_v38 }
 0x4f6   :  { %v944_v47 = vmul.f32 1.442695, %v919_v42  ;;  %v946_v49 = vmul.f32 1.442695, %v920_v44 }
 0x4f7   :  { %v869_v54 = vpop.xlane.xlu0 %868  ;;  %v872_v56 = vpop.xlane.xlu1 %871 }
 0x4f8   :  { %4928 = vpow2.f32 %v944_v47  ;;  %v925_v55 = vsub.f32 %v5550_v53, %v869_v54  ;;  %v926_v58 = vsub.f32 %v5559_v15, %v872_v56 }
 0x4f9   :  { %4930 = vpow2.f32 %v946_v49 }
 0x4fa   :  { %v5665_v60 = vpop.eup %4924  ;;  %v956_v43 = vmul.f32 1.442695, %v925_v55  ;;  %v958_v19 = vmul.f32 1.442695, %v926_v58 }
 0x4fb   :  { %v857_v3 = vpop.xlane.xlu0 %856  ;;  %v860_v4 = vpop.xlane.xlu1 %859  ;;  %v990_v2 = vsel %vm75_vm1, %v5665_v60, 0.0 }
 0x4fc   :  { %4932 = vpow2.f32 %v956_v43  ;;  %v921_v6 = vsub.f32 %v5562_v18, %v857_v3  ;;  %v922_v48 = vsub.f32 %v5569_v27, %v860_v4  ;;  %991 = vadd.xlane.f32.xlu1 %v990_v2 }
 0x4fd   :  { %4934 = vpow2.f32 %v958_v19 }
 0x4fe   :  { %v5671_v53 = vpop.eup %4926  ;;  %v948_v15 = vmul.f32 1.442695, %v921_v6  ;;  %v950_v7 = vmul.f32 1.442695, %v922_v48 }
 0x4ff   :  { %v875_v12 = vpop.xlane.xlu0 %874  ;;  %v878_v16 = vpop.xlane.xlu1 %877  ;;  %v1008_v21 = vsel %vm75_vm1, %v5671_v53, 0.0 }
 0x500   :  { %4936 = vpow2.f32 %v948_v15  ;;  %v927_v22 = vsub.f32 %v5572_v32, %v875_v12  ;;  %v928_v24 = vsub.f32 %v5579_v41, %v878_v16  ;;  %1009 = vadd.xlane.f32.xlu1 %v1008_v21 }
 0x501   :  { %4938 = vpow2.f32 %v950_v7 }
 0x502   :  { %v5677_v18 = vpop.eup %4928  ;;  %v960_v27 = vmul.f32 1.442695, %v927_v22  ;;  %v962_v26 = vmul.f32 1.442695, %v928_v24 }
 0x503   :  { %v5679_v31 = vpop.eup %4930  ;;  %v863_v35 = vpop.xlane.xlu0 %862  ;;  %v993_v38 = vsel %vm75_vm1, %v5677_v18, 0.0 }
 0x504   :  { %v884_v37 = vpop.xlane.xlu1 %883  ;;  %4940 = vpow2.f32 %v960_v27  ;;  %v923_v42 = vsub.f32 %v5582_v45, %v863_v35  ;;  %v996_v41 = vsel %vm75_vm1, %v5679_v31, 0.0  ;;  %994 = vadd.xlane.f32.xlu0 %v993_v38 }
 0x505   :  { %v930_v32 = vsub.f32 %v5589_v52, %v884_v37  ;;  %4942 = vpow2.f32 %v962_v26  ;;  %997 = vadd.xlane.f32.xlu1 %v996_v41 }
 0x506   :  { %v5687_v44 = vpop.eup %4932  ;;  %v952_v47 = vmul.f32 1.442695, %v923_v42 }
 0x507   :  { %v966_v49 = vmul.f32 1.442695, %v930_v32  ;;  %v5689_v54 = vpop.eup %4934  ;;  %v881_v56 = vpop.xlane.xlu0 %880  ;;  %v1011_v58 = vsel %vm75_vm1, %v5687_v44, 0.0 }
 0x508   :  { %v902_v55 = vpop.xlane.xlu1 %901  ;;  %4944 = vpow2.f32 %v952_v47  ;;  %v929_v45 = vsub.f32 %v5592_v57, %v881_v56  ;;  %v1014_v43 = vsel %vm75_vm1, %v5689_v54, 0.0  ;;  %1012 = vadd.xlane.f32.xlu0 %v1011_v58 }
 0x509   :  { %v936_v52 = vsub.f32 %v5599_v63, %v902_v55  ;;  %4946 = vpow2.f32 %v966_v49  ;;  %1015 = vadd.xlane.f32.xlu1 %v1014_v43 }
 0x50a   :  { %v5697_v19 = vpop.eup %4936  ;;  %v964_v3 = vmul.f32 1.442695, %v929_v45 }
 0x50b   :  { %v978_v4 = vmul.f32 1.442695, %v936_v52  ;;  %v5699_v2 = vpop.eup %4938  ;;  %v887_v6 = vpop.xlane.xlu0 %886  ;;  %v999_v15 = vsel %vm75_vm1, %v5697_v19, 0.0 }
 0x50c   :  { %v890_v48 = vpop.xlane.xlu1 %889  ;;  %4948 = vpow2.f32 %v964_v3  ;;  %v931_v57 = vsub.f32 %v5602_v5, %v887_v6  ;;  %v1002_v63 = vsel %vm75_vm1, %v5699_v2, 0.0  ;;  %1000 = vadd.xlane.f32.xlu0 %v999_v15 }
 0x50d   :  { %4950 = vpow2.f32 %v978_v4  ;;  %1003 = vadd.xlane.f32.xlu1 %v1002_v63  ;;  %v932_v16 = vsub.f32 %v5609_v11, %v890_v48 }
 0x50e   :  { %v5706_v7 = vpop.eup %4940  ;;  %v968_v12 = vmul.f32 1.442695, %v931_v57 }
 0x50f   :  { %v5709_v21 = vpop.eup %4942  ;;  %v905_v22 = vpop.xlane.xlu0 %904  ;;  %v1017_v27 = vsel %vm75_vm1, %v5706_v7, 0.0  ;;  %v970_v37 = vmul.f32 1.442695, %v932_v16 }
 0x510   :  { %v908_v24 = vpop.xlane.xlu1 %907  ;;  %4952 = vpow2.f32 %v968_v12  ;;  %v937_v5 = vsub.f32 %v5612_v17, %v905_v22  ;;  %v1020_v26 = vsel %vm75_vm1, %v5709_v21, 0.0  ;;  %1018 = vadd.xlane.f32.xlu0 %v1017_v27 }
 0x511   :  { %1021 = vadd.xlane.f32.xlu1 %v1020_v26  ;;  %v938_v11 = vsub.f32 %v5619_v28, %v908_v24 }
 0x512   :  { %v5716_v35 = vpop.eup %4944  ;;  %v980_v38 = vmul.f32 1.442695, %v937_v5 }
 0x513   :  { %v5719_v42 = vpop.eup %4946  ;;  %v893_v32 = vpop.xlane.xlu0 %892  ;;  %v1005_v47 = vsel %vm75_vm1, %v5716_v35, 0.0  ;;  %v982_v55 = vmul.f32 1.442695, %v938_v11 }
 0x514   :  { %v896_v41 = vpop.xlane.xlu1 %895  ;;  %4954 = vpow2.f32 %v980_v38  ;;  %v1026_v49 = vsel %vm75_vm1, %v5719_v42, 0.0  ;;  %1006 = vadd.xlane.f32.xlu0 %v1005_v47  ;;  %v933_v28 = vsub.f32 %v5622_v36, %v893_v32 }
 0x515   :  { %v934_v17 = vsub.f32 %v5629_v46, %v896_v41  ;;  %1027 = vadd.xlane.f32.xlu1 %v1026_v49  ;;  %4956 = vpow2.f32 %v970_v37 }
 0x516   :  { %v5726_v56 = vpop.eup %4948  ;;  %v972_v6 = vmul.f32 1.442695, %v933_v28 }
 0x517   :  { %v974_v58 = vmul.f32 1.442695, %v934_v17  ;;  %v5729_v45 = vpop.eup %4950  ;;  %v911_v52 = vpop.xlane.xlu0 %910  ;;  %v1023_v3 = vsel %vm75_vm1, %v5726_v56, 0.0 }
 0x518   :  { %v914_v43 = vpop.xlane.xlu1 %913  ;;  %v1044_v46 = vsel %vm75_vm1, %v5729_v45, 0.0  ;;  %1024 = vadd.xlane.f32.xlu0 %v1023_v3  ;;  %v939_v36 = vsub.f32 %v5632_v51, %v911_v52 }
 0x519   :  { %4958 = vpow2.f32 %v974_v58  ;;  %1045 = vadd.xlane.f32.xlu1 %v1044_v46  ;;  %v940_v47 = vsub.f32 %v5639_v61, %v914_v43 }
 0x51a   :  { %v5735_v4 = vpop.eup %4952  ;;  %4960 = vpow2.f32 %v982_v55  ;;  %v984_v63 = vmul.f32 1.442695, %v939_v36 }
 0x51b   :  { %v1029_v15 = vsel %vm75_vm1, %v5735_v4, 0.0  ;;  %4962 = vpow2.f32 %v972_v6  ;;  %v1267_v32 = vpop.permute.xlu0 %1266  ;;  %v986_v17 = vmul.f32 1.442695, %v940_v47 }
 0x51c   :  { %v1196_v48 = vpop.permute.xlu1 %1195  ;;  %1030 = vadd.xlane.f32.xlu0 %v1029_v15  ;;  %4964 = vpow2.f32 %v984_v63 }
 0x51d   :  { %4393 = vmatpush3.bf16.msra.mxu1 %v1196_v48  ;;  %4966 = vpow2.f32 %v986_v17 }
 0x51e   :  { %4424 = vmatprep.subr.bf16.mxu1 %v5204_v0  ;;  %v5741_v57 = vpop.eup %4954 }
 0x51f   :  { %v1047_v12 = vsel %vm75_vm1, %v5741_v57, 0.0  ;;  %v5745_v16 = vpop.eup %4956 }
 0x520   :  { %1048 = vadd.xlane.f32.xlu0 %v1047_v12  ;;  %v1032_v22 = vsel %vm75_vm1, %v5745_v16, 0.0 }
 0x523   :  { %v5747_v51 = vpop.eup %4958 }
 0x524   :  { %v5751_v24 = vpop.eup %4960  ;;  %v1038_v27 = vsel %vm75_vm1, %v5747_v51, 0.0  ;;  %1033 = vadd.xlane.f32.xlu0 %v1032_v22 }
 0x525   :  { %1039 = vadd.xlane.f32.xlu1 %v1038_v27  ;;  %v1050_v5 = vsel %vm75_vm1, %v5751_v24, 0.0  ;;  %v5757_v26 = vpop.eup %4962 }
 0x526   :  { %v1035_v37 = vsel %vm75_vm1, %v5757_v26, 0.0  ;;  %v5761_v38 = vpop.eup %4964 }
 0x527   :  { %v1053_v11 = vsel %vm75_vm1, %v5761_v38, 0.0  ;;  %v5776_v52 = vpop.eup %4966 }
 0x528   :  { %1051 = vadd.xlane.f32.xlu0 %v1050_v5 }
 0x52c   :  { %1036 = vadd.xlane.f32.xlu0 %v1035_v37 }
 0x530   :  { %1054 = vadd.xlane.f32.xlu0 %v1053_v11 }
 0x536   :  { %1341 = vrot.lane.b32.xlu1 %v5413_v34, %s5213_s10 }
 0x546   :  { %1268 = vrot.lane.b32.xlu0 %v5419_v50, %s5212_s9 }
 0x54a   :  { %1343 = vrot.lane.b32.xlu0 %v5419_v50, %s5213_s10  ;;  %v1056_v50 = vsel %vm75_vm1, %v5776_v52, 0.0 }
 0x54c   :  { %v899_v41 = vpop.xlane.xlu0 %898 }
 0x54d   :  { %v935_v49 = vsub.f32 %v5650_v8, %v899_v41 }
 0x54e   :  { %1270 = vrot.lane.b32.xlu0 %v5425_v1, %s5212_s9 }
 0x54f   :  { %v976_v28 = vmul.f32 1.442695, %v935_v49 }
 0x550   :  { %v917_v55 = vpop.xlane.xlu0 %916 }
 0x551   :  { %v941_v34 = vsub.f32 %v5653_v9, %v917_v55  ;;  %4968 = vpow2.f32 %v976_v28 }
 0x553   :  { %v988_v58 = vmul.f32 1.442695, %v941_v34 }
 0x555   :  { %4970 = vpow2.f32 %v988_v58 }
 0x55b   :  { %v5780_v3 = vpop.eup %4968 }
 0x55c   :  { %v1041_v61 = vsel %vm75_vm1, %v5780_v3, 0.0 }
 0x55f   :  { %v5784_v8 = vpop.eup %4970 }
 0x560   :  { %v1059_v9 = vsel %vm75_vm1, %v5784_v8, 0.0 }
 0x56d   :  { %1057 = vadd.xlane.f32.xlu0 %v1056_v50 }
 0x571   :  { %1042 = vadd.xlane.f32.xlu0 %v1041_v61 }
 0x575   :  { %1060 = vadd.xlane.f32.xlu0 %v1059_v9 }
 0x589   :  { %v992_v43 = vpop.xlane.xlu1 %991 }
 0x58a   :  { %4972 = vrcp.f32 %v992_v43 }
 0x58b   :  { %1345 = vrot.lane.b32.xlu0 %v5425_v1, %s5213_s10 }
 0x58d   :  { %v1010_v46 = vpop.xlane.xlu1 %1009 }
 0x591   :  { %v995_v6 = vpop.xlane.xlu0 %994 }
 0x592   :  { %v998_v36 = vpop.xlane.xlu1 %997  ;;  %4974 = vrcp.f32 %v995_v6 }
 0x593   :  { %4976 = vrcp.f32 %v1010_v46 }
 0x594   :  { %v4973_v12 = vpop.eup %4972 }
 0x595   :  { %v1013_v48 = vpop.xlane.xlu0 %1012  ;;  %v1086_v5 = vmul.f32 %v4973_v12, %v5665_v60 }
 0x596   :  { %v1016_v15 = vpop.xlane.xlu1 %1015  ;;  %4978 = vrcp.f32 %v1013_v48 }
 0x597   :  { %4980 = vrcp.f32 %v998_v36 }
 0x599   :  { %v1001_v63 = vpop.xlane.xlu0 %1000 }
 0x59a   :  { %4982 = vrcp.f32 %v1001_v63  ;;  %v1004_v22 = vpop.xlane.xlu1 %1003 }
 0x59b   :  { %4984 = vrcp.f32 %v1016_v15 }
 0x59c   :  { %v4975_v27 = vpop.eup %4974 }
 0x59d   :  { %v1087_v1 = vmul.f32 %v4975_v27, %v5677_v18  ;;  %v1019_v37 = vpop.xlane.xlu0 %1018  ;;  %v4977_v11 = vpop.eup %4976 }
 0x59e   :  { %4986 = vrcp.f32 %v1019_v37  ;;  %v1092_v17 = vmul.f32 %v4977_v11, %v5671_v53  ;;  %v1022_v55 = vpop.xlane.xlu1 %1021 }
 0x59f   :  { %v1110_v41 = vpack.c.bf16 %v1087_v1, %v1086_v5  ;;  %4988 = vrcp.f32 %v1004_v22 }
 0x5a0   :  { %v4979_v47 = vpop.eup %4978 }
 0x5a1   :  { %v1093_v49 = vmul.f32 %v4979_v47, %v5687_v44  ;;  %4377 = vmatmul.mubr.msk.bf16.vlgmr.msra.gmra.mrb[36].mxu0 %vm75_vm1, %v1110_v41  ;;  %v1007_v28 = vpop.xlane.xlu0 %1006  ;;  %v4981_v34 = vpop.eup %4980 }
 0x5a2   :  { %4407 = vmatpush3.bf16.msra.mxu0 %v1267_v32  ;;  %4990 = vrcp.f32 %v1007_v28  ;;  %4380 = vmatprep.mubr.msk.bf16.mxu0 %vm5205_vm0, %v5204_v0  ;;  %v1088_v44 = vmul.f32 %v4981_v34, %v5679_v31  ;;  %v1028_v9 = vpop.xlane.xlu1 %1027 }
 0x5a3   :  { %v1113_v60 = vpack.c.bf16 %v1093_v49, %v1092_v17  ;;  %4408 = vmatprep.subr.bf16.mxu0 %v5204_v0  ;;  %4992 = vrcp.f32 %v1022_v55 }
 0x5a4   :  { %v4983_v18 = vpop.eup %4982 }
 0x5a5   :  { %4395 = vmatmul.mubr.msk.bf16.vlgmr.msra.gmra.mrb[36].mxu1 %vm75_vm1, %v1113_v60  ;;  %v1025_v53 = vpop.xlane.xlu0 %1024  ;;  %v1089_v58 = vmul.f32 %v4983_v18, %v5697_v19  ;;  %v4985_v50 = vpop.eup %4984 }
 0x5a6   :  { %4994 = vrcp.f32 %v1025_v53  ;;  %4398 = vmatprep.mubr.msk.bf16.mxu1 %vm5205_vm0, %v5204_v0  ;;  %v1094_v46 = vmul.f32 %v4985_v50, %v5689_v54  ;;  %v1046_v22 = vpop.xlane.xlu1 %1045 }
 0x5a7   :  { %v1111_v32 = vpack.c.bf16 %v1089_v58, %v1088_v44 }
 0x5a8   :  { %v4987_v61 = vpop.eup %4986 }
 0x5a9   :  { %4381 = vmatmul.mubr.msk.bf16.gmra.mrb[40].mxu0 %vm75_vm1, %v1111_v32  ;;  %v1031_v43 = vpop.xlane.xlu0 %1030  ;;  %v1095_v6 = vmul.f32 %v4987_v61, %v5706_v7  ;;  %v4989_v36 = vpop.eup %4988 }
 0x5aa   :  { %4384 = vmatprep.mubr.msk.bf16.mxu0 %vm5205_vm0, %v5204_v0  ;;  %v1090_v15 = vmul.f32 %v4989_v36, %v5699_v2  ;;  %4996 = vrcp.f32 %v1031_v43 }
 0x5ab   :  { %v1114_v31 = vpack.c.bf16 %v1095_v6, %v1094_v46  ;;  %4998 = vrcp.f32 %v1028_v9 }
 0x5ac   :  { %v4991_v19 = vpop.eup %4990 }
 0x5ad   :  { %4399 = vmatmul.mubr.msk.bf16.gmra.mrb[40].mxu1 %vm75_vm1, %v1114_v31  ;;  %v1049_v48 = vpop.xlane.xlu0 %1048  ;;  %v1091_v63 = vmul.f32 %v4991_v19, %v5716_v35  ;;  %v4993_v12 = vpop.eup %4992 }
 0x5ae   :  { %4402 = vmatprep.mubr.msk.bf16.mxu1 %vm5205_vm0, %v5204_v0  ;;  %v1096_v5 = vmul.f32 %v4993_v12, %v5709_v21 }
 0x5af   :  { %v1112_v54 = vpack.c.bf16 %v1091_v63, %v1090_v15 }
 0x5b0   :  { %v4995_v7 = vpop.eup %4994 }
 0x5b1   :  { %4385 = vmatmul.mubr.msk.bf16.gmra.mrb[44].mxu0 %vm75_vm1, %v1112_v54  ;;  %v1034_v27 = vpop.xlane.xlu0 %1033  ;;  %v1097_v1 = vmul.f32 %v4995_v7, %v5726_v56 }
 0x5b2   :  { %v1040_v37 = vpop.xlane.xlu1 %1039  ;;  %4412 = vmatprep.mubr.msk.bf16.mxu0 %vm5205_vm0, %v5204_v0 }
 0x5b3   :  { %v1115_v2 = vpack.c.bf16 %v1097_v1, %v1096_v5 }
 0x5b4   :  { %v4997_v47 = vpop.eup %4996 }
 0x5b5   :  { %4403 = vmatmul.mubr.msk.bf16.gmra.mrb[44].mxu1 %vm75_vm1, %v1115_v2  ;;  %v1052_v35 = vpop.xlane.xlu0 %1051  ;;  %v4999_v49 = vpop.eup %4998  ;;  %v1099_v55 = vmul.f32 %v4997_v47, %v5735_v4 }
 0x5b6   :  { %v1342_v11 = vpop.permute.xlu1 %1341  ;;  %4430 = vmatprep.mubr.msk.bf16.mxu1 %vm5205_vm0, %v5204_v0  ;;  %v1098_v28 = vmul.f32 %v4999_v49, %v5719_v42 }
 0x5b7   :  { %4425 = vmatpush3.bf16.msra.mxu1 %v1342_v11 }
 0x5b8   :  { %4426 = vmatprep.subr.bf16.mxu1 %v5204_v0  ;;  %v1116_v60 = vpack.c.bf16 %v1099_v55, %v1098_v28 }
 0x5b9   :  { %v1037_v41 = vpop.xlane.xlu0 %1036 }
 0x5ba   :  { %5000 = vrcp.f32 %v1037_v41 }
 0x5bb   :  { %5002 = vrcp.f32 %v1034_v27 }
 0x5bc   :  { %5004 = vrcp.f32 %v1049_v48 }
 0x5bd   :  { %v1055_v21 = vpop.xlane.xlu0 %1054  ;;  %5006 = vrcp.f32 %v1046_v22 }
 0x5be   :  { %5008 = vrcp.f32 %v1040_v37 }
 0x5bf   :  { %5010 = vrcp.f32 %v1055_v21 }
 0x5c1   :  { %v1269_v56 = vpop.permute.xlu0 %1268 }
 0x5c2   :  { %4409 = vmatpush3.bf16.msra.mxu0 %v1269_v56 }
 0x5c3   :  { %4410 = vmatprep.subr.bf16.mxu0 %v5204_v0 }
 0x5c4   :  { %v5001_v18 = vpop.eup %5000 }
 0x5c5   :  { %v1344_v17 = vpop.permute.xlu0 %1343  ;;  %v5003_v53 = vpop.eup %5002  ;;  %v1101_v44 = vmul.f32 %v5001_v18, %v5757_v26 }
 0x5c6   :  { %4427 = vmatpush3.bf16.msra.mxu1 %v1344_v17  ;;  %v1100_v4 = vmul.f32 %v5003_v53, %v5745_v16  ;;  %v5005_v32 = vpop.eup %5004 }
 0x5c7   :  { %4428 = vmatprep.subr.bf16.mxu1 %v5204_v0  ;;  %v5007_v9 = vpop.eup %5006  ;;  %v1105_v26 = vmul.f32 %v5005_v32, %v5741_v57 }
 0x5c8   :  { %v1117_v58 = vpack.c.bf16 %v1101_v44, %v1100_v4  ;;  %v1104_v16 = vmul.f32 %v5007_v9, %v5729_v45  ;;  %v5009_v46 = vpop.eup %5008 }
 0x5c9   :  { %v1271_v34 = vpop.permute.xlu0 %1270  ;;  %v5011_v6 = vpop.eup %5010  ;;  %v1102_v19 = vmul.f32 %v5009_v46, %v5747_v51  ;;  %v4864_v46 = vld [vmem:[%s6892_s2 + $0x90] ss:$8 sps:$4 sm:$0xff]  }
 0x5ca   :  { %4411 = vmatpush3.bf16.msra.mxu0 %v1271_v34  ;;  %v1119_v36 = vpack.c.bf16 %v1105_v26, %v1104_v16  ;;  %v1107_v57 = vmul.f32 %v5011_v6, %v5761_v38 }
 0x5cb   :  { %4442 = vmatprep.subr.bf16.mxu0 %v5204_v0 }
 0x5cd   :  { %4413 = vmatmul.mubr.msk.bf16.vlgmr.msra.gmra.mrb[48].mxu0 %vm75_vm1, %v1116_v60 }
 0x5ce   :  { %4416 = vmatprep.mubr.msk.bf16.mxu0 %vm5205_vm0, %v5204_v0 }
 0x5d5   :  { %4417 = vmatmul.mubr.msk.bf16.gmra.mrb[52].mxu0 %vm75_vm1, %v1117_v58 }
 0x5d6   :  { %4420 = vmatprep.mubr.msk.bf16.mxu0 %vm5205_vm0, %v5204_v0 }
 0x5fa   :  { %v1058_v42 = vpop.xlane.xlu0 %1057 }
 0x5fe   :  { %v1043_v50 = vpop.xlane.xlu0 %1042 }
 0x5ff   :  { %5012 = vrcp.f32 %v1043_v50  ;;  %v4862_v50 = vld [vmem:[%s6892_s2 + $0x70] ss:$8 sps:$4 sm:$0xff]  }
 0x600   :  { %5014 = vrcp.f32 %v1052_v35  ;;  %4443 = vmatpush3.bf16.msra.mxu0 %v4862_v50 }
 0x601   :  { %4444 = vmatprep.subr.bf16.mxu0 %v5204_v0 }
 0x602   :  { %v1061_v61 = vpop.xlane.xlu0 %1060 }
 0x603   :  { %5016 = vrcp.f32 %v1061_v61  ;;  %v4863_v61 = vld [vmem:[%s6892_s2 + $0x80] ss:$8 sps:$4 sm:$0xff]  }
 0x604   :  { %5018 = vrcp.f32 %v1058_v42  ;;  %4445 = vmatpush3.bf16.msra.mxu0 %v4863_v61 }
 0x605   :  { %4446 = vmatprep.subr.bf16.mxu0 %v5204_v0 }
 0x606   :  { %v1346_v43 = vpop.permute.xlu0 %1345 }
 0x607   :  { %4429 = vmatpush3.bf16.msra.mxu1 %v1346_v43 }
 0x608   :  { %4462 = vmatprep.subr.bf16.mxu1 %v5204_v0  ;;  %4447 = vmatpush3.bf16.msra.mxu0 %v4864_v46 }
 0x609   :  { %v5013_v31 = vpop.eup %5012  ;;  %4448 = vmatprep.subr.bf16.mxu0 %v5204_v0 }
 0x60a   :  { %4431 = vmatmul.mubr.msk.bf16.vlgmr.msra.gmra.mrb[48].mxu1 %vm75_vm1, %v1119_v36  ;;  %v1103_v48 = vmul.f32 %v5013_v31, %v5780_v3  ;;  %v5015_v15 = vpop.eup %5014 }
 0x60b   :  { %4434 = vmatprep.mubr.msk.bf16.mxu1 %vm5205_vm0, %v5204_v0  ;;  %v1106_v63 = vmul.f32 %v5015_v15, %v5751_v24  ;;  %v4865_v15 = vld [vmem:[%s6892_s2 + $0xa0] ss:$8 sps:$4 sm:$0xff]  }
 0x60c   :  { %v1118_v45 = vpack.c.bf16 %v1103_v48, %v1102_v19  ;;  %4449 = vmatpush3.bf16.msra.mxu0 %v4865_v15 }
 0x60d   :  { %v1120_v12 = vpack.c.bf16 %v1107_v57, %v1106_v63  ;;  %v5017_v22 = vpop.eup %5016  ;;  %4482 = vmatprep.subr.bf16.mxu0 %v5204_v0 }
 0x60e   :  { %4421 = vmatmul.mubr.msk.bf16.gmra.mrb[56].mxu0 %vm75_vm1, %v1118_v45  ;;  %v5019_v51 = vpop.eup %5018  ;;  %v1109_v3 = vmul.f32 %v5017_v22, %v5784_v8 }
 0x60f   :  { %4450 = vmatprep.mubr.msk.bf16.mxu0 %vm5205_vm0, %v5204_v0  ;;  %v1108_v54 = vmul.f32 %v5019_v51, %v5776_v52 }
 0x611   :  { %v1121_v38 = vpack.c.bf16 %v1109_v3, %v1108_v54 }
 0x612   :  { %4435 = vmatmul.mubr.msk.bf16.gmra.mrb[52].mxu1 %vm75_vm1, %v1120_v12 }
 0x613   :  { %4438 = vmatprep.mubr.msk.bf16.mxu1 %vm5205_vm0, %v5204_v0 }
 0x61a   :  { %4439 = vmatmul.mubr.msk.bf16.gmra.mrb[56].mxu1 %vm75_vm1, %v1121_v38 }
 0x61b   :  { %4470 = vmatprep.mubr.msk.bf16.mxu1 %vm5205_vm0, %v5204_v0 }
 0x674   :  { %v5856_v24 = vpop.f32.mrb[36].mxu0 }
 0x675   :  { %v4378_v7 = vpop.f32.mrb[37].mxu0 }
 0x676   :  { %v5858_v27 = vpop.f32.mrb[38].mxu0 }
 0x677   :  { %v4379_v5 = vpop.f32.mrb[39].mxu0 }
 0x678   :  { %v1243_v1 = vpop.f32.mrb[36].mxu1 }
 0x679   :  { %v4396_v37 = vpop.f32.mrb[37].mxu1 }
 0x67a   :  { %v1246_v2 = vpop.f32.mrb[38].mxu1 }
 0x67b   :  { %v4754_v35 = vpack.i.bf16 %v1246_v2, %v1243_v1  ;;  %v4397_v11 = vpop.f32.mrb[39].mxu1 }
 0x67c   :  { %v5860_v8 = vpop.f32.mrb[40].mxu0 }
 0x67d   :  { %4755 = vrot.lane.b32.xlu0 %v4754_v35, %s5211_s8  ;;  %v4382_v52 = vpop.f32.mrb[41].mxu0 }
 0x67e   :  { %v5863_v41 = vpop.f32.mrb[42].mxu0 }
 0x67f   :  { %v4383_v21 = vpop.f32.mrb[43].mxu0 }
 0x680   :  { %v1251_v56 = vpop.f32.mrb[40].mxu1 }
 0x681   :  { %v4400_v47 = vpop.f32.mrb[41].mxu1 }
 0x682   :  { %v1254_v17 = vpop.f32.mrb[42].mxu1 }
 0x683   :  { %v4769_v49 = vpack.i.bf16 %v1254_v17, %v1251_v56  ;;  %v4401_v55 = vpop.f32.mrb[43].mxu1 }
 0x684   :  { %v5865_v28 = vpop.f32.mrb[44].mxu0 }
 0x685   :  { %v4386_v34 = vpop.f32.mrb[45].mxu0 }
 0x686   :  { %v5867_v60 = vpop.f32.mrb[46].mxu0 }
 0x687   :  { %v4387_v18 = vpop.f32.mrb[47].mxu0 }
 0x688   :  { %v1259_v53 = vpop.f32.mrb[44].mxu1 }
 0x689   :  { %v4404_v44 = vpop.f32.mrb[45].mxu1 }
 0x68a   :  { %v1262_v4 = vpop.f32.mrb[46].mxu1 }
 0x68b   :  { %v4784_v58 = vpack.i.bf16 %v1262_v4, %v1259_v53  ;;  %v4405_v42 = vpop.f32.mrb[47].mxu1 }
 0x6a0   :  { %v1318_v32 = vpop.f32.mrb[48].mxu0 }
 0x6a1   :  { %v4414_v9 = vpop.f32.mrb[49].mxu0 }
 0x6a2   :  { %v1321_v26 = vpop.f32.mrb[50].mxu0 }
 0x6a3   :  { %v4759_v16 = vpack.i.bf16 %v1321_v26, %v1318_v32  ;;  %v4415_v43 = vpop.f32.mrb[51].mxu0 }
 0x6a5   :  { %4760 = vrot.lane.b32.xlu1 %v4759_v16, %s5209_s6 }
 0x6a8   :  { %v1326_v6 = vpop.f32.mrb[52].mxu0 }
 0x6a9   :  { %4770 = vrot.lane.b32.xlu1 %v4769_v49, %s5211_s8  ;;  %v4418_v36 = vpop.f32.mrb[53].mxu0 }
 0x6aa   :  { %v1329_v31 = vpop.f32.mrb[54].mxu0 }
 0x6ab   :  { %v4774_v19 = vpack.i.bf16 %v1329_v31, %v1326_v6  ;;  %v4419_v48 = vpop.f32.mrb[55].mxu0 }
 0x6dd   :  { %v1393_v45 = vpop.f32.mrb[48].mxu1 }
 0x6de   :  { %v4432_v57 = vpop.f32.mrb[49].mxu1 }
 0x6df   :  { %v1396_v63 = vpop.f32.mrb[50].mxu1 }
 0x6e0   :  { %v4764_v12 = vpack.i.bf16 %v1396_v63, %v1393_v45  ;;  %v4433_v22 = vpop.f32.mrb[51].mxu1 }
 0x6e1   :  { %v1334_v51 = vpop.f32.mrb[56].mxu0 }
 0x6e2   :  { %4765 = vrot.lane.b32.xlu0 %v4764_v12, %s5207_s0  ;;  %v4422_v3 = vpop.f32.mrb[57].mxu0 }
 0x6e3   :  { %v1337_v54 = vpop.f32.mrb[58].mxu0 }
 0x6e4   :  { %v4789_v38 = vpack.i.bf16 %v1337_v54, %v1334_v51  ;;  %v4423_v7 = vpop.f32.mrb[59].mxu0 }
 0x6e5   :  { %v1401_v5 = vpop.f32.mrb[52].mxu1 }
 0x6e6   :  { %v4436_v1 = vpop.f32.mrb[53].mxu1  ;;  %4775 = vrot.lane.b32.xlu0 %v4774_v19, %s5209_s6 }
 0x6e7   :  { %v1404_v37 = vpop.f32.mrb[54].mxu1 }
 0x6e8   :  { %v4779_v2 = vpack.i.bf16 %v1404_v37, %v1401_v5  ;;  %v4437_v35 = vpop.f32.mrb[55].mxu1 }
 0x6ea   :  { %4780 = vrot.lane.b32.xlu1 %v4779_v2, %s5207_s0  ;;  %4785 = vrot.lane.b32.xlu0 %v4784_v58, %s5211_s8 }
 0x6ed   :  { %v1409_v11 = vpop.f32.mrb[56].mxu1 }
 0x6ee   :  { %v4440_v52 = vpop.f32.mrb[57].mxu1  ;;  %4790 = vrot.lane.b32.xlu1 %v4789_v38, %s5209_s6 }
 0x6ef   :  { %v1412_v21 = vpop.f32.mrb[58].mxu1  ;;  %v4756_v17 = vpop.permute.xlu0 %4755 }
 0x6f0   :  { %v4794_v56 = vpack.i.bf16 %v1412_v21, %v1409_v11  ;;  %v4441_v47 = vpop.f32.mrb[59].mxu1  ;;  %v4758_v55 = vunpack.i.h.bf16 %v4756_v17  ;;  %v4757_v34 = vunpack.i.l.bf16 %v4756_v17 }
 0x6f2   :  { %4795 = vrot.lane.b32.xlu0 %v4794_v56, %s5207_s0  ;;  %v1488_v4 = vsel %vm482_vm3, %v5856_v24, %v4757_v34  ;;  %v1489_v58 = vsel %vm482_vm3, %v5858_v27, %v4758_v55 }
 0x717   :  { %v4761_v49 = vpop.permute.xlu1 %4760 }
 0x718   :  { %v4763_v18 = vunpack.i.h.bf16 %v4761_v49  ;;  %v4762_v53 = vunpack.i.l.bf16 %v4761_v49 }
 0x71a   :  { %v1496_v32 = vsel %vm1494_vm8, %v1489_v58, %v4763_v18  ;;  %v1495_v61 = vsel %vm1494_vm8, %v1488_v4, %v4762_v53 }
 0x71b   :  { %v4771_v9 = vpop.permute.xlu1 %4770 }
 0x71c   :  { %v4773_v6 = vunpack.i.h.bf16 %v4771_v9  ;;  %v4772_v36 = vunpack.i.l.bf16 %v4771_v9 }
 0x71e   :  { %v1491_v19 = vsel %vm482_vm3, %v5863_v41, %v4773_v6  ;;  %v1490_v48 = vsel %vm482_vm3, %v5860_v8, %v4772_v36 }
 0x754   :  { %v4766_v44 = vpop.permute.xlu0 %4765 }
 0x755   :  { %v4768_v42 = vunpack.i.h.bf16 %v4766_v44  ;;  %v4767_v50 = vunpack.i.l.bf16 %v4766_v44 }
 0x757   :  { %v1501_v26 = vsel %vm75_vm1, %v1495_v61, %v4767_v50  ;;  %v1502_v16 = vsel %vm75_vm1, %v1496_v32, %v4768_v42 }
 0x758   :  { %v1507_v43 = vpack.c.bf16 %v1502_v16, %v1501_v26  ;;  %v4776_v46 = vpop.permute.xlu0 %4775 }
 0x759   :  { %v4778_v31 = vunpack.i.h.bf16 %v4776_v46  ;;  %v4777_v24 = vunpack.i.l.bf16 %v4776_v46 }
 0x75a   :  { %4451 = vmatmul.mubr.msk.bf16.vlgmr.msra.gmra.mrb[60].mxu0 %vm227_vm2, %v1507_v43 }
 0x75b   :  { %4454 = vmatprep.mubr.msk.bf16.mxu0 %vm5205_vm0, %v5204_v0  ;;  %v1498_v57 = vsel %vm1494_vm8, %v1491_v19, %v4778_v31  ;;  %v1497_v63 = vsel %vm1494_vm8, %v1490_v48, %v4777_v24 }
 0x75c   :  { %v4781_v27 = vpop.permute.xlu1 %4780  ;;  %v4786_v12 = vpop.permute.xlu0 %4785 }
 0x75d   :  { %v4783_v15 = vunpack.i.h.bf16 %v4781_v27  ;;  %v4782_v45 = vunpack.i.l.bf16 %v4781_v27  ;;  %v4788_v38 = vunpack.i.h.bf16 %v4786_v12  ;;  %v4787_v7 = vunpack.i.l.bf16 %v4786_v12 }
 0x75f   :  { %v1503_v22 = vsel %vm75_vm1, %v1497_v63, %v4782_v45  ;;  %v1504_v51 = vsel %vm75_vm1, %v1498_v57, %v4783_v15  ;;  %v1493_v1 = vsel %vm482_vm3, %v5867_v60, %v4788_v38  ;;  %v1492_v37 = vsel %vm482_vm3, %v5865_v28, %v4787_v7  ;;  %v5932_v28 = vld [vmem:[%s6893_s3] sm:$0xff] }
 0x760   :  { %v4791_v3 = vpop.permute.xlu1 %4790  ;;  %v1508_v54 = vpack.c.bf16 %v1504_v51, %v1503_v22  ;;  %v5927_v60 = vsub.s32 3, %v5379_v25 }
 0x761   :  { %v4793_v5 = vunpack.i.h.bf16 %v4791_v3  ;;  %v4792_v41 = vunpack.i.l.bf16 %v4791_v3 }
 0x762   :  { %4455 = vmatmul.mubr.msk.bf16.gmra.mrb[64].mxu0 %vm227_vm2, %v1508_v54  ;;  %v1617_v17 = vrot.slane %v5932_v28, %v5927_v60 }
 0x763   :  { %4458 = vmatprep.mubr.msk.bf16.mxu0 %vm5205_vm0, %v5204_v0  ;;  %v1500_v11 = vsel %vm1494_vm8, %v1493_v1, %v4793_v5  ;;  %v1499_v52 = vsel %vm1494_vm8, %v1492_v37, %v4792_v41 }
 0x764   :  { %v4796_v8 = vpop.permute.xlu0 %4795 }
 0x765   :  { %v4798_v2 = vunpack.i.h.bf16 %v4796_v8  ;;  %v4797_v35 = vunpack.i.l.bf16 %v4796_v8 }
 0x767   :  { %v1505_v21 = vsel %vm75_vm1, %v1499_v52, %v4797_v35  ;;  %v1506_v56 = vsel %vm75_vm1, %v1500_v11, %v4798_v2 }
 0x768   :  { %v1509_v47 = vpack.c.bf16 %v1506_v56, %v1505_v21 }
 0x76a   :  { %4459 = vmatmul.mubr.msk.bf16.gmra.mrb[68].mxu0 %vm227_vm2, %v1509_v47 }
 0x76b   :  { %4498 = vmatprep.mubr.msk.bf16.mxu0 %vm5205_vm0, %v5204_v0 }
 0x82d   :  { %v1585_v49 = vpop.f32.mrb[60].mxu0 }
 0x82e   :  { %v1608_v55 = vadd.f32 %v1585_v49, %v5280_v10  ;;  %v4452_v34 = vpop.f32.mrb[61].mxu0 }
 0x82f   :  { %v1588_v18 = vpop.f32.mrb[62].mxu0 }
 0x830   :  { %v5937_v53 = vadd.f32 %v1617_v17, %v1608_v55  ;;  %v1609_v44 = vadd.f32 %v1588_v18, %v5282_v13  ;;  %v4453_v4 = vpop.f32.mrb[63].mxu0 }
 0x832   :  { %v5940_v58 = vadd.f32 %v1617_v17, %v1609_v44  ;;  %v1624_v42 = vsel %vm227_vm2, %v5937_v53, 0.0 }
 0x833   :  { %1625 = vadd.xlane.f32.xlu1 %v1624_v42  ;;  %v4866_v42 = vld [vmem:[%s6892_s2 + $0xb0] ss:$8 sps:$4 sm:$0xff]  }
 0x834   :  { %v1627_v50 = vsel %vm227_vm2, %v5940_v58, 0.0  ;;  %4463 = vmatpush3.bf16.msra.mxu1 %v4866_v42 }
 0x835   :  { %1628 = vadd.xlane.f32.xlu0 %v1627_v50  ;;  %v1593_v32 = vpop.f32.mrb[64].mxu0  ;;  %4464 = vmatprep.subr.bf16.mxu1 %v5204_v0  ;;  %v4867_v50 = vld [vmem:[%s6892_s2 + $0xc0] ss:$8 sps:$4 sm:$0xff]  }
 0x836   :  { %v1610_v10 = vadd.f32 %v1593_v32, %v5294_v20  ;;  %v4456_v61 = vpop.f32.mrb[65].mxu0  ;;  %v4868_v32 = vld [vmem:[%s6892_s2 + $0xd0] ss:$8 sps:$4 sm:$0xff]  }
 0x837   :  { %v1596_v9 = vpop.f32.mrb[66].mxu0 }
 0x838   :  { %v5947_v26 = vadd.f32 %v1617_v17, %v1610_v10  ;;  %v1611_v13 = vadd.f32 %v1596_v9, %v5296_v23  ;;  %v4457_v16 = vpop.f32.mrb[67].mxu0  ;;  %4465 = vmatpush3.bf16.msra.mxu1 %v4867_v50  ;;  %v4869_v10 = vld [vmem:[%s6892_s2 + $0xe0] ss:$8 sps:$4 sm:$0xff]  }
 0x839   :  { %4466 = vmatprep.subr.bf16.mxu1 %v5204_v0 }
 0x83a   :  { %v5950_v43 = vadd.f32 %v1617_v17, %v1611_v13  ;;  %v1630_v46 = vsel %vm227_vm2, %v5947_v26, 0.0 }
 0x83b   :  { %1631 = vadd.xlane.f32.xlu0 %v1630_v46 }
 0x83c   :  { %v1633_v6 = vsel %vm227_vm2, %v5950_v43, 0.0  ;;  %4467 = vmatpush3.bf16.msra.mxu1 %v4868_v32 }
 0x83d   :  { %1634 = vadd.xlane.f32.xlu1 %v1633_v6  ;;  %v1601_v36 = vpop.f32.mrb[68].mxu0  ;;  %4468 = vmatprep.subr.bf16.mxu1 %v5204_v0 }
 0x83e   :  { %v1612_v20 = vadd.f32 %v1601_v36, %v5308_v30  ;;  %v4460_v31 = vpop.f32.mrb[69].mxu0 }
 0x83f   :  { %v1604_v24 = vpop.f32.mrb[70].mxu0  ;;  %v1704_v31 = vsub.s32 4, %v5379_v25 }
 0x840   :  { %v5957_v27 = vadd.f32 %v1617_v17, %v1612_v20  ;;  %v1613_v23 = vadd.f32 %v1604_v24, %v5310_v33  ;;  %v4461_v19 = vpop.f32.mrb[71].mxu0  ;;  %4469 = vmatpush3.bf16.msra.mxu1 %v4869_v10 }
 0x842   :  { %v5960_v48 = vadd.f32 %v1617_v17, %v1613_v23  ;;  %v1636_v15 = vsel %vm227_vm2, %v5957_v27, 0.0 }
 0x843   :  { %1637 = vadd.xlane.f32.xlu0 %v1636_v15 }
 0x844   :  { %v1639_v45 = vsel %vm227_vm2, %v5960_v48, 0.0 }
 0x845   :  { %1640 = vadd.xlane.f32.xlu1 %v1639_v45  ;;  %v1705_v45 = vrot.slane %v5932_v28, %v1704_v31 }
 0x8c0   :  { %v1626_v57 = vpop.xlane.xlu1 %1625 }
 0x8c1   :  { %v1642_v63 = vmul.f32 0.015625, %v1626_v57  ;;  %v1714_v57 = vsub.s32 5, %v5379_v25 }
 0x8c2   :  { %v1629_v30 = vpop.xlane.xlu0 %1628 }
 0x8c3   :  { %v5967_v12 = vsub.f32 %v5937_v53, %v1642_v63  ;;  %v1643_v22 = vmul.f32 0.015625, %v1629_v30 }
 0x8c5   :  { %v5970_v33 = vsub.f32 %v5940_v58, %v1643_v22  ;;  %v1654_v51 = vmul.f32 %v5967_v12, %v5967_v12 }
 0x8c7   :  { %v1660_v3 = vsel %vm227_vm2, %v1654_v51, 0.0  ;;  %v1655_v54 = vmul.f32 %v5970_v33, %v5970_v33 }
 0x8c8   :  { %v1632_v38 = vpop.xlane.xlu0 %1631  ;;  %1661 = vadd.xlane.f32.xlu0 %v1660_v3 }
 0x8c9   :  { %v1644_v7 = vmul.f32 0.015625, %v1632_v38  ;;  %v1663_v5 = vsel %vm227_vm2, %v1655_v54, 0.0  ;;  %v1715_v54 = vrot.slane %v5932_v28, %v1714_v57 }
 0x8ca   :  { %v1635_v41 = vpop.xlane.xlu1 %1634  ;;  %1664 = vadd.xlane.f32.xlu1 %v1663_v5 }
 0x8cb   :  { %v5979_v8 = vsub.f32 %v5947_v26, %v1644_v7  ;;  %v1645_v1 = vmul.f32 0.015625, %v1635_v41 }
 0x8cd   :  { %v5982_v37 = vsub.f32 %v5950_v43, %v1645_v1  ;;  %v1656_v2 = vmul.f32 %v5979_v8, %v5979_v8 }
 0x8cf   :  { %v1666_v35 = vsel %vm227_vm2, %v1656_v2, 0.0  ;;  %v1657_v11 = vmul.f32 %v5982_v37, %v5982_v37 }
 0x8d0   :  { %1667 = vadd.xlane.f32.xlu0 %v1666_v35  ;;  %v1638_v52 = vpop.xlane.xlu0 %1637 }
 0x8d1   :  { %v1646_v21 = vmul.f32 0.015625, %v1638_v52  ;;  %v1669_v56 = vsel %vm227_vm2, %v1657_v11, 0.0 }
 0x8d2   :  { %1670 = vadd.xlane.f32.xlu1 %v1669_v56  ;;  %v1641_v47 = vpop.xlane.xlu1 %1640 }
 0x8d3   :  { %v5991_v17 = vsub.f32 %v5957_v27, %v1646_v21  ;;  %v1647_v49 = vmul.f32 0.015625, %v1641_v47 }
 0x8d5   :  { %v5994_v55 = vsub.f32 %v5960_v48, %v1647_v49  ;;  %v1658_v34 = vmul.f32 %v5991_v17, %v5991_v17 }
 0x8d7   :  { %v1672_v18 = vsel %vm227_vm2, %v1658_v34, 0.0  ;;  %v1659_v44 = vmul.f32 %v5994_v55, %v5994_v55 }
 0x8d8   :  { %1673 = vadd.xlane.f32.xlu0 %v1672_v18 }
 0x8d9   :  { %v1675_v4 = vsel %vm227_vm2, %v1659_v44, 0.0 }
 0x8da   :  { %1676 = vadd.xlane.f32.xlu1 %v1675_v4 }
 0x955   :  { %v1662_v61 = vpop.xlane.xlu0 %1661 }
 0x956   :  { %v1678_v9 = vmul.f32 0.015625, %v1662_v61 }
 0x957   :  { %v1665_v13 = vpop.xlane.xlu1 %1664 }
 0x958   :  { %v1684_v16 = vadd.f32 1e-06, %v1678_v9  ;;  %v1679_v46 = vmul.f32 0.015625, %v1665_v13 }
 0x95a   :  { %5020 = vrsqrt.f32 %v1684_v16  ;;  %v1685_v6 = vadd.f32 1e-06, %v1679_v46  ;;  %v4872_v16 = vld [vmem:[%s6892_s2 + $0x110] ss:$8 sps:$4 sm:$0xff]   ;;  %v4873_v46 = vld [vmem:[%s6892_s2 + $0x120] ss:$8 sps:$4 sm:$0xff]  }
 0x95c   :  { %5022 = vrsqrt.f32 %v1685_v6  ;;  %v4874_v6 = vld [vmem:[%s6892_s2 + $0x130] ss:$8 sps:$4 sm:$0xff]  }
 0x95d   :  { %v1668_v36 = vpop.xlane.xlu0 %1667 }
 0x95e   :  { %v1680_v20 = vmul.f32 0.015625, %v1668_v36  ;;  %v4875_v36 = vld [vmem:[%s6892_s2 + $0x140] ss:$8 sps:$4 sm:$0xff]  }
 0x95f   :  { %v1671_v24 = vpop.xlane.xlu1 %1670 }
 0x960   :  { %v1686_v23 = vadd.f32 1e-06, %v1680_v20  ;;  %v1681_v19 = vmul.f32 0.015625, %v1671_v24  ;;  %v4876_v20 = vld [vmem:[%s6892_s2 + $0x150] ss:$8 sps:$4 sm:$0xff]  }
 0x961   :  { %v4877_v24 = vld [vmem:[%s6892_s2 + $0x160] ss:$8 sps:$4 sm:$0xff]  }
 0x962   :  { %5024 = vrsqrt.f32 %v1686_v23  ;;  %v1687_v15 = vadd.f32 1e-06, %v1681_v19  ;;  %v1735_v23 = vsub.s32 6, %v5379_v25 }
 0x964   :  { %v5021_v63 = vpop.eup %5020  ;;  %5026 = vrsqrt.f32 %v1687_v15  ;;  %v1736_v19 = vrot.slane %v5932_v28, %v1735_v23 }
 0x965   :  { %v1696_v30 = vmul.f32 %v5021_v63, %v5967_v12  ;;  %v1674_v22 = vpop.xlane.xlu0 %1673 }
 0x966   :  { %v5023_v51 = vpop.eup %5022  ;;  %v1682_v3 = vmul.f32 0.015625, %v1674_v22 }
 0x967   :  { %v1706_v38 = vmul.f32 %v1705_v45, %v1696_v30  ;;  %v1697_v7 = vmul.f32 %v5023_v51, %v5970_v33  ;;  %v1677_v5 = vpop.xlane.xlu1 %1676 }
 0x968   :  { %v1688_v41 = vadd.f32 1e-06, %v1682_v3  ;;  %v1683_v1 = vmul.f32 0.015625, %v1677_v5 }
 0x969   :  { %v1707_v2 = vmul.f32 %v1705_v45, %v1697_v7  ;;  %v1716_v11 = vadd.f32 %v1715_v54, %v1706_v38 }
 0x96a   :  { %5028 = vrsqrt.f32 %v1688_v41  ;;  %v1689_v35 = vadd.f32 1e-06, %v1683_v1 }
 0x96b   :  { %v1717_v52 = vadd.f32 %v1715_v54, %v1707_v2 }
 0x96c   :  { %v5025_v21 = vpop.eup %5024  ;;  %5030 = vrsqrt.f32 %v1689_v35 }
 0x96d   :  { %v1722_v12 = vpack.c.bf16 %v1717_v52, %v1716_v11  ;;  %v1698_v56 = vmul.f32 %v5025_v21, %v5979_v8 }
 0x96e   :  { %v5027_v47 = vpop.eup %5026 }
 0x96f   :  { %4471 = vmatmul.mubr.msk.bf16.vlgmr.msra.gmra.mrb[60].mxu1 %vm227_vm2, %v1722_v12  ;;  %v1699_v49 = vmul.f32 %v5027_v47, %v5982_v37  ;;  %v1708_v34 = vmul.f32 %v1705_v45, %v1698_v56 }
 0x970   :  { %4474 = vmatprep.mubr.msk.bf16.mxu1 %vm5205_vm0, %v5204_v0 }
 0x971   :  { %v1709_v33 = vmul.f32 %v1705_v45, %v1699_v49  ;;  %v1718_v18 = vadd.f32 %v1715_v54, %v1708_v34 }
 0x973   :  { %v1719_v44 = vadd.f32 %v1715_v54, %v1709_v33 }
 0x974   :  { %v5029_v4 = vpop.eup %5028 }
 0x975   :  { %v1723_v42 = vpack.c.bf16 %v1719_v44, %v1718_v18  ;;  %v1700_v50 = vmul.f32 %v5029_v4, %v5991_v17  ;;  %v4870_v17 = vld [vmem:[%s6892_s2 + $0xf0] ss:$8 sps:$4 sm:$0xff]  }
 0x976   :  { %v5031_v32 = vpop.eup %5030  ;;  %4483 = vmatpush3.bf16.msra.mxu0 %v4870_v17 }
 0x977   :  { %4475 = vmatmul.mubr.msk.bf16.gmra.mrb[64].mxu1 %vm227_vm2, %v1723_v42  ;;  %v1701_v8 = vmul.f32 %v5031_v32, %v5994_v55  ;;  %v1710_v10 = vmul.f32 %v1705_v45, %v1700_v50  ;;  %4484 = vmatprep.subr.bf16.mxu0 %v5204_v0  ;;  %v4871_v55 = vld [vmem:[%s6892_s2 + $0x100] ss:$8 sps:$4 sm:$0xff]  }
 0x978   :  { %4478 = vmatprep.mubr.msk.bf16.mxu1 %vm5205_vm0, %v5204_v0 }
 0x979   :  { %v1711_v37 = vmul.f32 %v1705_v45, %v1701_v8  ;;  %v1720_v61 = vadd.f32 %v1715_v54, %v1710_v10 }
 0x97a   :  { %4485 = vmatpush3.bf16.msra.mxu0 %v4871_v55 }
 0x97b   :  { %v1721_v9 = vadd.f32 %v1715_v54, %v1711_v37  ;;  %4486 = vmatprep.subr.bf16.mxu0 %v5204_v0 }
 0x97d   :  { %v1724_v13 = vpack.c.bf16 %v1721_v9, %v1720_v61 }
 0x97e   :  { %4487 = vmatpush3.bf16.msra.mxu0 %v4872_v16 }
 0x97f   :  { %4479 = vmatmul.mubr.msk.bf16.gmra.mrb[68].mxu1 %vm227_vm2, %v1724_v13  ;;  %4488 = vmatprep.subr.bf16.mxu0 %v5204_v0 }
 0x980   :  { %2219 = vmatprep.mubr.bf16.mxu1 %v5206_v14 }
 0x982   :  { %4489 = vmatpush3.bf16.msra.mxu0 %v4873_v46 }
 0x983   :  { %4490 = vmatprep.subr.bf16.mxu0 %v5204_v0 }
 0x986   :  { %4491 = vmatpush3.bf16.msra.mxu0 %v4874_v6 }
 0x987   :  { %4492 = vmatprep.subr.bf16.mxu0 %v5204_v0 }
 0x98a   :  { %4493 = vmatpush3.bf16.msra.mxu0 %v4875_v36 }
 0x98b   :  { %4494 = vmatprep.subr.bf16.mxu0 %v5204_v0 }
 0x98e   :  { %4495 = vmatpush3.bf16.msra.mxu0 %v4876_v20 }
 0x98f   :  { %4496 = vmatprep.subr.bf16.mxu0 %v5204_v0 }
 0x992   :  { %4497 = vmatpush3.bf16.msra.mxu0 %v4877_v24 }
 0x993   :  { %4528 = vmatprep.subr.bf16.mxu0 %v5204_v0 }
 0xa42   :  { %v1804_v15 = vpop.f32.mrb[60].mxu1 }
 0xa43   :  { %v1805_v45 = vadd.f32 %v1804_v15, %v1736_v19  ;;  %v4472_v63 = vpop.f32.mrb[61].mxu1 }
 0xa44   :  { %v1807_v30 = vpop.f32.mrb[62].mxu1 }
 0xa45   :  { %v1827_v22 = vmul.f32 %v1805_v45, %v1805_v45  ;;  %v1808_v51 = vadd.f32 %v1807_v30, %v1736_v19  ;;  %v4473_v3 = vpop.f32.mrb[63].mxu1 }
 0xa47   :  { %v1833_v54 = vmul.f32 %v1827_v22, %v1805_v45  ;;  %v1828_v38 = vmul.f32 %v1808_v51, %v1808_v51 }
 0xa49   :  { %v1839_v7 = vmul.f32 0.044715, %v1833_v54  ;;  %v1834_v5 = vmul.f32 %v1828_v38, %v1808_v51 }
 0xa4a   :  { %v1812_v41 = vpop.f32.mrb[64].mxu1 }
 0xa4b   :  { %v1845_v1 = vadd.f32 %v1839_v7, %v1805_v45  ;;  %v1840_v2 = vmul.f32 0.044715, %v1834_v5  ;;  %v1813_v35 = vadd.f32 %v1812_v41, %v1736_v19  ;;  %v4476_v11 = vpop.f32.mrb[65].mxu1 }
 0xa4c   :  { %v1815_v52 = vpop.f32.mrb[66].mxu1 }
 0xa4d   :  { %v1851_v21 = vmul.f32 0.7978846, %v1845_v1  ;;  %v1846_v12 = vadd.f32 %v1840_v2, %v1808_v51  ;;  %v1829_v56 = vmul.f32 %v1813_v35, %v1813_v35  ;;  %v1816_v47 = vadd.f32 %v1815_v52, %v1736_v19  ;;  %v4477_v49 = vpop.f32.mrb[67].mxu1 }
 0xa4f   :  { %5032 = vtanh.f32 %v1851_v21  ;;  %v1852_v34 = vmul.f32 0.7978846, %v1846_v12  ;;  %v1835_v33 = vmul.f32 %v1829_v56, %v1813_v35  ;;  %v1830_v18 = vmul.f32 %v1816_v47, %v1816_v47 }
 0xa51   :  { %5034 = vtanh.f32 %v1852_v34  ;;  %v1841_v44 = vmul.f32 0.044715, %v1835_v33  ;;  %v1836_v4 = vmul.f32 %v1830_v18, %v1816_v47 }
 0xa52   :  { %v1820_v42 = vpop.f32.mrb[68].mxu1 }
 0xa53   :  { %v1847_v50 = vadd.f32 %v1841_v44, %v1813_v35  ;;  %v1842_v32 = vmul.f32 0.044715, %v1836_v4  ;;  %v1821_v8 = vadd.f32 %v1820_v42, %v1736_v19  ;;  %v4480_v10 = vpop.f32.mrb[69].mxu1 }
 0xa54   :  { %v1823_v37 = vpop.f32.mrb[70].mxu1 }
 0xa55   :  { %v1853_v61 = vmul.f32 0.7978846, %v1847_v50  ;;  %v1848_v9 = vadd.f32 %v1842_v32, %v1816_v47  ;;  %v1831_v13 = vmul.f32 %v1821_v8, %v1821_v8  ;;  %v1824_v17 = vadd.f32 %v1823_v37, %v1736_v19  ;;  %v4481_v55 = vpop.f32.mrb[71].mxu1 }
 0xa57   :  { %5036 = vtanh.f32 %v1853_v61  ;;  %v1854_v16 = vmul.f32 0.7978846, %v1848_v9  ;;  %v1837_v46 = vmul.f32 %v1831_v13, %v1821_v8  ;;  %v1832_v6 = vmul.f32 %v1824_v17, %v1824_v17 }
 0xa59   :  { %v5033_v36 = vpop.eup %5032  ;;  %5038 = vtanh.f32 %v1854_v16  ;;  %v1843_v20 = vmul.f32 0.044715, %v1837_v46  ;;  %v1838_v24 = vmul.f32 %v1832_v6, %v1824_v17 }
 0xa5a   :  { %v1863_v15 = vadd.f32 1.0, %v5033_v36 }
 0xa5b   :  { %v5035_v63 = vpop.eup %5034  ;;  %v1849_v30 = vadd.f32 %v1843_v20, %v1821_v8  ;;  %v1844_v22 = vmul.f32 0.044715, %v1838_v24 }
 0xa5c   :  { %v1869_v3 = vmul.f32 0.5, %v1863_v15  ;;  %v1864_v54 = vadd.f32 1.0, %v5035_v63 }
 0xa5d   :  { %v1855_v38 = vmul.f32 0.7978846, %v1849_v30  ;;  %v1850_v7 = vadd.f32 %v1844_v22, %v1824_v17 }
 0xa5e   :  { %v1870_v5 = vmul.f32 0.5, %v1864_v54  ;;  %v1875_v41 = vmul.f32 %v1869_v3, %v1805_v45 }
 0xa5f   :  { %5040 = vtanh.f32 %v1855_v38  ;;  %v1856_v19 = vmul.f32 0.7978846, %v1850_v7 }
 0xa60   :  { %v1876_v1 = vmul.f32 %v1870_v5, %v1808_v51 }
 0xa61   :  { %v5037_v2 = vpop.eup %5036  ;;  %5042 = vtanh.f32 %v1856_v19 }
 0xa62   :  { %v1881_v11 = vpack.c.bf16 %v1876_v1, %v1875_v41  ;;  %v1865_v52 = vadd.f32 1.0, %v5037_v2 }
 0xa63   :  { %v5039_v21 = vpop.eup %5038 }
 0xa64   :  { %4499 = vmatmul.mubr.bf16.vlgmr.msra.gmra.mrb[72].mxu0 %v1881_v11  ;;  %v1866_v12 = vadd.f32 1.0, %v5039_v21  ;;  %v1871_v56 = vmul.f32 0.5, %v1865_v52 }
 0xa65   :  { %4502 = vmatprep.mubr.msk.bf16.mxu0 %vm5205_vm0, %v5204_v0 }
 0xa66   :  { %v1872_v49 = vmul.f32 0.5, %v1866_v12  ;;  %v1877_v34 = vmul.f32 %v1871_v56, %v1813_v35  ;;  %v2013_v35 = vsub.s32 7, %v5379_v25  ;;  %v4906_v25 = vld [vmem:[%s6892_s2 + $0x2b0] ss:$8 sps:$4 sm:$0xff]  }
 0xa68   :  { %v1878_v33 = vmul.f32 %v1872_v49, %v1816_v47  ;;  %v2014_v47 = vrot.slane %v5932_v28, %v2013_v35 }
 0xa69   :  { %v5041_v18 = vpop.eup %5040 }
 0xa6a   :  { %v1882_v44 = vpack.c.bf16 %v1878_v33, %v1877_v34  ;;  %v1867_v4 = vadd.f32 1.0, %v5041_v18 }
 0xa6b   :  { %v5043_v42 = vpop.eup %5042 }
 0xa6c   :  { %4503 = vmatmul.mubr.bf16.gmra.mrb[76].mxu0 %v1882_v44  ;;  %v1868_v45 = vadd.f32 1.0, %v5043_v42  ;;  %v1873_v51 = vmul.f32 0.5, %v1867_v4 }
 0xa6d   :  { %4506 = vmatprep.mubr.msk.bf16.mxu0 %vm5205_vm0, %v5204_v0 }
 0xa6e   :  { %v1874_v50 = vmul.f32 0.5, %v1868_v45  ;;  %v1879_v32 = vmul.f32 %v1873_v51, %v1821_v8 }
 0xa70   :  { %v1880_v10 = vmul.f32 %v1874_v50, %v1824_v17 }
 0xa72   :  { %v1883_v37 = vpack.c.bf16 %v1880_v10, %v1879_v32 }
 0xa74   :  { %4507 = vmatmul.mubr.bf16.gmra.mrb[80].mxu0 %v1883_v37 }
 0xa75   :  { %4534 = vmatprep.mubr.msk.bf16.mxu0 %vm5205_vm0, %v5204_v0 }
 0xb37   :  { %v1982_v61 = vpop.f32.mrb[72].mxu0 }
 0xb38   :  { %v2005_v9 = vadd.f32 %v1982_v61, %v5937_v53  ;;  %v4500_v13 = vpop.f32.mrb[73].mxu0 }
 0xb39   :  { %v1985_v55 = vpop.f32.mrb[74].mxu0 }
 0xb3a   :  { %v6086_v16 = vadd.f32 %v2014_v47, %v2005_v9  ;;  %v2006_v8 = vadd.f32 %v1985_v55, %v5940_v58  ;;  %v4501_v17 = vpop.f32.mrb[75].mxu0 }
 0xb3c   :  { %v6089_v46 = vadd.f32 %v2014_v47, %v2006_v8  ;;  %v2021_v6 = vsel %vm227_vm2, %v6086_v16, 0.0 }
 0xb3d   :  { %2022 = vadd.xlane.f32.xlu0 %v2021_v6 }
 0xb3e   :  { %v2024_v36 = vsel %vm227_vm2, %v6089_v46, 0.0 }
 0xb3f   :  { %2025 = vadd.xlane.f32.xlu1 %v2024_v36  ;;  %v1990_v28 = vpop.f32.mrb[76].mxu0 }
 0xb40   :  { %v2007_v53 = vadd.f32 %v1990_v28, %v5947_v26  ;;  %v4504_v20 = vpop.f32.mrb[77].mxu0 }
 0xb41   :  { %v1993_v24 = vpop.f32.mrb[78].mxu0  ;;  %v4878_v20 = vld [vmem:[%s6892_s2 + $0x170] ss:$8 sps:$4 sm:$0xff]  }
 0xb42   :  { %v6096_v15 = vadd.f32 %v2014_v47, %v2007_v53  ;;  %v2008_v58 = vadd.f32 %v1993_v24, %v5950_v43  ;;  %v4505_v63 = vpop.f32.mrb[79].mxu0  ;;  %v4880_v53 = vld [vmem:[%s6892_s2 + $0x174] ss:$8 sps:$4 sm:$0xff]   ;;  %v4883_v24 = vld [vmem:[%s6892_s2 + $0x184] ss:$8 sps:$4 sm:$0xff]  }
 0xb43   :  { %2187 = vmatprep.subr.bf16.mxu1 %v4880_v53  ;;  %v4886_v63 = vld [vmem:[%s6892_s2 + $0x194] ss:$8 sps:$4 sm:$0xff]  }
 0xb44   :  { %v6099_v30 = vadd.f32 %v2014_v47, %v2008_v58  ;;  %v2027_v22 = vsel %vm227_vm2, %v6096_v15, 0.0  ;;  %2188 = vmatpush1.bf16.msra.mxu1 %v4878_v20  ;;  %v4881_v58 = vld [vmem:[%s6892_s2 + $0x180] ss:$8 sps:$4 sm:$0xff]  }
 0xb45   :  { %2028 = vadd.xlane.f32.xlu0 %v2027_v22  ;;  %2189 = vmatprep.subr.bf16.mxu1 %v4883_v24  ;;  %v4884_v22 = vld [vmem:[%s6892_s2 + $0x190] ss:$8 sps:$4 sm:$0xff]  }
 0xb46   :  { %v2030_v3 = vsel %vm227_vm2, %v6099_v30, 0.0 }
 0xb47   :  { %2031 = vadd.xlane.f32.xlu1 %v2030_v3  ;;  %v1998_v54 = vpop.f32.mrb[80].mxu0  ;;  %v4889_v3 = vld [vmem:[%s6892_s2 + $0x1a4] ss:$8 sps:$4 sm:$0xff]  }
 0xb48   :  { %v2009_v26 = vadd.f32 %v1998_v54, %v5957_v27  ;;  %v4508_v38 = vpop.f32.mrb[81].mxu0  ;;  %2190 = vmatpush1.bf16.msra.mxu1 %v4881_v58  ;;  %v4887_v54 = vld [vmem:[%s6892_s2 + $0x1a0] ss:$8 sps:$4 sm:$0xff]  }
 0xb49   :  { %v2001_v7 = vpop.f32.mrb[82].mxu0  ;;  %2191 = vmatprep.subr.bf16.mxu1 %v4886_v63 }
 0xb4a   :  { %v6106_v5 = vadd.f32 %v2014_v47, %v2009_v26  ;;  %v2010_v43 = vadd.f32 %v2001_v7, %v5960_v48  ;;  %v4509_v19 = vpop.f32.mrb[83].mxu0 }
 0xb4c   :  { %v6109_v41 = vadd.f32 %v2014_v47, %v2010_v43  ;;  %v2033_v1 = vsel %vm227_vm2, %v6106_v5, 0.0  ;;  %2192 = vmatpush1.bf16.msra.mxu1 %v4884_v22 }
 0xb4d   :  { %2034 = vadd.xlane.f32.xlu0 %v2033_v1  ;;  %2193 = vmatprep.subr.bf16.mxu1 %v4889_v3 }
 0xb4e   :  { %v2036_v2 = vsel %vm227_vm2, %v6109_v41, 0.0 }
 0xb4f   :  { %2037 = vadd.xlane.f32.xlu1 %v2036_v2 }
 0xb50   :  { %2194 = vmatpush1.bf16.msra.mxu1 %v4887_v54 }
 0xb51   :  { %4510 = vmatprep.subr.bf16.mxu1 %v5204_v0 }
 0xbca   :  { %v2023_v11 = vpop.xlane.xlu0 %2022 }
 0xbcb   :  { %v2039_v52 = vmul.f32 0.015625, %v2023_v11 }
 0xbcc   :  { %v2026_v27 = vpop.xlane.xlu1 %2025 }
 0xbcd   :  { %v6116_v21 = vsub.f32 %v6086_v16, %v2039_v52  ;;  %v2040_v12 = vmul.f32 0.015625, %v2026_v27  ;;  %v21_v27 = vld [vmem:[%s6893_s3 + $0x10] sm:$0xff] }
 0xbcf   :  { %v6119_v48 = vsub.f32 %v6089_v46, %v2040_v12  ;;  %v2051_v56 = vmul.f32 %v6116_v21, %v6116_v21 }
 0xbd1   :  { %v2057_v49 = vsel %vm227_vm2, %v2051_v56, 0.0  ;;  %v2052_v34 = vmul.f32 %v6119_v48, %v6119_v48 }
 0xbd2   :  { %v2029_v33 = vpop.xlane.xlu0 %2028  ;;  %2058 = vadd.xlane.f32.xlu0 %v2057_v49 }
 0xbd3   :  { %v2041_v18 = vmul.f32 0.015625, %v2029_v33  ;;  %v2060_v44 = vsel %vm227_vm2, %v2052_v34, 0.0  ;;  %v2102_v34 = vrot.slane %v21_v27, %v5382_v29 }
 0xbd4   :  { %v2032_v4 = vpop.xlane.xlu1 %2031  ;;  %2061 = vadd.xlane.f32.xlu1 %v2060_v44 }
 0xbd5   :  { %v6128_v42 = vsub.f32 %v6096_v15, %v2041_v18  ;;  %v2042_v45 = vmul.f32 0.015625, %v2032_v4 }
 0xbd7   :  { %v6131_v51 = vsub.f32 %v6099_v30, %v2042_v45  ;;  %v2053_v50 = vmul.f32 %v6128_v42, %v6128_v42 }
 0xbd9   :  { %v2063_v32 = vsel %vm227_vm2, %v2053_v50, 0.0  ;;  %v2054_v10 = vmul.f32 %v6131_v51, %v6131_v51  ;;  %v2112_v50 = vrot.slane %v21_v27, %v5390_v40 }
 0xbda   :  { %2064 = vadd.xlane.f32.xlu0 %v2063_v32  ;;  %v2035_v37 = vpop.xlane.xlu0 %2034 }
 0xbdb   :  { %v2043_v47 = vmul.f32 0.015625, %v2035_v37  ;;  %v2066_v61 = vsel %vm227_vm2, %v2054_v10, 0.0 }
 0xbdc   :  { %2067 = vadd.xlane.f32.xlu1 %v2066_v61  ;;  %v2038_v9 = vpop.xlane.xlu1 %2037 }
 0xbdd   :  { %v6140_v13 = vsub.f32 %v6106_v5, %v2043_v47  ;;  %v2044_v55 = vmul.f32 0.015625, %v2038_v9 }
 0xbdf   :  { %v6143_v8 = vsub.f32 %v6109_v41, %v2044_v55  ;;  %v2055_v17 = vmul.f32 %v6140_v13, %v6140_v13 }
 0xbe1   :  { %v2069_v6 = vsel %vm227_vm2, %v2055_v17, 0.0  ;;  %v2056_v36 = vmul.f32 %v6143_v8, %v6143_v8 }
 0xbe2   :  { %2070 = vadd.xlane.f32.xlu0 %v2069_v6 }
 0xbe3   :  { %v2072_v28 = vsel %vm227_vm2, %v2056_v36, 0.0 }
 0xbe4   :  { %2073 = vadd.xlane.f32.xlu1 %v2072_v28 }
 0xc5f   :  { %v2059_v26 = vpop.xlane.xlu0 %2058 }
 0xc60   :  { %v2075_v38 = vmul.f32 0.015625, %v2059_v26 }
 0xc61   :  { %v2062_v7 = vpop.xlane.xlu1 %2061 }
 0xc62   :  { %v2081_v43 = vadd.f32 1e-06, %v2075_v38  ;;  %v2076_v19 = vmul.f32 0.015625, %v2062_v7 }
 0xc64   :  { %5044 = vrsqrt.f32 %v2081_v43  ;;  %v2082_v1 = vadd.f32 1e-06, %v2076_v19 }
 0xc66   :  { %5046 = vrsqrt.f32 %v2082_v1  ;;  %v2133_v1 = vrot.slane %v21_v27, %v5406_v59 }
 0xc67   :  { %v2065_v2 = vpop.xlane.xlu0 %2064 }
 0xc68   :  { %v2077_v11 = vmul.f32 0.015625, %v2065_v2 }
 0xc69   :  { %v2068_v52 = vpop.xlane.xlu1 %2067 }
 0xc6a   :  { %v2083_v12 = vadd.f32 1e-06, %v2077_v11  ;;  %v2078_v56 = vmul.f32 0.015625, %v2068_v52 }
 0xc6c   :  { %5048 = vrsqrt.f32 %v2083_v12  ;;  %v2084_v49 = vadd.f32 1e-06, %v2078_v56 }
 0xc6e   :  { %v5045_v33 = vpop.eup %5044  ;;  %5050 = vrsqrt.f32 %v2084_v49 }
 0xc6f   :  { %v2093_v18 = vmul.f32 %v5045_v33, %v6116_v21  ;;  %v2071_v44 = vpop.xlane.xlu0 %2070 }
 0xc70   :  { %v5047_v4 = vpop.eup %5046  ;;  %v2079_v45 = vmul.f32 0.015625, %v2071_v44 }
 0xc71   :  { %v2103_v32 = vmul.f32 %v2102_v34, %v2093_v18  ;;  %v2094_v10 = vmul.f32 %v5047_v4, %v6119_v48  ;;  %v2074_v37 = vpop.xlane.xlu1 %2073 }
 0xc72   :  { %v2085_v47 = vadd.f32 1e-06, %v2079_v45  ;;  %v2080_v61 = vmul.f32 0.015625, %v2074_v37 }
 0xc73   :  { %v2104_v9 = vmul.f32 %v2102_v34, %v2094_v10  ;;  %v2113_v17 = vadd.f32 %v2112_v50, %v2103_v32 }
 0xc74   :  { %5052 = vrsqrt.f32 %v2085_v47  ;;  %v2086_v55 = vadd.f32 1e-06, %v2080_v61 }
 0xc75   :  { %v2114_v6 = vadd.f32 %v2112_v50, %v2104_v9 }
 0xc76   :  { %v5049_v36 = vpop.eup %5048  ;;  %5054 = vrsqrt.f32 %v2086_v55 }
 0xc77   :  { %v2119_v28 = vpack.c.bf16 %v2114_v6, %v2113_v17  ;;  %v2095_v21 = vmul.f32 %v5049_v36, %v6128_v42 }
 0xc78   :  { %v5051_v53 = vpop.eup %5050 }
 0xc79   :  { %v2096_v20 = vmul.f32 %v5051_v53, %v6131_v51  ;;  %4063 = vmatmul.mubr.msk.bf16.vlgmr.msra.gmra.mrb[72].mxu1 %vm227_vm2, %v2119_v28  ;;  %v2105_v24 = vmul.f32 %v2102_v34, %v2095_v21 }
 0xc7a   :  { %2229 = vmatprep.mubr.bf16.mxu1 %v5206_v14 }
 0xc7b   :  { %v2106_v48 = vmul.f32 %v2102_v34, %v2096_v20  ;;  %v2115_v58 = vadd.f32 %v2112_v50, %v2105_v24 }
 0xc7d   :  { %v2116_v63 = vadd.f32 %v2112_v50, %v2106_v48 }
 0xc7e   :  { %v5053_v22 = vpop.eup %5052 }
 0xc7f   :  { %v2120_v3 = vpack.c.bf16 %v2116_v63, %v2115_v58  ;;  %v2097_v54 = vmul.f32 %v5053_v22, %v6140_v13  ;;  %v22_v13 = vld [vmem:[%s6893_s3 + $0x18] sm:$0xff] }
 0xc80   :  { %v5055_v26 = vpop.eup %5054  ;;  %v2137_v2 = vrot.slane %v22_v13, %v5406_v59 }
 0xc81   :  { %v2098_v38 = vmul.f32 %v5055_v26, %v6143_v8  ;;  %4064 = vmatmul.mubr.msk.bf16.gmra.mrb[76].mxu1 %vm227_vm2, %v2120_v3  ;;  %v2107_v42 = vmul.f32 %v2102_v34, %v2097_v54 }
 0xc82   :  { %2239 = vmatprep.mubr.bf16.mxu1 %v5206_v14 }
 0xc83   :  { %v2108_v51 = vmul.f32 %v2102_v34, %v2098_v38  ;;  %v2117_v7 = vadd.f32 %v2112_v50, %v2107_v42 }
 0xc85   :  { %v2118_v43 = vadd.f32 %v2112_v50, %v2108_v51 }
 0xc87   :  { %v2121_v19 = vpack.c.bf16 %v2118_v43, %v2117_v7 }
 0xc89   :  { %4065 = vmatmul.mubr.msk.bf16.gmra.mrb[80].mxu1 %vm227_vm2, %v2121_v19 }
 0xc8a   :  { %4516 = vmatprep.mubr.msk.bf16.mxu1 %vm5205_vm0, %v5204_v0 }
 0xd4c   :  { %v2221_v8 = vpop.f32.mrb[72].mxu1 }
 0xd4d   :  { %v2222_v11 = vadd.f32 %v2221_v8, %v2133_v1  ;;  %v2223_v14 = vpop.f32.mrb[73].mxu1 }
 0xd4e   :  { %v2225_v52 = vpop.f32.mrb[74].mxu1  ;;  %v2224_v49 = vadd.f32 %v2223_v14, %v2137_v2 }
 0xd4f   :  { %v2226_v12 = vadd.f32 %v2225_v52, %v2133_v1  ;;  %v2227_v56 = vpop.f32.mrb[75].mxu1  ;;  %v2250_v33 = vmul.f32 0.25, %v2222_v11 }
 0xd50   :  { %v2228_v34 = vadd.f32 %v2227_v56, %v2137_v2 }
 0xd51   :  { %v2251_v18 = vmul.f32 0.25, %v2226_v12  ;;  %v2259_v44 = vpack.c.bf16 %v2226_v12, %v2222_v11 }
 0xd52   :  { %v6199_v4 = vpack.c.bf16 %v2228_v34, %v2224_v49 }
 0xd53   :  { %v6201_v27 = vpack.c.bf16 %v2251_v18, %v2250_v33  ;;  %2358 = vrot.lane.b32.xlu1 %v2259_v44, %s5207_s0  ;;  %2268 = vrot.lane.b32.xlu0 %v2259_v44, %s5208_s5 }
 0xd54   :  { %v2231_v45 = vpop.f32.mrb[76].mxu1 }
 0xd55   :  { %v2232_v50 = vadd.f32 %v2231_v45, %v2133_v1  ;;  %v2233_v32 = vpop.f32.mrb[77].mxu1 }
 0xd56   :  { %v2235_v10 = vpop.f32.mrb[78].mxu1  ;;  %v2234_v61 = vadd.f32 %v2233_v32, %v2137_v2 }
 0xd57   :  { %v2236_v37 = vadd.f32 %v2235_v10, %v2133_v1  ;;  %v2237_v47 = vpop.f32.mrb[79].mxu1  ;;  %v2252_v55 = vmul.f32 0.25, %v2232_v50 }
 0xd58   :  { %v2238_v9 = vadd.f32 %v2237_v47, %v2137_v2 }
 0xd59   :  { %v2253_v17 = vmul.f32 0.25, %v2236_v37  ;;  %v2260_v6 = vpack.c.bf16 %v2236_v37, %v2232_v50 }
 0xd5a   :  { %v6205_v36 = vpack.c.bf16 %v2238_v9, %v2234_v61 }
 0xd5b   :  { %v6207_v28 = vpack.c.bf16 %v2253_v17, %v2252_v55  ;;  %2360 = vrot.lane.b32.xlu0 %v2260_v6, %s5207_s0  ;;  %2270 = vrot.lane.b32.xlu1 %v2260_v6, %s5208_s5 }
 0xd5c   :  { %v2241_v21 = vpop.f32.mrb[80].mxu1 }
 0xd5d   :  { %v2242_v53 = vadd.f32 %v2241_v21, %v2133_v1  ;;  %v2243_v20 = vpop.f32.mrb[81].mxu1 }
 0xd5e   :  { %v2244_v24 = vadd.f32 %v2243_v20, %v2137_v2  ;;  %v2245_v48 = vpop.f32.mrb[82].mxu1 }
 0xd5f   :  { %v2246_v58 = vadd.f32 %v2245_v48, %v2133_v1  ;;  %v2247_v63 = vpop.f32.mrb[83].mxu1  ;;  %v2254_v3 = vmul.f32 0.25, %v2242_v53 }
 0xd60   :  { %v2248_v22 = vadd.f32 %v2247_v63, %v2137_v2 }
 0xd61   :  { %v2255_v54 = vmul.f32 0.25, %v2246_v58  ;;  %v2261_v26 = vpack.c.bf16 %v2246_v58, %v2242_v53 }
 0xd62   :  { %v6211_v38 = vpack.c.bf16 %v2248_v22, %v2244_v24 }
 0xd63   :  { %v6213_v42 = vpack.c.bf16 %v2255_v54, %v2254_v3  ;;  %2362 = vrot.lane.b32.xlu0 %v2261_v26, %s5207_s0  ;;  %2272 = vrot.lane.b32.xlu1 %v2261_v26, %s5208_s5 }
 0xd67   :  { %2352 = vrot.lane.b32.xlu0 %v6201_v27, %s5210_s7  ;;  %2445 = vrot.lane.b32.xlu1 %v2259_v44, %s5209_s6 }
 0xd6b   :  { %2447 = vrot.lane.b32.xlu0 %v2260_v6, %s5209_s6  ;;  %2532 = vrot.lane.b32.xlu1 %v2259_v44, %s5211_s8 }
 0xd6f   :  { %2534 = vrot.lane.b32.xlu0 %v2260_v6, %s5211_s8  ;;  %2354 = vrot.lane.b32.xlu1 %v6207_v28, %s5210_s7 }
 0xd73   :  { %2449 = vrot.lane.b32.xlu1 %v2261_v26, %s5209_s6  ;;  %2356 = vrot.lane.b32.xlu0 %v6213_v42, %s5210_s7 }
 0xd77   :  { %2536 = vrot.lane.b32.xlu1 %v2261_v26, %s5211_s8  ;;  %2439 = vrot.lane.b32.xlu0 %v6201_v27, %s5212_s9 }
 0xd7b   :  { %2526 = vrot.lane.b32.xlu1 %v6201_v27, %s5213_s10  ;;  %2441 = vrot.lane.b32.xlu0 %v6207_v28, %s5212_s9 }
 0xd7f   :  { %2528 = vrot.lane.b32.xlu1 %v6207_v28, %s5213_s10  ;;  %2443 = vrot.lane.b32.xlu0 %v6213_v42, %s5212_s9 }
 0xd83   :  { %2530 = vrot.lane.b32.xlu1 %v6213_v42, %s5213_s10  ;;  %2984 = vrot.lane.b32.xlu0 %v6205_v36, %s5210_s7 }
 0xd87   :  { %2982 = vrot.lane.b32.xlu1 %v6199_v4, %s5210_s7 }
 0xdc5   :  { %v2269_v51 = vpop.permute.xlu0 %2268  ;;  %v2359_v7 = vpop.permute.xlu1 %2358 }
 0xdc6   :  { %v2284_v43 = vsel %vm482_vm3, %v2269_v51, 0  ;;  %v2374_v19 = vsel %vm482_vm3, %v2359_v7, 0 }
 0xdc7   :  { %4511 = vmatpush3.bf16.xpose.msra.mxu1 %v2284_v43  ;;  %4529 = vmatpush3.bf16.xpose.msra.mxu0 %v2374_v19 }
 0xdc8   :  { %4512 = vmatprep.subr.bf16.mxu1 %v5204_v0  ;;  %4530 = vmatprep.subr.bf16.mxu0 %v5204_v0 }
 0xdcd   :  { %v2361_v1 = vpop.permute.xlu0 %2360  ;;  %v2271_v13 = vpop.permute.xlu1 %2270 }
 0xdce   :  { %v2377_v8 = vsel %vm482_vm3, %v2361_v1, 0  ;;  %v2287_v2 = vsel %vm482_vm3, %v2271_v13, 0 }
 0xdcf   :  { %4513 = vmatpush3.bf16.xpose.msra.mxu1 %v2287_v2  ;;  %4531 = vmatpush3.bf16.xpose.msra.mxu0 %v2377_v8 }
 0xdd0   :  { %4514 = vmatprep.subr.bf16.mxu1 %v5204_v0  ;;  %4532 = vmatprep.subr.bf16.mxu0 %v5204_v0 }
 0xdd5   :  { %v2363_v11 = vpop.permute.xlu0 %2362  ;;  %v2273_v14 = vpop.permute.xlu1 %2272 }
 0xdd6   :  { %v2380_v52 = vsel %vm482_vm3, %v2363_v11, 0  ;;  %v2290_v12 = vsel %vm482_vm3, %v2273_v14, 0 }
 0xdd7   :  { %4515 = vmatpush3.bf16.xpose.msra.mxu1 %v2290_v12  ;;  %4533 = vmatpush3.bf16.xpose.msra.mxu0 %v2380_v52 }
 0xdd8   :  { %4546 = vmatprep.subr.bf16.mxu1 %v5204_v0  ;;  %4564 = vmatprep.subr.bf16.mxu0 %v5204_v0 }
 0xdd9   :  { %v2353_v56 = vpop.permute.xlu0 %2352  ;;  %v2446_v49 = vpop.permute.xlu1 %2445 }
 0xdda   :  { %v2461_v18 = vsel %vm482_vm3, %v2446_v49, 0 }
 0xddd   :  { %v2448_v34 = vpop.permute.xlu0 %2447  ;;  %v2533_v33 = vpop.permute.xlu1 %2532 }
 0xdde   :  { %v2548_v44 = vsel %vm482_vm3, %v2533_v33, 0  ;;  %4517 = vmatmul.mubr.msk.bf16.vlgmr.msra.gmra.mrb[84].mxu1 %vm482_vm3, %v6201_v27  ;;  %4535 = vmatmul.mubr.msk.bf16.vlgmr.msra.gmra.mrb[84].mxu0 %vm482_vm3, %v2353_v56  ;;  %v2464_v10 = vsel %vm482_vm3, %v2448_v34, 0 }
 0xddf   :  { %4547 = vmatpush3.bf16.xpose.msra.mxu1 %v2461_v18  ;;  %4565 = vmatpush3.bf16.xpose.msra.mxu0 %v2548_v44 }
 0xde0   :  { %4520 = vmatprep.mubr.msk.bf16.mxu1 %vm5205_vm0, %v5204_v0  ;;  %4538 = vmatprep.mubr.msk.bf16.mxu0 %vm5205_vm0, %v5204_v0 }
 0xde1   :  { %v2535_v45 = vpop.permute.xlu0 %2534  ;;  %v2355_v50 = vpop.permute.xlu1 %2354  ;;  %4548 = vmatprep.subr.bf16.mxu1 %v5204_v0  ;;  %4566 = vmatprep.subr.bf16.mxu0 %v5204_v0 }
 0xde2   :  { %v2551_v27 = vsel %vm482_vm3, %v2535_v45, 0 }
 0xde5   :  { %v2450_v32 = vpop.permute.xlu1 %2449  ;;  %v2357_v37 = vpop.permute.xlu0 %2356 }
 0xde6   :  { %4521 = vmatmul.mubr.msk.bf16.gmra.mrb[88].mxu1 %vm482_vm3, %v6207_v28  ;;  %4539 = vmatmul.mubr.msk.bf16.gmra.mrb[88].mxu0 %vm482_vm3, %v2355_v50  ;;  %v2467_v55 = vsel %vm482_vm3, %v2450_v32, 0 }
 0xde7   :  { %4549 = vmatpush3.bf16.xpose.msra.mxu1 %v2464_v10  ;;  %4567 = vmatpush3.bf16.xpose.msra.mxu0 %v2551_v27 }
 0xde8   :  { %4524 = vmatprep.mubr.msk.bf16.mxu1 %vm5205_vm0, %v5204_v0  ;;  %4542 = vmatprep.mubr.msk.bf16.mxu0 %vm5205_vm0, %v5204_v0 }
 0xde9   :  { %v2537_v47 = vpop.permute.xlu1 %2536  ;;  %4550 = vmatprep.subr.bf16.mxu1 %v5204_v0  ;;  %4568 = vmatprep.subr.bf16.mxu0 %v5204_v0  ;;  %v2440_v61 = vpop.permute.xlu0 %2439 }
 0xdea   :  { %v2554_v17 = vsel %vm482_vm3, %v2537_v47, 0 }
 0xded   :  { %v2527_v9 = vpop.permute.xlu1 %2526  ;;  %v2442_v28 = vpop.permute.xlu0 %2441 }
 0xdee   :  { %4525 = vmatmul.mubr.msk.bf16.gmra.mrb[92].mxu1 %vm482_vm3, %v6213_v42  ;;  %4543 = vmatmul.mubr.msk.bf16.gmra.mrb[92].mxu0 %vm482_vm3, %v2357_v37 }
 0xdef   :  { %4551 = vmatpush3.bf16.xpose.msra.mxu1 %v2467_v55  ;;  %4569 = vmatpush3.bf16.xpose.msra.mxu0 %v2554_v17 }
 0xdf0   :  { %4552 = vmatprep.mubr.msk.bf16.mxu1 %vm5205_vm0, %v5204_v0  ;;  %4570 = vmatprep.mubr.msk.bf16.mxu0 %vm5205_vm0, %v5204_v0 }
 0xdf1   :  { %v2529_v6 = vpop.permute.xlu1 %2528  ;;  %4582 = vmatprep.subr.bf16.mxu1 %v5204_v0  ;;  %4600 = vmatprep.subr.bf16.mxu0 %v5204_v0  ;;  %v2444_v53 = vpop.permute.xlu0 %2443 }
 0xdf5   :  { %v2531_v21 = vpop.permute.xlu1 %2530  ;;  %v2985_v24 = vpop.permute.xlu0 %2984 }
 0xdf6   :  { %4553 = vmatmul.mubr.msk.bf16.vlgmr.msra.gmra.mrb[96].mxu1 %vm482_vm3, %v2440_v61  ;;  %4571 = vmatmul.mubr.msk.bf16.vlgmr.msra.gmra.mrb[96].mxu0 %vm482_vm3, %v2527_v9 }
 0xdf7   :  { %4583 = vmatpush3.bf16.msra.mxu1 %v6199_v4  ;;  %4556 = vmatprep.mubr.msk.bf16.mxu1 %vm5205_vm0, %v5204_v0 }
 0xdf8   :  { %4584 = vmatprep.subr.bf16.mxu1 %v5204_v0  ;;  %4574 = vmatprep.mubr.msk.bf16.mxu0 %vm5205_vm0, %v5204_v0 }
 0xdf9   :  { %v2983_v20 = vpop.permute.xlu1 %2982 }
 0xdfa   :  { %4601 = vmatpush3.bf16.msra.mxu0 %v2983_v20 }
 0xdfb   :  { %4585 = vmatpush3.bf16.msra.mxu1 %v6205_v36  ;;  %4602 = vmatprep.subr.bf16.mxu0 %v5204_v0 }
 0xdfc   :  { %4586 = vmatprep.subr.bf16.mxu1 %v5204_v0 }
 0xdfe   :  { %4557 = vmatmul.mubr.msk.bf16.gmra.mrb[100].mxu1 %vm482_vm3, %v2442_v28  ;;  %4575 = vmatmul.mubr.msk.bf16.gmra.mrb[100].mxu0 %vm482_vm3, %v2529_v6 }
 0xdff   :  { %4603 = vmatpush3.bf16.msra.mxu0 %v2985_v24  ;;  %4587 = vmatpush3.bf16.msra.mxu1 %v6211_v38 }
 0xe00   :  { %4560 = vmatprep.mubr.msk.bf16.mxu1 %vm5205_vm0, %v5204_v0  ;;  %4578 = vmatprep.mubr.msk.bf16.mxu0 %vm5205_vm0, %v5204_v0 }
 0xe01   :  { %4604 = vmatprep.subr.bf16.mxu0 %v5204_v0  ;;  %4618 = vmatprep.subr.bf16.mxu1 %v5204_v0 }
 0xe06   :  { %4561 = vmatmul.mubr.msk.bf16.gmra.mrb[104].mxu1 %vm482_vm3, %v2444_v53  ;;  %4579 = vmatmul.mubr.msk.bf16.gmra.mrb[104].mxu0 %vm482_vm3, %v2531_v21 }
 0xe07   :  { %4588 = vmatprep.mubr.msk.bf16.mxu1 %vm5205_vm0, %v5204_v0  ;;  %4606 = vmatprep.mubr.msk.bf16.mxu0 %vm5205_vm0, %v5204_v0 }
 0xeb1   :  { %v2326_v48 = vpop.f32.mrb[84].mxu1  ;;  %v2416_v58 = vpop.f32.mrb[84].mxu0 }
 0xeb2   :  { %v6317_v63 = vadd.f32 %v2326_v48, %v5531_v39  ;;  %v4518_v22 = vpop.f32.mrb[85].mxu1  ;;  %v4536_v3 = vpop.f32.mrb[85].mxu0  ;;  %v6320_v42 = vadd.f32 %v2416_v58, %v5531_v39 }
 0xeb3   :  { %v2329_v54 = vpop.f32.mrb[86].mxu1  ;;  %v2419_v26 = vpop.f32.mrb[86].mxu0 }
 0xeb4   :  { %v6323_v51 = vadd.f32 %v2329_v54, %v5531_v39  ;;  %v4519_v7 = vpop.f32.mrb[87].mxu1  ;;  %v4537_v43 = vpop.f32.mrb[87].mxu0  ;;  %v2637_v19 = vsel %vm75_vm1, %v6317_v63, -inf  ;;  %v6330_v13 = vadd.f32 %v2419_v26, %v5531_v39  ;;  %v2655_v8 = vsel %vm75_vm1, %v6320_v42, -inf }
 0xeb5   :  { %2638 = vmax.xlane.f32.xlu0 %v2637_v19 }
 0xeb6   :  { %v2640_v1 = vsel %vm75_vm1, %v6323_v51, -inf  ;;  %v2658_v50 = vsel %vm75_vm1, %v6330_v13, -inf }
 0xeb7   :  { %2641 = vmax.xlane.f32.xlu1 %v2640_v1 }
 0xeb9   :  { %v2334_v2 = vpop.f32.mrb[88].mxu1  ;;  %2656 = vmax.xlane.f32.xlu0 %v2655_v8  ;;  %v2424_v11 = vpop.f32.mrb[88].mxu0 }
 0xeba   :  { %v6335_v14 = vadd.f32 %v2334_v2, %v5531_v39  ;;  %v4522_v52 = vpop.f32.mrb[89].mxu1  ;;  %v4540_v12 = vpop.f32.mrb[89].mxu0  ;;  %v6338_v34 = vadd.f32 %v2424_v11, %v5531_v39 }
 0xebb   :  { %v2337_v56 = vpop.f32.mrb[90].mxu1  ;;  %v2427_v49 = vpop.f32.mrb[90].mxu0 }
 0xebc   :  { %v6341_v33 = vadd.f32 %v2337_v56, %v5556_v62  ;;  %v4523_v18 = vpop.f32.mrb[91].mxu1  ;;  %v4541_v44 = vpop.f32.mrb[91].mxu0  ;;  %v2643_v45 = vsel %vm75_vm1, %v6335_v14, -inf  ;;  %v6348_v32 = vadd.f32 %v2427_v49, %v5556_v62  ;;  %v2661_v27 = vsel %vm75_vm1, %v6338_v34, -inf }
 0xebd   :  { %2644 = vmax.xlane.f32.xlu1 %v2643_v45  ;;  %2659 = vmax.xlane.f32.xlu0 %v2658_v50 }
 0xebe   :  { %v2646_v10 = vsel %vm75_vm1, %v6341_v33, -inf  ;;  %v2664_v48 = vsel %vm75_vm1, %v6348_v32, -inf }
 0xec1   :  { %v2342_v37 = vpop.f32.mrb[92].mxu1  ;;  %2647 = vmax.xlane.f32.xlu0 %v2646_v10  ;;  %2662 = vmax.xlane.f32.xlu1 %v2661_v27  ;;  %v2432_v47 = vpop.f32.mrb[92].mxu0 }
 0xec2   :  { %v6355_v61 = vadd.f32 %v2342_v37, %v5556_v62  ;;  %v4526_v9 = vpop.f32.mrb[93].mxu1  ;;  %v4544_v55 = vpop.f32.mrb[93].mxu0  ;;  %v6358_v28 = vadd.f32 %v2432_v47, %v5556_v62 }
 0xec3   :  { %v2345_v17 = vpop.f32.mrb[94].mxu1  ;;  %v2435_v6 = vpop.f32.mrb[94].mxu0 }
 0xec4   :  { %v6361_v21 = vadd.f32 %v2345_v17, %v5556_v62  ;;  %v4527_v53 = vpop.f32.mrb[95].mxu1  ;;  %v4545_v20 = vpop.f32.mrb[95].mxu0  ;;  %v2649_v24 = vsel %vm75_vm1, %v6355_v61, -inf  ;;  %v6368_v58 = vadd.f32 %v2435_v6, %v5556_v62  ;;  %v2667_v3 = vsel %vm75_vm1, %v6358_v28, -inf }
 0xec5   :  { %2650 = vmax.xlane.f32.xlu1 %v2649_v24  ;;  %2665 = vmax.xlane.f32.xlu0 %v2664_v48 }
 0xec6   :  { %v2652_v22 = vsel %vm75_vm1, %v6361_v21, -inf  ;;  %v2670_v49 = vsel %vm75_vm1, %v6368_v58, -inf }
 0xec9   :  { %v2503_v54 = vpop.f32.mrb[96].mxu1  ;;  %2653 = vmax.xlane.f32.xlu0 %v2652_v22  ;;  %2668 = vmax.xlane.f32.xlu1 %v2667_v3  ;;  %v2590_v26 = vpop.f32.mrb[96].mxu0 }
 0xeca   :  { %v6375_v7 = vadd.f32 %v2503_v54, %v5531_v39  ;;  %v4554_v43 = vpop.f32.mrb[97].mxu1  ;;  %v4572_v19 = vpop.f32.mrb[97].mxu0  ;;  %v6378_v2 = vadd.f32 %v2590_v26, %v5531_v39 }
 0xecb   :  { %v2506_v1 = vpop.f32.mrb[98].mxu1  ;;  %v2593_v8 = vpop.f32.mrb[98].mxu0 }
 0xecc   :  { %v6381_v11 = vadd.f32 %v2506_v1, %v5531_v39  ;;  %v4555_v52 = vpop.f32.mrb[99].mxu1  ;;  %v4573_v12 = vpop.f32.mrb[99].mxu0  ;;  %v2673_v56 = vsel %vm75_vm1, %v6375_v7, -inf  ;;  %v6388_v18 = vadd.f32 %v2593_v8, %v5531_v39  ;;  %v2691_v45 = vsel %vm75_vm1, %v6378_v2, -inf }
 0xecd   :  { %2674 = vmax.xlane.f32.xlu1 %v2673_v56  ;;  %2671 = vmax.xlane.f32.xlu0 %v2670_v49 }
 0xece   :  { %v2676_v44 = vsel %vm75_vm1, %v6381_v11, -inf  ;;  %v2694_v48 = vsel %vm75_vm1, %v6388_v18, -inf }
 0xed1   :  { %v2511_v50 = vpop.f32.mrb[100].mxu1  ;;  %2677 = vmax.xlane.f32.xlu0 %v2676_v44  ;;  %2692 = vmax.xlane.f32.xlu1 %v2691_v45  ;;  %v2598_v10 = vpop.f32.mrb[100].mxu0 }
 0xed2   :  { %v6395_v27 = vadd.f32 %v2511_v50, %v5531_v39  ;;  %v4558_v37 = vpop.f32.mrb[101].mxu1  ;;  %v4576_v47 = vpop.f32.mrb[101].mxu0  ;;  %v6398_v17 = vadd.f32 %v2598_v10, %v5531_v39 }
 0xed3   :  { %v2514_v9 = vpop.f32.mrb[102].mxu1  ;;  %v2601_v55 = vpop.f32.mrb[102].mxu0 }
 0xed4   :  { %v6401_v6 = vadd.f32 %v2514_v9, %v5556_v62  ;;  %v4559_v53 = vpop.f32.mrb[103].mxu1  ;;  %v4577_v20 = vpop.f32.mrb[103].mxu0  ;;  %v2679_v24 = vsel %vm75_vm1, %v6395_v27, -inf  ;;  %v6408_v22 = vadd.f32 %v2601_v55, %v5556_v62  ;;  %v2697_v3 = vsel %vm75_vm1, %v6398_v17, -inf }
 0xed5   :  { %2680 = vmax.xlane.f32.xlu1 %v2679_v24  ;;  %2695 = vmax.xlane.f32.xlu0 %v2694_v48 }
 0xed6   :  { %v2682_v39 = vsel %vm75_vm1, %v6401_v6, -inf  ;;  %v2700_v45 = vsel %vm75_vm1, %v6408_v22, -inf }
 0xed9   :  { %v2519_v54 = vpop.f32.mrb[104].mxu1  ;;  %2683 = vmax.xlane.f32.xlu0 %v2682_v39  ;;  %2698 = vmax.xlane.f32.xlu1 %v2697_v3  ;;  %v2606_v26 = vpop.f32.mrb[104].mxu0 }
 0xeda   :  { %v6415_v43 = vadd.f32 %v2519_v54, %v5556_v62  ;;  %v4562_v19 = vpop.f32.mrb[105].mxu1  ;;  %v4580_v1 = vpop.f32.mrb[105].mxu0  ;;  %v6418_v12 = vadd.f32 %v2606_v26, %v5556_v62 }
 0xedb   :  { %v2522_v8 = vpop.f32.mrb[106].mxu1  ;;  %v2609_v52 = vpop.f32.mrb[106].mxu0 }
 0xedc   :  { %v4563_v56 = vpop.f32.mrb[107].mxu1  ;;  %v4581_v49 = vpop.f32.mrb[107].mxu0  ;;  %v2685_v44 = vsel %vm75_vm1, %v6415_v43, -inf  ;;  %v2703_v50 = vsel %vm75_vm1, %v6418_v12, -inf  ;;  %v6433_v10 = vadd.f32 %v2522_v8, %v5556_v62  ;;  %v6436_v37 = vadd.f32 %v2609_v52, %v5556_v62 }
 0xedd   :  { %2686 = vmax.xlane.f32.xlu1 %v2685_v44  ;;  %2701 = vmax.xlane.f32.xlu0 %v2700_v45 }
 0xede   :  { %v2688_v47 = vsel %vm75_vm1, %v6433_v10, -inf  ;;  %v2706_v9 = vsel %vm75_vm1, %v6436_v37, -inf }
 0xee1   :  { %2704 = vmax.xlane.f32.xlu1 %v2703_v50 }
 0xef2   :  { %2986 = vrot.lane.b32.xlu1 %v6211_v38, %s5210_s7 }
 0xef3   :  { %3057 = vrot.lane.b32.xlu0 %v6199_v4, %s5212_s9 }
 0xef7   :  { %3132 = vrot.lane.b32.xlu0 %v6199_v4, %s5213_s10 }
 0xf16   :  { %2689 = vmax.xlane.f32.xlu0 %v2688_v47 }
 0xf1a   :  { %2707 = vmax.xlane.f32.xlu0 %v2706_v9 }
 0xf42   :  { %v2639_v55 = vpop.xlane.xlu0 %2638 }
 0xf43   :  { %v2709_v53 = vsub.f32 %v6317_v63, %v2639_v55 }
 0xf44   :  { %v2642_v20 = vpop.xlane.xlu1 %2641 }
 0xf45   :  { %v2733_v24 = vmul.f32 1.442695, %v2709_v53  ;;  %v2710_v4 = vsub.f32 %v6323_v51, %v2642_v20 }
 0xf46   :  { %v2657_v48 = vpop.xlane.xlu0 %2656 }
 0xf47   :  { %5056 = vpow2.f32 %v2733_v24  ;;  %v2735_v39 = vmul.f32 1.442695, %v2710_v4  ;;  %v2715_v62 = vsub.f32 %v6320_v42, %v2657_v48 }
 0xf49   :  { %5058 = vpow2.f32 %v2735_v39  ;;  %v2745_v3 = vmul.f32 1.442695, %v2715_v62 }
 0xf4a   :  { %v2645_v54 = vpop.xlane.xlu1 %2644  ;;  %v2660_v26 = vpop.xlane.xlu0 %2659 }
 0xf4b   :  { %5060 = vpow2.f32 %v2745_v3  ;;  %v2711_v19 = vsub.f32 %v6335_v14, %v2645_v54  ;;  %v2716_v1 = vsub.f32 %v6330_v13, %v2660_v26 }
 0xf4d   :  { %v2737_v8 = vmul.f32 1.442695, %v2711_v19  ;;  %v2747_v63 = vmul.f32 1.442695, %v2716_v1 }
 0xf4e   :  { %v2648_v52 = vpop.xlane.xlu0 %2647  ;;  %v2663_v56 = vpop.xlane.xlu1 %2662 }
 0xf4f   :  { %5062 = vpow2.f32 %v2737_v8  ;;  %v2712_v51 = vsub.f32 %v6341_v33, %v2648_v52  ;;  %v2717_v49 = vsub.f32 %v6338_v34, %v2663_v56 }
 0xf50   :  { %5064 = vpow2.f32 %v2747_v63 }
 0xf51   :  { %v6449_v42 = vpop.eup %5056  ;;  %v2739_v44 = vmul.f32 1.442695, %v2712_v51  ;;  %v2749_v45 = vmul.f32 1.442695, %v2717_v49 }
 0xf52   :  { %v2651_v50 = vpop.xlane.xlu1 %2650  ;;  %v2666_v47 = vpop.xlane.xlu0 %2665  ;;  %v2781_v14 = vsel %vm75_vm1, %v6449_v42, 0.0 }
 0xf53   :  { %v6453_v13 = vpop.eup %5058  ;;  %5066 = vpow2.f32 %v2739_v44  ;;  %v2713_v9 = vsub.f32 %v6355_v61, %v2651_v50  ;;  %v2718_v55 = vsub.f32 %v6348_v32, %v2666_v47  ;;  %2782 = vadd.xlane.f32.xlu1 %v2781_v14 }
 0xf54   :  { %5068 = vpow2.f32 %v2749_v45  ;;  %v2784_v34 = vsel %vm75_vm1, %v6453_v13, 0.0 }
 0xf55   :  { %v6459_v33 = vpop.eup %5060  ;;  %v2741_v53 = vmul.f32 1.442695, %v2713_v9  ;;  %v2751_v20 = vmul.f32 1.442695, %v2718_v55  ;;  %2785 = vadd.xlane.f32.xlu0 %v2784_v34 }
 0xf56   :  { %v2654_v24 = vpop.xlane.xlu0 %2653  ;;  %v2669_v4 = vpop.xlane.xlu1 %2668  ;;  %v2799_v48 = vsel %vm75_vm1, %v6459_v33, 0.0 }
 0xf57   :  { %5070 = vpow2.f32 %v2741_v53  ;;  %v2714_v61 = vsub.f32 %v6361_v21, %v2654_v24  ;;  %v2719_v32 = vsub.f32 %v6358_v28, %v2669_v4  ;;  %2800 = vadd.xlane.f32.xlu1 %v2799_v48 }
 0xf58   :  { %5072 = vpow2.f32 %v2751_v20 }
 0xf59   :  { %v6465_v39 = vpop.eup %5062  ;;  %v2743_v62 = vmul.f32 1.442695, %v2714_v61  ;;  %v2753_v3 = vmul.f32 1.442695, %v2719_v32 }
 0xf5a   :  { %v6467_v54 = vpop.eup %5064  ;;  %v2675_v26 = vpop.xlane.xlu1 %2674  ;;  %v2787_v1 = vsel %vm75_vm1, %v6465_v39, 0.0 }
 0xf5b   :  { %v2672_v19 = vpop.xlane.xlu0 %2671  ;;  %5074 = vpow2.f32 %v2743_v62  ;;  %v2721_v8 = vsub.f32 %v6375_v7, %v2675_v26  ;;  %2788 = vadd.xlane.f32.xlu1 %v2787_v1  ;;  %v2802_v28 = vsel %vm75_vm1, %v6467_v54, 0.0 }
 0xf5c   :  { %v2720_v21 = vsub.f32 %v6368_v58, %v2672_v19  ;;  %5076 = vpow2.f32 %v2753_v3  ;;  %2803 = vadd.xlane.f32.xlu0 %v2802_v28 }
 0xf5d   :  { %v6475_v63 = vpop.eup %5066  ;;  %v2757_v52 = vmul.f32 1.442695, %v2721_v8 }
 0xf5e   :  { %v2755_v56 = vmul.f32 1.442695, %v2720_v21  ;;  %v6477_v51 = vpop.eup %5068  ;;  %v2693_v44 = vpop.xlane.xlu1 %2692  ;;  %v2790_v45 = vsel %vm75_vm1, %v6475_v63, 0.0 }
 0xf5f   :  { %v2678_v49 = vpop.xlane.xlu0 %2677  ;;  %5078 = vpow2.f32 %v2757_v52  ;;  %v2727_v7 = vsub.f32 %v6378_v2, %v2693_v44  ;;  %v2805_v50 = vsel %vm75_vm1, %v6477_v51, 0.0 }
 0xf60   :  { %v2722_v58 = vsub.f32 %v6381_v11, %v2678_v49  ;;  %5080 = vpow2.f32 %v2755_v56  ;;  %2806 = vadd.xlane.f32.xlu1 %v2805_v50  ;;  %2791 = vadd.xlane.f32.xlu0 %v2790_v45 }
 0xf61   :  { %v6485_v47 = vpop.eup %5070  ;;  %v2769_v9 = vmul.f32 1.442695, %v2727_v7 }
 0xf62   :  { %v2759_v14 = vmul.f32 1.442695, %v2722_v58  ;;  %v6487_v55 = vpop.eup %5072  ;;  %v2681_v34 = vpop.xlane.xlu1 %2680  ;;  %v2793_v20 = vsel %vm75_vm1, %v6485_v47, 0.0 }
 0xf63   :  { %v2696_v53 = vpop.xlane.xlu0 %2695  ;;  %v2723_v2 = vsub.f32 %v6395_v27, %v2681_v34  ;;  %v2808_v24 = vsel %vm75_vm1, %v6487_v55, 0.0 }
 0xf64   :  { %5082 = vpow2.f32 %v2759_v14  ;;  %v2728_v11 = vsub.f32 %v6388_v18, %v2696_v53  ;;  %2794 = vadd.xlane.f32.xlu1 %v2793_v20  ;;  %2809 = vadd.xlane.f32.xlu0 %v2808_v24 }
 0xf65   :  { %5084 = vpow2.f32 %v2769_v9  ;;  %v6495_v4 = vpop.eup %5074  ;;  %v2761_v32 = vmul.f32 1.442695, %v2723_v2 }
 0xf66   :  { %v2771_v48 = vmul.f32 1.442695, %v2728_v11  ;;  %v6497_v61 = vpop.eup %5076  ;;  %v2699_v3 = vpop.xlane.xlu1 %2698  ;;  %v2796_v26 = vsel %vm75_vm1, %v6495_v4, 0.0 }
 0xf67   :  { %v2684_v62 = vpop.xlane.xlu0 %2683  ;;  %v2729_v27 = vsub.f32 %v6398_v17, %v2699_v3  ;;  %v2811_v18 = vsel %vm75_vm1, %v6497_v61, 0.0 }
 0xf68   :  { %5086 = vpow2.f32 %v2771_v48  ;;  %2812 = vadd.xlane.f32.xlu1 %v2811_v18  ;;  %2797 = vadd.xlane.f32.xlu0 %v2796_v26  ;;  %v2724_v8 = vsub.f32 %v6401_v6, %v2684_v62 }
 0xf69   :  { %v6504_v19 = vpop.eup %5078  ;;  %5088 = vpow2.f32 %v2761_v32  ;;  %v2773_v21 = vmul.f32 1.442695, %v2729_v27 }
 0xf6a   :  { %v6506_v1 = vpop.eup %5080  ;;  %v2687_v28 = vpop.xlane.xlu1 %2686  ;;  %v2817_v52 = vsel %vm75_vm1, %v6504_v19, 0.0  ;;  %v2763_v7 = vmul.f32 1.442695, %v2724_v8 }
 0xf6b   :  { %v2725_v17 = vsub.f32 %v6415_v43, %v2687_v28  ;;  %v2702_v56 = vpop.xlane.xlu0 %2701  ;;  %v2814_v49 = vsel %vm75_vm1, %v6506_v1, 0.0  ;;  %5090 = vpow2.f32 %v2773_v21 }
 0xf6c   :  { %2818 = vadd.xlane.f32.xlu1 %v2817_v52  ;;  %2815 = vadd.xlane.f32.xlu0 %v2814_v49  ;;  %v2730_v6 = vsub.f32 %v6408_v22, %v2702_v56 }
 0xf6d   :  { %v2765_v45 = vmul.f32 1.442695, %v2725_v17 }
 0xf6e   :  { %v6514_v44 = vpop.eup %5082  ;;  %v2705_v50 = vpop.xlane.xlu1 %2704  ;;  %v2775_v34 = vmul.f32 1.442695, %v2730_v6 }
 0xf6f   :  { %v6516_v58 = vpop.eup %5084  ;;  %v2820_v14 = vsel %vm75_vm1, %v6514_v44, 0.0  ;;  %5092 = vpow2.f32 %v2765_v45  ;;  %v3058_v18 = vpop.permute.xlu0 %3057  ;;  %v2731_v28 = vsub.f32 %v6418_v12, %v2705_v50 }
 0xf70   :  { %v2835_v43 = vsel %vm75_vm1, %v6516_v58, 0.0  ;;  %2821 = vadd.xlane.f32.xlu0 %v2820_v14  ;;  %5094 = vpow2.f32 %v2763_v7 }
 0xf71   :  { %2836 = vadd.xlane.f32.xlu1 %v2835_v43  ;;  %5096 = vpow2.f32 %v2775_v34  ;;  %v2777_v52 = vmul.f32 1.442695, %v2731_v28 }
 0xf72   :  { %v6523_v9 = vpop.eup %5086  ;;  %v2987_v53 = vpop.permute.xlu1 %2986 }
 0xf73   :  { %4605 = vmatpush3.bf16.msra.mxu0 %v2987_v53  ;;  %v2838_v20 = vsel %vm75_vm1, %v6523_v9, 0.0  ;;  %v6527_v22 = vpop.eup %5088  ;;  %v3133_v8 = vpop.permute.xlu0 %3132  ;;  %5098 = vpow2.f32 %v2777_v52 }
 0xf74   :  { %2839 = vadd.xlane.f32.xlu0 %v2838_v20  ;;  %4636 = vmatprep.subr.bf16.mxu0 %v5204_v0  ;;  %v2823_v2 = vsel %vm75_vm1, %v6527_v22, 0.0 }
 0xf75   :  { %v6532_v11 = vpop.eup %5090 }
 0xf76   :  { %v2841_v32 = vsel %vm75_vm1, %v6532_v11, 0.0 }
 0xf78   :  { %2824 = vadd.xlane.f32.xlu0 %v2823_v2 }
 0xf79   :  { %v6534_v24 = vpop.eup %5092 }
 0xf7a   :  { %v2829_v48 = vsel %vm75_vm1, %v6534_v24, 0.0  ;;  %v6540_v62 = vpop.eup %5094 }
 0xf7b   :  { %2830 = vadd.xlane.f32.xlu1 %v2829_v48  ;;  %v2826_v3 = vsel %vm75_vm1, %v6540_v62, 0.0  ;;  %v6544_v26 = vpop.eup %5096 }
 0xf7c   :  { %2842 = vadd.xlane.f32.xlu0 %v2841_v32  ;;  %v2844_v27 = vsel %vm75_vm1, %v6544_v26, 0.0 }
 0xf80   :  { %2827 = vadd.xlane.f32.xlu0 %v2826_v3 }
 0xf84   :  { %2845 = vadd.xlane.f32.xlu0 %v2844_v27 }
 0xf8c   :  { %3059 = vrot.lane.b32.xlu1 %v6205_v36, %s5212_s9 }
 0xf9a   :  { %3134 = vrot.lane.b32.xlu0 %v6205_v36, %s5213_s10  ;;  %v6557_v36 = vpop.eup %5098 }
 0xf9b   :  { %v2847_v6 = vsel %vm75_vm1, %v6557_v36, 0.0 }
 0xf9e   :  { %3061 = vrot.lane.b32.xlu0 %v6211_v38, %s5212_s9 }
 0xfa3   :  { %v2690_v21 = vpop.xlane.xlu0 %2689 }
 0xfa4   :  { %v2726_v17 = vsub.f32 %v6433_v10, %v2690_v21 }
 0xfa6   :  { %v2767_v49 = vmul.f32 1.442695, %v2726_v17 }
 0xfa7   :  { %v2708_v56 = vpop.xlane.xlu0 %2707 }
 0xfa8   :  { %v2732_v45 = vsub.f32 %v6436_v37, %v2708_v56  ;;  %5100 = vpow2.f32 %v2767_v49 }
 0xfaa   :  { %v2779_v7 = vmul.f32 1.442695, %v2732_v45 }
 0xfac   :  { %5102 = vpow2.f32 %v2779_v7 }
 0xfb2   :  { %v6561_v14 = vpop.eup %5100 }
 0xfb3   :  { %v2832_v12 = vsel %vm75_vm1, %v6561_v14, 0.0 }
 0xfb6   :  { %v6565_v10 = vpop.eup %5102 }
 0xfb7   :  { %v2850_v37 = vsel %vm75_vm1, %v6565_v10, 0.0 }
 0xfbd   :  { %2848 = vadd.xlane.f32.xlu0 %v2847_v6 }
 0xfc1   :  { %2833 = vadd.xlane.f32.xlu0 %v2832_v12 }
 0xfc5   :  { %2851 = vadd.xlane.f32.xlu0 %v2850_v37 }
 0xfdb   :  { %3136 = vrot.lane.b32.xlu0 %v6211_v38, %s5213_s10 }
 0xfe0   :  { %v2783_v50 = vpop.xlane.xlu1 %2782 }
 0xfe1   :  { %5104 = vrcp.f32 %v2783_v50 }
 0xfe2   :  { %v2786_v43 = vpop.xlane.xlu0 %2785 }
 0xfe3   :  { %5106 = vrcp.f32 %v2786_v43 }
 0xfe4   :  { %v2801_v34 = vpop.xlane.xlu1 %2800 }
 0xfe5   :  { %5108 = vrcp.f32 %v2801_v34 }
 0xfe8   :  { %v2789_v53 = vpop.xlane.xlu1 %2788 }
 0xfe9   :  { %v2804_v20 = vpop.xlane.xlu0 %2803 }
 0xfea   :  { %5110 = vrcp.f32 %v2804_v20 }
 0xfeb   :  { %v5105_v2 = vpop.eup %5104  ;;  %5112 = vrcp.f32 %v2789_v53 }
 0xfec   :  { %v2877_v27 = vmul.f32 %v5105_v2, %v6449_v42 }
 0xfed   :  { %v5107_v48 = vpop.eup %5106  ;;  %v2807_v32 = vpop.xlane.xlu1 %2806 }
 0xfee   :  { %v2792_v3 = vpop.xlane.xlu0 %2791  ;;  %v2878_v21 = vmul.f32 %v5107_v48, %v6453_v13 }
 0xfef   :  { %5114 = vrcp.f32 %v2792_v3  ;;  %v5109_v17 = vpop.eup %5108 }
 0xff0   :  { %v2901_v38 = vpack.c.bf16 %v2878_v21, %v2877_v27  ;;  %5116 = vrcp.f32 %v2807_v32  ;;  %v2883_v42 = vmul.f32 %v5109_v17, %v6459_v33 }
 0xff1   :  { %v2795_v28 = vpop.xlane.xlu1 %2794 }
 0xff2   :  { %v2810_v52 = vpop.xlane.xlu0 %2809  ;;  %4589 = vmatmul.mubr.msk.bf16.vlgmr.msra.gmra.mrb[108].mxu1 %vm75_vm1, %v2901_v38 }
 0xff3   :  { %5118 = vrcp.f32 %v2810_v52  ;;  %4619 = vmatpush3.bf16.msra.mxu1 %v3058_v18  ;;  %4592 = vmatprep.mubr.msk.bf16.mxu1 %vm5205_vm0, %v5204_v0 }
 0xff4   :  { %v5111_v56 = vpop.eup %5110  ;;  %4620 = vmatprep.subr.bf16.mxu1 %v5204_v0  ;;  %5120 = vrcp.f32 %v2795_v28 }
 0xff5   :  { %v2884_v13 = vmul.f32 %v5111_v56, %v6467_v54  ;;  %v2813_v49 = vpop.xlane.xlu1 %2812  ;;  %v5113_v7 = vpop.eup %5112 }
 0xff6   :  { %v2798_v45 = vpop.xlane.xlu0 %2797  ;;  %v2879_v50 = vmul.f32 %v5113_v7, %v6465_v39 }
 0xff7   :  { %v2904_v6 = vpack.c.bf16 %v2884_v13, %v2883_v42  ;;  %5122 = vrcp.f32 %v2798_v45 }
 0xff8   :  { %5124 = vrcp.f32 %v2813_v49 }
 0xff9   :  { %v5115_v12 = vpop.eup %5114  ;;  %v2819_v37 = vpop.xlane.xlu1 %2818  ;;  %4607 = vmatmul.mubr.msk.bf16.vlgmr.msra.gmra.mrb[108].mxu0 %vm75_vm1, %v2904_v6 }
 0xffa   :  { %v2816_v18 = vpop.xlane.xlu0 %2815  ;;  %4637 = vmatpush3.bf16.msra.mxu0 %v3133_v8  ;;  %v2880_v43 = vmul.f32 %v5115_v12, %v6475_v63  ;;  %4610 = vmatprep.mubr.msk.bf16.mxu0 %vm5205_vm0, %v5204_v0  ;;  %v5117_v33 = vpop.eup %5116 }
 0xffb   :  { %5126 = vrcp.f32 %v2816_v18  ;;  %4638 = vmatprep.subr.bf16.mxu0 %v5204_v0  ;;  %v2885_v2 = vmul.f32 %v5117_v33, %v6477_v51 }
 0xffc   :  { %v2902_v54 = vpack.c.bf16 %v2880_v43, %v2879_v50 }
 0xffd   :  { %v5119_v34 = vpop.eup %5118 }
 0xffe   :  { %v2837_v53 = vpop.xlane.xlu1 %2836  ;;  %v2822_v20 = vpop.xlane.xlu0 %2821  ;;  %4593 = vmatmul.mubr.msk.bf16.gmra.mrb[112].mxu1 %vm75_vm1, %v2902_v54  ;;  %v2886_v8 = vmul.f32 %v5119_v34, %v6487_v55 }
 0xfff   :  { %v5121_v39 = vpop.eup %5120  ;;  %4596 = vmatprep.mubr.msk.bf16.mxu1 %vm5205_vm0, %v5204_v0  ;;  %5128 = vrcp.f32 %v2837_v53 }
0x1000   :  { %v2905_v63 = vpack.c.bf16 %v2886_v8, %v2885_v2  ;;  %v2881_v3 = vmul.f32 %v5121_v39, %v6485_v47 }
0x1001   :  { %v5123_v48 = vpop.eup %5122 }
0x1002   :  { %v2840_v32 = vpop.xlane.xlu0 %2839  ;;  %4611 = vmatmul.mubr.msk.bf16.gmra.mrb[112].mxu0 %vm75_vm1, %v2905_v63  ;;  %v2882_v27 = vmul.f32 %v5123_v48, %v6495_v4  ;;  %v5125_v21 = vpop.eup %5124 }
0x1003   :  { %5130 = vrcp.f32 %v2840_v32  ;;  %4614 = vmatprep.mubr.msk.bf16.mxu0 %vm5205_vm0, %v5204_v0  ;;  %v2887_v28 = vmul.f32 %v5125_v21, %v6497_v61 }
0x1004   :  { %v2903_v51 = vpack.c.bf16 %v2882_v27, %v2881_v3  ;;  %5132 = vrcp.f32 %v2822_v20 }
0x1005   :  { %v5127_v55 = vpop.eup %5126  ;;  %5134 = vrcp.f32 %v2819_v37 }
0x1006   :  { %v2825_v38 = vpop.xlane.xlu0 %2824  ;;  %4597 = vmatmul.mubr.msk.bf16.gmra.mrb[116].mxu1 %vm75_vm1, %v2903_v51  ;;  %v2888_v52 = vmul.f32 %v5127_v55, %v6506_v1 }
0x1007   :  { %4624 = vmatprep.mubr.msk.bf16.mxu1 %vm5205_vm0, %v5204_v0 }
0x1008   :  { %v2831_v17 = vpop.xlane.xlu1 %2830  ;;  %v2906_v47 = vpack.c.bf16 %v2888_v52, %v2887_v28 }
0x1009   :  { %v5129_v4 = vpop.eup %5128 }
0x100a   :  { %v2843_v56 = vpop.xlane.xlu0 %2842  ;;  %4615 = vmatmul.mubr.msk.bf16.gmra.mrb[116].mxu0 %vm75_vm1, %v2906_v47  ;;  %v2895_v61 = vmul.f32 %v5129_v4, %v6516_v58 }
0x100b   :  { %4642 = vmatprep.mubr.msk.bf16.mxu0 %vm5205_vm0, %v5204_v0  ;;  %5136 = vrcp.f32 %v2843_v56 }
0x100c   :  { %v3060_v13 = vpop.permute.xlu1 %3059 }
0x100d   :  { %v5131_v42 = vpop.eup %5130  ;;  %4621 = vmatpush3.bf16.msra.mxu1 %v3060_v13 }
0x100e   :  { %v2896_v1 = vmul.f32 %v5131_v42, %v6523_v9  ;;  %v2828_v49 = vpop.xlane.xlu0 %2827  ;;  %4622 = vmatprep.subr.bf16.mxu1 %v5204_v0  ;;  %v5133_v6 = vpop.eup %5132 }
0x100f   :  { %5138 = vrcp.f32 %v2828_v49  ;;  %v5135_v18 = vpop.eup %5134  ;;  %v2890_v37 = vmul.f32 %v5133_v6, %v6514_v44 }
0x1010   :  { %v2910_v45 = vpack.c.bf16 %v2896_v1, %v2895_v61  ;;  %v2889_v58 = vmul.f32 %v5135_v18, %v6504_v19 }
0x1012   :  { %v2846_v7 = vpop.xlane.xlu0 %2845  ;;  %v2907_v33 = vpack.c.bf16 %v2890_v37, %v2889_v58 }
0x1013   :  { %5140 = vrcp.f32 %v2846_v7 }
0x1014   :  { %5142 = vrcp.f32 %v2825_v38 }
0x1015   :  { %v5137_v50 = vpop.eup %5136  ;;  %5144 = vrcp.f32 %v2831_v17 }
0x1016   :  { %v3135_v12 = vpop.permute.xlu0 %3134  ;;  %v2897_v34 = vmul.f32 %v5137_v50, %v6532_v11 }
0x1017   :  { %4639 = vmatpush3.bf16.msra.mxu0 %v3135_v12 }
0x1018   :  { %4640 = vmatprep.subr.bf16.mxu0 %v5204_v0 }
0x1019   :  { %v5139_v43 = vpop.eup %5138 }
0x101a   :  { %v3062_v9 = vpop.permute.xlu0 %3061  ;;  %v2892_v19 = vmul.f32 %v5139_v43, %v6540_v62 }
0x101b   :  { %4623 = vmatpush3.bf16.msra.mxu1 %v3062_v9 }
0x101c   :  { %4654 = vmatprep.subr.bf16.mxu1 %v5204_v0 }
0x101d   :  { %v5141_v54 = vpop.eup %5140 }
0x101e   :  { %4625 = vmatmul.mubr.msk.bf16.vlgmr.msra.gmra.mrb[120].mxu1 %vm75_vm1, %v2907_v33  ;;  %v2898_v53 = vmul.f32 %v5141_v54, %v6544_v26  ;;  %v5143_v20 = vpop.eup %5142 }
0x101f   :  { %4628 = vmatprep.mubr.msk.bf16.mxu1 %vm5205_vm0, %v5204_v0  ;;  %v2891_v2 = vmul.f32 %v5143_v20, %v6527_v22  ;;  %v5145_v48 = vpop.eup %5144  ;;  %v4891_v20 = vld [vmem:[%s6892_s2 + $0x1c0] ss:$8 sps:$4 sm:$0xff]  }
0x1020   :  { %v2911_v44 = vpack.c.bf16 %v2898_v53, %v2897_v34  ;;  %v2893_v22 = vmul.f32 %v5145_v48, %v6534_v24  ;;  %v4890_v34 = vld [vmem:[%s6892_s2 + $0x1b0] ss:$8 sps:$4 sm:$0xff]  }
0x1021   :  { %v2908_v8 = vpack.c.bf16 %v2892_v19, %v2891_v2  ;;  %4655 = vmatpush3.bf16.msra.mxu1 %v4890_v34 }
0x1022   :  { %4656 = vmatprep.subr.bf16.mxu1 %v5204_v0 }
0x1025   :  { %4657 = vmatpush3.bf16.msra.mxu1 %v4891_v20 }
0x1026   :  { %4629 = vmatmul.mubr.msk.bf16.gmra.mrb[124].mxu1 %vm75_vm1, %v2908_v8  ;;  %4658 = vmatprep.subr.bf16.mxu1 %v5204_v0 }
0x1027   :  { %4632 = vmatprep.mubr.msk.bf16.mxu1 %vm5205_vm0, %v5204_v0 }
0x104a   :  { %v2849_v39 = vpop.xlane.xlu0 %2848 }
0x104e   :  { %v2834_v11 = vpop.xlane.xlu0 %2833 }
0x104f   :  { %5146 = vrcp.f32 %v2834_v11 }
0x1052   :  { %v2852_v26 = vpop.xlane.xlu0 %2851 }
0x1053   :  { %5148 = vrcp.f32 %v2852_v26 }
0x1054   :  { %5150 = vrcp.f32 %v2849_v39  ;;  %v4892_v39 = vld [vmem:[%s6892_s2 + $0x1d0] ss:$8 sps:$4 sm:$0xff]  }
0x1055   :  { %4659 = vmatpush3.bf16.msra.mxu1 %v4892_v39 }
0x1056   :  { %v3137_v63 = vpop.permute.xlu0 %3136  ;;  %4660 = vmatprep.subr.bf16.mxu1 %v5204_v0 }
0x1057   :  { %4641 = vmatpush3.bf16.msra.mxu0 %v3137_v63 }
0x1058   :  { %4674 = vmatprep.subr.bf16.mxu0 %v5204_v0 }
0x1059   :  { %v5147_v62 = vpop.eup %5146 }
0x105a   :  { %4643 = vmatmul.mubr.msk.bf16.vlgmr.msra.gmra.mrb[120].mxu0 %vm75_vm1, %v2910_v45  ;;  %v2894_v32 = vmul.f32 %v5147_v62, %v6561_v14 }
0x105b   :  { %4646 = vmatprep.mubr.msk.bf16.mxu0 %vm5205_vm0, %v5204_v0 }
0x105c   :  { %v2909_v3 = vpack.c.bf16 %v2894_v32, %v2893_v22  ;;  %v4893_v22 = vld [vmem:[%s6892_s2 + $0x1e0] ss:$8 sps:$4 sm:$0xff]  }
0x105d   :  { %v5149_v27 = vpop.eup %5148  ;;  %4661 = vmatpush3.bf16.msra.mxu1 %v4893_v22 }
0x105e   :  { %4633 = vmatmul.mubr.msk.bf16.gmra.mrb[128].mxu1 %vm75_vm1, %v2909_v3  ;;  %v5151_v21 = vpop.eup %5150  ;;  %v2900_v24 = vmul.f32 %v5149_v27, %v6565_v10  ;;  %4694 = vmatprep.subr.bf16.mxu1 %v5204_v0 }
0x105f   :  { %4662 = vmatprep.mubr.msk.bf16.mxu1 %vm5205_vm0, %v5204_v0  ;;  %v2899_v14 = vmul.f32 %v5151_v21, %v6557_v36 }
0x1061   :  { %v2912_v51 = vpack.c.bf16 %v2900_v24, %v2899_v14 }
0x1062   :  { %4647 = vmatmul.mubr.msk.bf16.gmra.mrb[124].mxu0 %vm75_vm1, %v2911_v44 }
0x1063   :  { %4650 = vmatprep.mubr.msk.bf16.mxu0 %vm5205_vm0, %v5204_v0 }
0x106a   :  { %4651 = vmatmul.mubr.msk.bf16.gmra.mrb[128].mxu0 %vm75_vm1, %v2912_v51 }
0x106b   :  { %4682 = vmatprep.mubr.msk.bf16.mxu0 %vm5205_vm0, %v5204_v0 }
0x10c5   :  { %v6637_v55 = vpop.f32.mrb[108].mxu1 }
0x10c6   :  { %v4590_v38 = vpop.f32.mrb[109].mxu1 }
0x10c7   :  { %v6639_v28 = vpop.f32.mrb[110].mxu1 }
0x10c8   :  { %v4591_v52 = vpop.f32.mrb[111].mxu1 }
0x10cc   :  { %v3034_v17 = vpop.f32.mrb[108].mxu0 }
0x10cd   :  { %v4608_v47 = vpop.f32.mrb[109].mxu0 }
0x10ce   :  { %v3037_v56 = vpop.f32.mrb[110].mxu0 }
0x10cf   :  { %v4799_v4 = vpack.i.bf16 %v3037_v56, %v3034_v17  ;;  %v4609_v42 = vpop.f32.mrb[111].mxu0 }
0x10d1   :  { %v6641_v10 = vpop.f32.mrb[112].mxu1  ;;  %4800 = vrot.lane.b32.xlu0 %v4799_v4, %s5211_s8 }
0x10d2   :  { %v4594_v36 = vpop.f32.mrb[113].mxu1 }
0x10d3   :  { %v6644_v13 = vpop.f32.mrb[114].mxu1 }
0x10d4   :  { %v4595_v61 = vpop.f32.mrb[115].mxu1 }
0x10d5   :  { %v3042_v1 = vpop.f32.mrb[112].mxu0 }
0x10d6   :  { %v4612_v49 = vpop.f32.mrb[113].mxu0 }
0x10d7   :  { %v3045_v45 = vpop.f32.mrb[114].mxu0 }
0x10d8   :  { %v4814_v7 = vpack.i.bf16 %v3045_v45, %v3042_v1  ;;  %v4613_v6 = vpop.f32.mrb[115].mxu0 }
0x10d9   :  { %v6646_v12 = vpop.f32.mrb[116].mxu1 }
0x10da   :  { %v4598_v18 = vpop.f32.mrb[117].mxu1 }
0x10db   :  { %v6648_v37 = vpop.f32.mrb[118].mxu1 }
0x10dc   :  { %v4599_v58 = vpop.f32.mrb[119].mxu1 }
0x10dd   :  { %v3050_v9 = vpop.f32.mrb[116].mxu0 }
0x10de   :  { %v4616_v50 = vpop.f32.mrb[117].mxu0 }
0x10df   :  { %v3053_v43 = vpop.f32.mrb[118].mxu0 }
0x10e0   :  { %v4829_v33 = vpack.i.bf16 %v3053_v43, %v3050_v9  ;;  %v4617_v54 = vpop.f32.mrb[119].mxu0 }
0x10f1   :  { %v3109_v53 = vpop.f32.mrb[120].mxu1 }
0x10f2   :  { %v4626_v19 = vpop.f32.mrb[121].mxu1 }
0x10f3   :  { %v3112_v44 = vpop.f32.mrb[122].mxu1 }
0x10f4   :  { %v4804_v2 = vpack.i.bf16 %v3112_v44, %v3109_v53  ;;  %v4627_v8 = vpop.f32.mrb[123].mxu1 }
0x10f6   :  { %4805 = vrot.lane.b32.xlu1 %v4804_v2, %s5209_s6 }
0x10f9   :  { %v3117_v11 = vpop.f32.mrb[124].mxu1 }
0x10fa   :  { %v4630_v26 = vpop.f32.mrb[125].mxu1  ;;  %4815 = vrot.lane.b32.xlu1 %v4814_v7, %s5211_s8 }
0x10fb   :  { %v3120_v63 = vpop.f32.mrb[126].mxu1 }
0x10fc   :  { %v4819_v48 = vpack.i.bf16 %v3120_v63, %v3117_v11  ;;  %v4631_v62 = vpop.f32.mrb[127].mxu1 }
0x112d   :  { %v3184_v32 = vpop.f32.mrb[120].mxu0 }
0x112e   :  { %v4644_v3 = vpop.f32.mrb[121].mxu0 }
0x112f   :  { %v3187_v27 = vpop.f32.mrb[122].mxu0 }
0x1130   :  { %v4809_v21 = vpack.i.bf16 %v3187_v27, %v3184_v32  ;;  %v4645_v24 = vpop.f32.mrb[123].mxu0 }
0x1131   :  { %v3125_v14 = vpop.f32.mrb[128].mxu1 }
0x1132   :  { %v4634_v51 = vpop.f32.mrb[129].mxu1  ;;  %4810 = vrot.lane.b32.xlu0 %v4809_v21, %s5207_s0 }
0x1133   :  { %v3128_v38 = vpop.f32.mrb[130].mxu1 }
0x1134   :  { %v4834_v52 = vpack.i.bf16 %v3128_v38, %v3125_v14  ;;  %v4635_v17 = vpop.f32.mrb[131].mxu1 }
0x1135   :  { %v3192_v47 = vpop.f32.mrb[124].mxu0 }
0x1136   :  { %4820 = vrot.lane.b32.xlu0 %v4819_v48, %s5209_s6  ;;  %v4648_v56 = vpop.f32.mrb[125].mxu0 }
0x1137   :  { %v3195_v4 = vpop.f32.mrb[126].mxu0 }
0x1138   :  { %v4824_v42 = vpack.i.bf16 %v3195_v4, %v3192_v47  ;;  %v4649_v36 = vpop.f32.mrb[127].mxu0 }
0x113a   :  { %4830 = vrot.lane.b32.xlu0 %v4829_v33, %s5211_s8  ;;  %4825 = vrot.lane.b32.xlu1 %v4824_v42, %s5207_s0 }
0x113d   :  { %v3200_v61 = vpop.f32.mrb[128].mxu0 }
0x113e   :  { %4835 = vrot.lane.b32.xlu1 %v4834_v52, %s5209_s6  ;;  %v4652_v1 = vpop.f32.mrb[129].mxu0 }
0x113f   :  { %v3203_v49 = vpop.f32.mrb[130].mxu0 }
0x1140   :  { %v4839_v45 = vpack.i.bf16 %v3203_v49, %v3200_v61  ;;  %v4653_v7 = vpop.f32.mrb[131].mxu0 }
0x1142   :  { %4840 = vrot.lane.b32.xlu0 %v4839_v45, %s5207_s0 }
0x1143   :  { %v4801_v6 = vpop.permute.xlu0 %4800 }
0x1144   :  { %v4803_v58 = vunpack.i.h.bf16 %v4801_v6  ;;  %v4802_v9 = vunpack.i.l.bf16 %v4801_v6 }
0x1146   :  { %v3280_v33 = vsel %vm482_vm3, %v6639_v28, %v4803_v58  ;;  %v3279_v34 = vsel %vm482_vm3, %v6637_v55, %v4802_v9 }
0x1168   :  { %v4806_v18 = vpop.permute.xlu1 %4805 }
0x1169   :  { %v4808_v50 = vunpack.i.h.bf16 %v4806_v18  ;;  %v4807_v43 = vunpack.i.l.bf16 %v4806_v18 }
0x116b   :  { %v3285_v19 = vsel %vm1494_vm8, %v3279_v34, %v4807_v43  ;;  %v3286_v44 = vsel %vm1494_vm8, %v3280_v33, %v4808_v50 }
0x116c   :  { %v4816_v2 = vpop.permute.xlu1 %4815 }
0x116d   :  { %v4818_v63 = vunpack.i.h.bf16 %v4816_v2  ;;  %v4817_v48 = vunpack.i.l.bf16 %v4816_v2 }
0x116f   :  { %v3282_v22 = vsel %vm482_vm3, %v6644_v13, %v4818_v63  ;;  %v3281_v32 = vsel %vm482_vm3, %v6641_v10, %v4817_v48 }
0x11a4   :  { %v4811_v54 = vpop.permute.xlu0 %4810 }
0x11a5   :  { %v4813_v53 = vunpack.i.h.bf16 %v4811_v54  ;;  %v4812_v20 = vunpack.i.l.bf16 %v4811_v54 }
0x11a7   :  { %v3292_v8 = vsel %vm75_vm1, %v3286_v44, %v4813_v53  ;;  %v3291_v39 = vsel %vm75_vm1, %v3285_v19, %v4812_v20 }
0x11a8   :  { %v3297_v11 = vpack.c.bf16 %v3292_v8, %v3291_v39  ;;  %v4821_v26 = vpop.permute.xlu0 %4820 }
0x11a9   :  { %v4823_v62 = vunpack.i.h.bf16 %v4821_v26  ;;  %v4822_v28 = vunpack.i.l.bf16 %v4821_v26 }
0x11aa   :  { %4663 = vmatmul.mubr.msk.bf16.vlgmr.msra.gmra.mrb[132].mxu1 %vm227_vm2, %v3297_v11 }
0x11ab   :  { %4666 = vmatprep.mubr.msk.bf16.mxu1 %vm5205_vm0, %v5204_v0  ;;  %v3288_v21 = vsel %vm1494_vm8, %v3282_v22, %v4823_v62  ;;  %v3287_v24 = vsel %vm1494_vm8, %v3281_v32, %v4822_v28 }
0x11ac   :  { %v4826_v55 = vpop.permute.xlu1 %4825  ;;  %v4831_v14 = vpop.permute.xlu0 %4830 }
0x11ad   :  { %v4828_v3 = vunpack.i.h.bf16 %v4826_v55  ;;  %v4827_v27 = vunpack.i.l.bf16 %v4826_v55  ;;  %v4833_v47 = vunpack.i.h.bf16 %v4831_v14  ;;  %v4832_v56 = vunpack.i.l.bf16 %v4831_v14 }
0x11af   :  { %v3294_v51 = vsel %vm75_vm1, %v3288_v21, %v4828_v3  ;;  %v3293_v38 = vsel %vm75_vm1, %v3287_v24, %v4827_v27  ;;  %v3284_v42 = vsel %vm482_vm3, %v6648_v37, %v4833_v47  ;;  %v3283_v36 = vsel %vm482_vm3, %v6646_v12, %v4832_v56  ;;  %v6710_v12 = vld [vmem:[%s6893_s3 + $0x10] sm:$0xff] }
0x11b0   :  { %v3298_v52 = vpack.c.bf16 %v3294_v51, %v3293_v38  ;;  %v4836_v17 = vpop.permute.xlu1 %4835  ;;  %v3407_v37 = vrot.slane %v6710_v12, %v5927_v60 }
0x11b1   :  { %v4838_v4 = vunpack.i.h.bf16 %v4836_v17  ;;  %v4837_v13 = vunpack.i.l.bf16 %v4836_v17 }
0x11b2   :  { %4667 = vmatmul.mubr.msk.bf16.gmra.mrb[136].mxu1 %vm227_vm2, %v3298_v52 }
0x11b3   :  { %4670 = vmatprep.mubr.msk.bf16.mxu1 %vm5205_vm0, %v5204_v0  ;;  %v3290_v49 = vsel %vm1494_vm8, %v3284_v42, %v4838_v4  ;;  %v3289_v45 = vsel %vm1494_vm8, %v3283_v36, %v4837_v13 }
0x11b4   :  { %v4841_v10 = vpop.permute.xlu0 %4840 }
0x11b5   :  { %v4843_v61 = vunpack.i.h.bf16 %v4841_v10  ;;  %v4842_v1 = vunpack.i.l.bf16 %v4841_v10 }
0x11b7   :  { %v3296_v7 = vsel %vm75_vm1, %v3290_v49, %v4843_v61  ;;  %v3295_v6 = vsel %vm75_vm1, %v3289_v45, %v4842_v1 }
0x11b8   :  { %v3299_v18 = vpack.c.bf16 %v3296_v7, %v3295_v6 }
0x11ba   :  { %4671 = vmatmul.mubr.msk.bf16.gmra.mrb[140].mxu1 %vm227_vm2, %v3299_v18 }
0x11bb   :  { %4710 = vmatprep.mubr.msk.bf16.mxu1 %vm5205_vm0, %v5204_v0 }
0x127d   :  { %v3375_v58 = vpop.f32.mrb[132].mxu1 }
0x127e   :  { %v3398_v9 = vadd.f32 %v3375_v58, %v6086_v16  ;;  %v4664_v50 = vpop.f32.mrb[133].mxu1 }
0x127f   :  { %v3378_v43 = vpop.f32.mrb[134].mxu1 }
0x1280   :  { %v3408_v54 = vadd.f32 %v3407_v37, %v3398_v9  ;;  %v3399_v33 = vadd.f32 %v3378_v43, %v6089_v46  ;;  %v4665_v34 = vpop.f32.mrb[135].mxu1 }
0x1282   :  { %v3409_v53 = vadd.f32 %v3407_v37, %v3399_v33  ;;  %v3414_v20 = vsel %vm227_vm2, %v3408_v54, 0.0 }
0x1283   :  { %3415 = vadd.xlane.f32.xlu1 %v3414_v20  ;;  %v4895_v20 = vld [vmem:[%s6892_s2 + $0x200] ss:$8 sps:$4 sm:$0xff]  }
0x1284   :  { %v3417_v19 = vsel %vm227_vm2, %v3409_v53, 0.0 }
0x1285   :  { %v3383_v44 = vpop.f32.mrb[136].mxu1  ;;  %3418 = vadd.xlane.f32.xlu0 %v3417_v19  ;;  %v4896_v19 = vld [vmem:[%s6892_s2 + $0x210] ss:$8 sps:$4 sm:$0xff]  }
0x1286   :  { %v3400_v2 = vadd.f32 %v3383_v44, %v6096_v15  ;;  %v4668_v8 = vpop.f32.mrb[137].mxu1  ;;  %v4897_v44 = vld [vmem:[%s6892_s2 + $0x220] ss:$8 sps:$4 sm:$0xff]  }
0x1287   :  { %v3386_v39 = vpop.f32.mrb[138].mxu1 }
0x1288   :  { %v6719_v11 = vadd.f32 %v3407_v37, %v3400_v2  ;;  %v3401_v16 = vadd.f32 %v3386_v39, %v6099_v30  ;;  %v4669_v26 = vpop.f32.mrb[139].mxu1 }
0x128a   :  { %v3411_v63 = vadd.f32 %v3407_v37, %v3401_v16  ;;  %v3420_v46 = vsel %vm227_vm2, %v6719_v11, 0.0 }
0x128b   :  { %3421 = vadd.xlane.f32.xlu0 %v3420_v46 }
0x128c   :  { %v3423_v48 = vsel %vm227_vm2, %v3411_v63, 0.0 }
0x128d   :  { %3424 = vadd.xlane.f32.xlu1 %v3423_v48  ;;  %v3391_v62 = vpop.f32.mrb[140].mxu1 }
0x128e   :  { %v3402_v28 = vadd.f32 %v3391_v62, %v6106_v5  ;;  %v4672_v55 = vpop.f32.mrb[141].mxu1 }
0x128f   :  { %v3394_v15 = vpop.f32.mrb[142].mxu1 }
0x1290   :  { %v3412_v22 = vadd.f32 %v3407_v37, %v3402_v28  ;;  %v3403_v32 = vadd.f32 %v3394_v15, %v6109_v41  ;;  %v4673_v3 = vpop.f32.mrb[143].mxu1 }
0x1292   :  { %v6727_v27 = vadd.f32 %v3407_v37, %v3403_v32  ;;  %v3426_v30 = vsel %vm227_vm2, %v3412_v22, 0.0 }
0x1293   :  { %3427 = vadd.xlane.f32.xlu0 %v3426_v30 }
0x1294   :  { %v3429_v21 = vsel %vm227_vm2, %v6727_v27, 0.0 }
0x1295   :  { %3430 = vadd.xlane.f32.xlu1 %v3429_v21 }
0x1310   :  { %v3416_v24 = vpop.xlane.xlu1 %3415 }
0x1311   :  { %v3432_v14 = vmul.f32 0.015625, %v3416_v24 }
0x1312   :  { %v3419_v51 = vpop.xlane.xlu0 %3418 }
0x1313   :  { %v6732_v38 = vsub.f32 %v3408_v54, %v3432_v14  ;;  %v3433_v5 = vmul.f32 0.015625, %v3419_v51  ;;  %v3505_v14 = vrot.slane %v6710_v12, %v1714_v57 }
0x1315   :  { %v6734_v52 = vsub.f32 %v3409_v53, %v3433_v5  ;;  %v3444_v41 = vmul.f32 %v6732_v38, %v6732_v38  ;;  %v4894_v53 = vld [vmem:[%s6892_s2 + $0x1f0] ss:$8 sps:$4 sm:$0xff]  }
0x1316   :  { %4675 = vmatpush3.bf16.msra.mxu0 %v4894_v53  ;;  %v4900_v53 = vld [vmem:[%s6892_s2 + $0x250] ss:$8 sps:$4 sm:$0xff]  }
0x1317   :  { %v3450_v17 = vsel %vm227_vm2, %v3444_v41, 0.0  ;;  %v3445_v47 = vmul.f32 %v6734_v52, %v6734_v52  ;;  %4676 = vmatprep.subr.bf16.mxu0 %v5204_v0 }
0x1318   :  { %v3422_v56 = vpop.xlane.xlu0 %3421  ;;  %3451 = vadd.xlane.f32.xlu0 %v3450_v17 }
0x1319   :  { %v3434_v4 = vmul.f32 0.015625, %v3422_v56  ;;  %v3453_v13 = vsel %vm227_vm2, %v3445_v47, 0.0 }
0x131a   :  { %v3425_v10 = vpop.xlane.xlu1 %3424  ;;  %3454 = vadd.xlane.f32.xlu1 %v3453_v13  ;;  %4677 = vmatpush3.bf16.msra.mxu0 %v4895_v20  ;;  %v4901_v20 = vld [vmem:[%s6892_s2 + $0x260] ss:$8 sps:$4 sm:$0xff]  }
0x131b   :  { %v6743_v42 = vsub.f32 %v6719_v11, %v3434_v4  ;;  %v3435_v36 = vmul.f32 0.015625, %v3425_v10  ;;  %4678 = vmatprep.subr.bf16.mxu0 %v5204_v0 }
0x131d   :  { %v6745_v61 = vsub.f32 %v3411_v63, %v3435_v36  ;;  %v3446_v1 = vmul.f32 %v6743_v42, %v6743_v42 }
0x131e   :  { %4679 = vmatpush3.bf16.msra.mxu0 %v4896_v19  ;;  %v4902_v19 = vld [vmem:[%s6892_s2 + $0x270] ss:$8 sps:$4 sm:$0xff]  }
0x131f   :  { %v3456_v49 = vsel %vm227_vm2, %v3446_v1, 0.0  ;;  %v3447_v45 = vmul.f32 %v6745_v61, %v6745_v61  ;;  %4680 = vmatprep.subr.bf16.mxu0 %v5204_v0 }
0x1320   :  { %3457 = vadd.xlane.f32.xlu0 %v3456_v49  ;;  %v3428_v7 = vpop.xlane.xlu0 %3427 }
0x1321   :  { %v3436_v6 = vmul.f32 0.015625, %v3428_v7  ;;  %v3459_v18 = vsel %vm227_vm2, %v3447_v45, 0.0 }
0x1322   :  { %3460 = vadd.xlane.f32.xlu1 %v3459_v18  ;;  %v3431_v37 = vpop.xlane.xlu1 %3430  ;;  %4681 = vmatpush3.bf16.msra.mxu0 %v4897_v44  ;;  %v4903_v44 = vld [vmem:[%s6892_s2 + $0x280] ss:$8 sps:$4 sm:$0xff]  }
0x1323   :  { %v6753_v58 = vsub.f32 %v3412_v22, %v3436_v6  ;;  %v3437_v9 = vmul.f32 0.015625, %v3431_v37  ;;  %4722 = vmatprep.subr.bf16.mxu0 %v5204_v0  ;;  %v3495_v22 = vrot.slane %v6710_v12, %v1704_v31 }
0x1325   :  { %v6756_v50 = vsub.f32 %v6727_v27, %v3437_v9  ;;  %v3448_v43 = vmul.f32 %v6753_v58, %v6753_v58 }
0x1327   :  { %v3462_v54 = vsel %vm227_vm2, %v3448_v43, 0.0  ;;  %v3449_v33 = vmul.f32 %v6756_v50, %v6756_v50 }
0x1328   :  { %3463 = vadd.xlane.f32.xlu0 %v3462_v54 }
0x1329   :  { %v3465_v34 = vsel %vm227_vm2, %v3449_v33, 0.0 }
0x132a   :  { %3466 = vadd.xlane.f32.xlu1 %v3465_v34 }
0x13a5   :  { %v3452_v2 = vpop.xlane.xlu0 %3451 }
0x13a6   :  { %v3468_v8 = vmul.f32 0.015625, %v3452_v2  ;;  %v4904_v2 = vld [vmem:[%s6892_s2 + $0x290] ss:$8 sps:$4 sm:$0xff]  }
0x13a7   :  { %v3455_v39 = vpop.xlane.xlu1 %3454 }
0x13a8   :  { %v3474_v16 = vadd.f32 1e-06, %v3468_v8  ;;  %v3469_v26 = vmul.f32 0.015625, %v3455_v39  ;;  %v4905_v8 = vld [vmem:[%s6892_s2 + $0x2a0] ss:$8 sps:$4 sm:$0xff]   ;;  %v3526_v39 = vrot.slane %v6710_v12, %v1735_v23 }
0x13aa   :  { %5152 = vrsqrt.f32 %v3474_v16  ;;  %v3475_v63 = vadd.f32 1e-06, %v3469_v26 }
0x13ac   :  { %5154 = vrsqrt.f32 %v3475_v63 }
0x13ad   :  { %v3458_v46 = vpop.xlane.xlu0 %3457 }
0x13ae   :  { %v3470_v48 = vmul.f32 0.015625, %v3458_v46 }
0x13af   :  { %v3461_v62 = vpop.xlane.xlu1 %3460 }
0x13b0   :  { %v3476_v28 = vadd.f32 1e-06, %v3470_v48  ;;  %v3471_v55 = vmul.f32 0.015625, %v3461_v62 }
0x13b2   :  { %5156 = vrsqrt.f32 %v3476_v28  ;;  %v3477_v15 = vadd.f32 1e-06, %v3471_v55 }
0x13b4   :  { %v5153_v32 = vpop.eup %5152  ;;  %5158 = vrsqrt.f32 %v3477_v15 }
0x13b5   :  { %v3486_v3 = vmul.f32 %v5153_v32, %v6732_v38  ;;  %v3464_v30 = vpop.xlane.xlu0 %3463 }
0x13b6   :  { %v5155_v21 = vpop.eup %5154  ;;  %v3472_v24 = vmul.f32 0.015625, %v3464_v30 }
0x13b7   :  { %v3496_v51 = vmul.f32 %v3495_v22, %v3486_v3  ;;  %v3487_v5 = vmul.f32 %v5155_v21, %v6734_v52  ;;  %v3467_v41 = vpop.xlane.xlu1 %3466 }
0x13b8   :  { %v3478_v17 = vadd.f32 1e-06, %v3472_v24  ;;  %v3473_v47 = vmul.f32 0.015625, %v3467_v41 }
0x13b9   :  { %v3497_v56 = vmul.f32 %v3495_v22, %v3487_v5  ;;  %v3506_v4 = vadd.f32 %v3505_v14, %v3496_v51 }
0x13ba   :  { %5160 = vrsqrt.f32 %v3478_v17  ;;  %v3479_v31 = vadd.f32 1e-06, %v3473_v47 }
0x13bb   :  { %v3507_v13 = vadd.f32 %v3505_v14, %v3497_v56 }
0x13bc   :  { %v5157_v10 = vpop.eup %5156  ;;  %5162 = vrsqrt.f32 %v3479_v31 }
0x13bd   :  { %v3488_v38 = vmul.f32 %v5157_v10, %v6743_v42  ;;  %v3512_v36 = vpack.c.bf16 %v3507_v13, %v3506_v4 }
0x13be   :  { %v5159_v1 = vpop.eup %5158 }
0x13bf   :  { %v3489_v49 = vmul.f32 %v5159_v1, %v6745_v61  ;;  %4683 = vmatmul.mubr.msk.bf16.vlgmr.msra.gmra.mrb[132].mxu0 %vm227_vm2, %v3512_v36  ;;  %v3498_v57 = vmul.f32 %v3495_v22, %v3488_v38 }
0x13c0   :  { %4686 = vmatprep.mubr.msk.bf16.mxu0 %vm5205_vm0, %v5204_v0  ;;  %4723 = vmatpush3.bf16.msra.mxu0 %v4906_v25 }
0x13c1   :  { %v3499_v52 = vmul.f32 %v3495_v22, %v3489_v49  ;;  %v3508_v45 = vadd.f32 %v3505_v14, %v3498_v57  ;;  %4724 = vmatprep.subr.bf16.mxu0 %v5204_v0 }
0x13c3   :  { %v3509_v7 = vadd.f32 %v3505_v14, %v3499_v52 }
0x13c4   :  { %v5161_v6 = vpop.eup %5160 }
0x13c5   :  { %v3490_v18 = vmul.f32 %v5161_v6, %v6753_v58  ;;  %v3513_v37 = vpack.c.bf16 %v3509_v7, %v3508_v45  ;;  %v4898_v58 = vld [vmem:[%s6892_s2 + $0x230] ss:$8 sps:$4 sm:$0xff]  }
0x13c6   :  { %v5163_v9 = vpop.eup %5162  ;;  %4695 = vmatpush3.bf16.msra.mxu1 %v4898_v58 }
0x13c7   :  { %v3491_v42 = vmul.f32 %v5163_v9, %v6756_v50  ;;  %4687 = vmatmul.mubr.msk.bf16.gmra.mrb[136].mxu0 %vm227_vm2, %v3513_v37  ;;  %v3500_v43 = vmul.f32 %v3495_v22, %v3490_v18  ;;  %4696 = vmatprep.subr.bf16.mxu1 %v5204_v0  ;;  %v4899_v50 = vld [vmem:[%s6892_s2 + $0x240] ss:$8 sps:$4 sm:$0xff]  }
0x13c8   :  { %4690 = vmatprep.mubr.msk.bf16.mxu0 %vm5205_vm0, %v5204_v0 }
0x13c9   :  { %v3501_v61 = vmul.f32 %v3495_v22, %v3491_v42  ;;  %v3510_v54 = vadd.f32 %v3505_v14, %v3500_v43 }
0x13ca   :  { %4697 = vmatpush3.bf16.msra.mxu1 %v4899_v50 }
0x13cb   :  { %v3511_v33 = vadd.f32 %v3505_v14, %v3501_v61  ;;  %4698 = vmatprep.subr.bf16.mxu1 %v5204_v0 }
0x13cd   :  { %v3514_v34 = vpack.c.bf16 %v3511_v33, %v3510_v54 }
0x13ce   :  { %4699 = vmatpush3.bf16.msra.mxu1 %v4900_v53 }
0x13cf   :  { %4691 = vmatmul.mubr.msk.bf16.gmra.mrb[140].mxu0 %vm227_vm2, %v3514_v34  ;;  %4700 = vmatprep.subr.bf16.mxu1 %v5204_v0 }
0x13d0   :  { %4730 = vmatprep.mubr.msk.bf16.mxu0 %vm5205_vm0, %v5204_v0 }
0x13d2   :  { %4701 = vmatpush3.bf16.msra.mxu1 %v4901_v20 }
0x13d3   :  { %4702 = vmatprep.subr.bf16.mxu1 %v5204_v0 }
0x13d6   :  { %4703 = vmatpush3.bf16.msra.mxu1 %v4902_v19 }
0x13d7   :  { %4704 = vmatprep.subr.bf16.mxu1 %v5204_v0 }
0x13da   :  { %4705 = vmatpush3.bf16.msra.mxu1 %v4903_v44 }
0x13db   :  { %4706 = vmatprep.subr.bf16.mxu1 %v5204_v0 }
0x13de   :  { %4707 = vmatpush3.bf16.msra.mxu1 %v4904_v2 }
0x13df   :  { %4708 = vmatprep.subr.bf16.mxu1 %v5204_v0 }
0x13e2   :  { %4709 = vmatpush3.bf16.msra.mxu1 %v4905_v8 }
0x1492   :  { %v3594_v16 = vpop.f32.mrb[132].mxu0 }
0x1493   :  { %v3595_v26 = vadd.f32 %v3594_v16, %v3526_v39  ;;  %v4684_v63 = vpop.f32.mrb[133].mxu0 }
0x1494   :  { %v3597_v46 = vpop.f32.mrb[134].mxu0 }
0x1495   :  { %v3617_v48 = vmul.f32 %v3595_v26, %v3595_v26  ;;  %v3598_v62 = vadd.f32 %v3597_v46, %v3526_v39  ;;  %v4685_v28 = vpop.f32.mrb[135].mxu0 }
0x1497   :  { %v3623_v55 = vmul.f32 %v3617_v48, %v3595_v26  ;;  %v3618_v15 = vmul.f32 %v3598_v62, %v3598_v62 }
0x1499   :  { %v3629_v22 = vmul.f32 0.044715, %v3623_v55  ;;  %v3624_v32 = vmul.f32 %v3618_v15, %v3598_v62 }
0x149a   :  { %v3602_v3 = vpop.f32.mrb[136].mxu0 }
0x149b   :  { %v3635_v30 = vadd.f32 %v3629_v22, %v3595_v26  ;;  %v3630_v21 = vmul.f32 0.044715, %v3624_v32  ;;  %v3603_v24 = vadd.f32 %v3602_v3, %v3526_v39  ;;  %v4688_v14 = vpop.f32.mrb[137].mxu0 }
0x149c   :  { %v3605_v51 = vpop.f32.mrb[138].mxu0 }
0x149d   :  { %v3641_v5 = vmul.f32 0.7978846, %v3635_v30  ;;  %v3636_v41 = vadd.f32 %v3630_v21, %v3598_v62  ;;  %v3619_v23 = vmul.f32 %v3603_v24, %v3603_v24  ;;  %v3606_v17 = vadd.f32 %v3605_v51, %v3526_v39  ;;  %v4689_v47 = vpop.f32.mrb[139].mxu0 }
0x149f   :  { %5164 = vtanh.f32 %v3641_v5  ;;  %v3642_v56 = vmul.f32 0.7978846, %v3636_v41  ;;  %v3625_v31 = vmul.f32 %v3619_v23, %v3603_v24  ;;  %v3620_v4 = vmul.f32 %v3606_v17, %v3606_v17 }
0x14a1   :  { %5166 = vtanh.f32 %v3642_v56  ;;  %v3631_v13 = vmul.f32 0.044715, %v3625_v31  ;;  %v3626_v10 = vmul.f32 %v3620_v4, %v3606_v17 }
0x14a2   :  { %v3610_v38 = vpop.f32.mrb[140].mxu0 }
0x14a3   :  { %v3637_v36 = vadd.f32 %v3631_v13, %v3603_v24  ;;  %v3632_v1 = vmul.f32 0.044715, %v3626_v10  ;;  %v3611_v49 = vadd.f32 %v3610_v38, %v3526_v39  ;;  %v4692_v57 = vpop.f32.mrb[141].mxu0 }
0x14a4   :  { %v3613_v52 = vpop.f32.mrb[142].mxu0 }
0x14a5   :  { %v3643_v45 = vmul.f32 0.7978846, %v3637_v36  ;;  %v3638_v7 = vadd.f32 %v3632_v1, %v3606_v17  ;;  %v3621_v6 = vmul.f32 %v3611_v49, %v3611_v49  ;;  %v3614_v18 = vadd.f32 %v3613_v52, %v3526_v39  ;;  %v4693_v37 = vpop.f32.mrb[143].mxu0 }
0x14a7   :  { %5168 = vtanh.f32 %v3643_v45  ;;  %v3644_v9 = vmul.f32 0.7978846, %v3638_v7  ;;  %v3627_v42 = vmul.f32 %v3621_v6, %v3611_v49  ;;  %v3622_v43 = vmul.f32 %v3614_v18, %v3614_v18 }
0x14a9   :  { %v5165_v61 = vpop.eup %5164  ;;  %5170 = vtanh.f32 %v3644_v9  ;;  %v3633_v54 = vmul.f32 0.044715, %v3627_v42  ;;  %v3628_v33 = vmul.f32 %v3622_v43, %v3614_v18 }
0x14aa   :  { %v3653_v34 = vadd.f32 1.0, %v5165_v61 }
0x14ab   :  { %v5167_v58 = vpop.eup %5166  ;;  %v3639_v50 = vadd.f32 %v3633_v54, %v3611_v49  ;;  %v3634_v53 = vmul.f32 0.044715, %v3628_v33 }
0x14ac   :  { %v3659_v20 = vmul.f32 0.5, %v3653_v34  ;;  %v3654_v19 = vadd.f32 1.0, %v5167_v58 }
0x14ad   :  { %v3645_v44 = vmul.f32 0.7978846, %v3639_v50  ;;  %v3640_v2 = vadd.f32 %v3634_v53, %v3614_v18 }
0x14ae   :  { %v3660_v8 = vmul.f32 0.5, %v3654_v19  ;;  %v3665_v16 = vmul.f32 %v3659_v20, %v3595_v26  ;;  %v23_v20 = vld [vmem:[%s6893_s3 + $0x20] sm:$0xff] }
0x14af   :  { %5172 = vtanh.f32 %v3645_v44  ;;  %v3646_v39 = vmul.f32 0.7978846, %v3640_v2  ;;  %v3821_v19 = vrot.slane %v23_v20, %v5382_v29  ;;  %v3826_v2 = vrot.slane %v23_v20, %v5390_v40  ;;  %v4911_v29 = vld [vmem:[%s6892_s2 + $0x300] ss:$8 sps:$4 sm:$0xff]  }
0x14b0   :  { %v3666_v63 = vmul.f32 %v3660_v8, %v3598_v62  ;;  %v3840_v40 = vrot.slane %v23_v20, %v5406_v59 }
0x14b1   :  { %v5169_v46 = vpop.eup %5168  ;;  %5174 = vtanh.f32 %v3646_v39 }
0x14b2   :  { %v3671_v48 = vpack.c.bf16 %v3666_v63, %v3665_v16  ;;  %v3655_v28 = vadd.f32 1.0, %v5169_v46  ;;  %v4910_v46 = vld [vmem:[%s6892_s2 + $0x2f0] ss:$8 sps:$4 sm:$0xff]  }
0x14b3   :  { %v5171_v55 = vpop.eup %5170 }
0x14b4   :  { %4711 = vmatmul.mubr.bf16.vlgmr.msra.gmra.mrb[144].mxu1 %v3671_v48  ;;  %v3656_v15 = vadd.f32 1.0, %v5171_v55  ;;  %v3661_v22 = vmul.f32 0.5, %v3655_v28 }
0x14b5   :  { %4714 = vmatprep.mubr.msk.bf16.mxu1 %vm5205_vm0, %v5204_v0 }
0x14b6   :  { %v3662_v32 = vmul.f32 0.5, %v3656_v15  ;;  %v3667_v3 = vmul.f32 %v3661_v22, %v3603_v24 }
0x14b8   :  { %v3668_v30 = vmul.f32 %v3662_v32, %v3606_v17 }
0x14b9   :  { %v5173_v21 = vpop.eup %5172 }
0x14ba   :  { %v3672_v14 = vpack.c.bf16 %v3668_v30, %v3667_v3  ;;  %v3657_v51 = vadd.f32 1.0, %v5173_v21  ;;  %v3917_v30 = vrot.slane %v23_v20, %v5927_v60 }
0x14bb   :  { %v5175_v5 = vpop.eup %5174 }
0x14bc   :  { %4715 = vmatmul.mubr.bf16.gmra.mrb[148].mxu1 %v3672_v14  ;;  %v3658_v26 = vadd.f32 1.0, %v5175_v5  ;;  %v3663_v62 = vmul.f32 0.5, %v3657_v51 }
0x14bd   :  { %4718 = vmatprep.mubr.msk.bf16.mxu1 %vm5205_vm0, %v5204_v0 }
0x14be   :  { %v3664_v41 = vmul.f32 0.5, %v3658_v26  ;;  %v3669_v23 = vmul.f32 %v3663_v62, %v3611_v49  ;;  %v3796_v49 = vrot.slane %v6710_v12, %v2013_v35  ;;  %v4907_v35 = vld [vmem:[%s6892_s2 + $0x2c0] ss:$8 sps:$4 sm:$0xff]   ;;  %v4908_v12 = vld [vmem:[%s6892_s2 + $0x2d0] ss:$8 sps:$4 sm:$0xff]  }
0x14bf   :  { %4725 = vmatpush3.bf16.msra.mxu0 %v4907_v35 }
0x14c0   :  { %v3670_v47 = vmul.f32 %v3664_v41, %v3614_v18  ;;  %4726 = vmatprep.subr.bf16.mxu0 %v5204_v0 }
0x14c2   :  { %v3673_v56 = vpack.c.bf16 %v3670_v47, %v3669_v23 }
0x14c3   :  { %4727 = vmatpush3.bf16.msra.mxu0 %v4908_v12 }
0x14c4   :  { %4719 = vmatmul.mubr.bf16.gmra.mrb[152].mxu1 %v3673_v56  ;;  %4728 = vmatprep.subr.bf16.mxu0 %v5204_v0 }
0x1587   :  { %v3772_v31 = vpop.f32.mrb[144].mxu1 }
0x1588   :  { %v4712_v4 = vpop.f32.mrb[145].mxu1 }
0x1589   :  { %v3774_v13 = vpop.f32.mrb[146].mxu1 }
0x158a   :  { %v4713_v24 = vpop.f32.mrb[147].mxu1 }
0x158f   :  { %v3778_v17 = vpop.f32.mrb[148].mxu1 }
0x1590   :  { %v4716_v10 = vpop.f32.mrb[149].mxu1  ;;  %v3791_v45 = vadd.f32 %v3778_v17, %v6719_v11 }
0x1591   :  { %v3781_v38 = vpop.f32.mrb[150].mxu1 }
0x1592   :  { %v4717_v36 = vpop.f32.mrb[151].mxu1  ;;  %v3797_v37 = vadd.f32 %v3796_v49, %v3791_v45 }
0x1597   :  { %v3785_v1 = vpop.f32.mrb[152].mxu1 }
0x1598   :  { %v4720_v57 = vpop.f32.mrb[153].mxu1 }
0x1599   :  { %v3787_v52 = vpop.f32.mrb[154].mxu1 }
0x159a   :  { %v3792_v7 = vadd.f32 %v3787_v52, %v6727_v27  ;;  %v4721_v6 = vpop.f32.mrb[155].mxu1  ;;  %v4909_v27 = vld [vmem:[%s6892_s2 + $0x2e0] ss:$8 sps:$4 sm:$0xff]   ;;  %s5180_s2 = scalar_lea.vmem %s3982_s14, 32 }
0x159b   :  { %4729 = vmatpush3.bf16.msra.mxu0 %v4909_v27  ;;  %p5181_p0 = scmp.ne.s32.totalorder %s3982_s14, %s5180_s2  ;;  %p5186_p2 = scmp.lt.s32.totalorder %s5180_s2, %s5180_s2 }
0x159c   :  { %v3798_v18 = vadd.f32 %v3796_v49, %v3792_v7  ;;  %4734 = vmatprep.subr.bf16.mxu0 %v5204_v0 }
0x159d   :  { %p5187_p3 = por %p5186_p2, %p5185_p1 }
0x159e   :  { %v3800_v9 = vrot.slane %v3798_v18, 7 }
0x159f   :  { %p5188_p4 = pnand %p5187_p3, %p5181_p0 }
0x15a0   :  { %v3803_v42 = vsel %vm3802_vm9, %v3797_v37, %v3800_v9 }
0x15a1   :  { %v3805_v43 = vsel %vm3804_vm10, %v3803_v42, 0.0 }
0x15a2   :  { %3806 = vadd.xlane.f32.xlu0 %v3805_v43 }
0x162f   :  { %v3807_v61 = vpop.xlane.xlu0 %3806 }
0x1630   :  { %v3808_v54 = vmul.f32 0.015625, %v3807_v61 }
0x1632   :  { %v3809_v33 = vsub.f32 %v3803_v42, %v3808_v54 }
0x1634   :  { %v3810_v34 = vmul.f32 %v3809_v33, %v3809_v33 }
0x1636   :  { %v3811_v11 = vsel %vm3804_vm10, %v3810_v34, 0.0 }
0x1637   :  { %3812 = vadd.xlane.f32.xlu1 %v3811_v11 }
0x16c4   :  { %v3813_v58 = vpop.xlane.xlu1 %3812 }
0x16c5   :  { %v3814_v50 = vmul.f32 0.015625, %v3813_v58 }
0x16c7   :  { %v3815_v53 = vadd.f32 1e-06, %v3814_v50 }
0x16c9   :  { %5176 = vrsqrt.f32 %v3815_v53 }
0x16d3   :  { %v5177_v44 = vpop.eup %5176 }
0x16d4   :  { %v3817_v8 = vmul.f32 %v5177_v44, %v3809_v33 }
0x16d6   :  { %v3822_v39 = vmul.f32 %v3821_v19, %v3817_v8 }
0x16d8   :  { %v3827_v16 = vadd.f32 %v3826_v2, %v3822_v39 }
0x16da   :  { %v3828_v63 = vpack.c.bf16 %v3827_v16, %v3827_v16 }
0x16dc   :  { %4731 = vmatmul.mubr.msk.bf16.vlgmr.msra.gmra.mrb[144].mxu0 %vm227_vm2, %v3828_v63 }
0x16dd   :  { %4738 = vmatprep.mubr.msk.bf16.mxu0 %vm5205_vm0, %v5204_v0  ;;  %4735 = vmatpush3.bf16.msra.mxu0 %v4910_v46 }
0x16de   :  { %4736 = vmatprep.subr.bf16.mxu0 %v5204_v0 }
0x16e1   :  { %4737 = vmatpush3.bf16.msra.mxu0 %v4911_v29 }
0x17af   :  { %v3902_v48 = vpop.f32.mrb[144].mxu0 }
0x17b0   :  { %v3903_v28 = vadd.f32 %v3902_v48, %v3840_v40  ;;  %v4732_v55 = vpop.f32.mrb[145].mxu0 }
0x17b1   :  { %v3905_v15 = vpop.f32.mrb[146].mxu0 }
0x17b2   :  { %v3908_v22 = vmax.f32 %v3903_v28, 0.0  ;;  %v4733_v32 = vpop.f32.mrb[147].mxu0 }
0x17b4   :  { %v3909_v3 = vpack.c.bf16 %v3908_v22, %v3908_v22 }
0x17b6   :  { %4739 = vmatmul.mubr.msk.bf16.vlgmr.msra.gmra.mrb[148].mxu0 %vm1494_vm8, %v3909_v3 }
0x1889   :  { %v3967_v0 = vpop.f32.mrb[148].mxu0 }
0x188a   :  { %v3968_v21 = vadd.f32 %v3967_v0, %v3917_v30  ;;  %v4740_v14 = vpop.f32.mrb[149].mxu0 }
0x188b   :  { %v3970_v51 = vpop.f32.mrb[150].mxu0 }
0x188c   :  { %v4741_v59 = vpop.f32.mrb[151].mxu0  ;;  %3974 = vst.msk [vmem:[#allocation2] sm:$0x3] %vm3973_vm11, %v3968_v21 }
0x188d   :  { %5191 = shalt.err (!%p5188_p4)
}
0x188e   :  { %s5192_s17 = scalar_lea.hbm %s6894_s4, 32 }
0x188f   :  { %p5193_p5 = scmp.ne.s32.totalorder %s6894_s4, %s5192_s17  ;;  %p5196_p6 = scmp.lt.u32.totalorder %s5192_s17, %s6894_s4 }
0x1891   :  { %p5198_p7 = pnand %p5196_p6, %p5193_p5 }
0x1893   :  { %5201 = shalt.err (!%p5198_p7)
}
0x1894   :  { %3984 = dma.vmem_to_hbm [thread:$0]  %s3982_s14, 32, %s6894_s4, [#allocation3]  }
0x1895   :  { %5202 = dma.done.wait [#allocation3], 32  }
0x1896   :  { %5203 = vsyncadd [#allocation3], 4294967264 }
0x1897   :  { %3988 = vsyncpa [#allocation3], 1 }

</bundles_post_ra>
